<compile_context>
chip_gen: v7x
topology: tpu7x:2x2x1
jax: 0.10.0
libtpu: 0.0.40
codegen_flags: <defaults>
</compile_context>

<pallas_src>
import functools

import jax
import jax.numpy as jnp
from jax import lax
from jax.experimental import pallas as pl
from jax.experimental.pallas import tpu as pltpu


def _upsample_conv3x3_kernel(x_ref, w_ref, b_ref, o_ref, *, cin, cout, pad):
    # x_ref: (1, Cin, H, W)        VMEM -- one batch element, original res (NCHW)
    # w_ref: (Cin*9, Cout*Wo)      VMEM -- tap weights, lane-packed per output channel
    # b_ref: (1, Cout*Wo)          VMEM -- bias, lane-packed per output channel
    # o_ref: (1, Cout, Ho, Wo)     VMEM -- Ho = 2H + 2*pad - 2 (3x3 conv, stride 1)
    f32 = jnp.float32
    H, W = x_ref.shape[2], x_ref.shape[3]
    Ho, Wo = o_ref.shape[2], o_ref.shape[3]
    Hp, Wp = 2 * H + 2 * pad, 2 * W + 2 * pad

    # Exact 0/1 expansion matrices: E[a, i] = 1 iff padded-upsampled index `a`
    # reads source index `i`, i.e. (a - pad - 2*i) in {0, 1}.  Rows in the pad
    # border are all-zero, so the matmul both upsamples and zero-pads.
    a = lax.broadcasted_iota(jnp.int32, (Hp, H), 0)
    i = lax.broadcasted_iota(jnp.int32, (Hp, H), 1)
    dh = a - pad - 2 * i
    eh = jnp.where((dh == 0) | (dh == 1), f32(1.0), f32(0.0))        # (Hp, H)

    j = lax.broadcasted_iota(jnp.int32, (W, Wp), 0)
    b = lax.broadcasted_iota(jnp.int32, (W, Wp), 1)
    dw = b - pad - 2 * j
    ewt = jnp.where((dw == 0) | (dw == 1), f32(1.0), f32(0.0))       # (W, Wp)

    # Lane-pack all input channels and do one row-expansion matmul for all of
    # them, then a per-channel column expansion (exact selection, MXU).
    x_all = jnp.concatenate(
        [x_ref[0, ci].astype(f32) for ci in range(cin)], axis=1)      # (H, Cin*W)
    rows = jnp.dot(eh, x_all, preferred_element_type=f32)             # (Hp, Cin*W)
    up = [jnp.dot(rows[:, ci * W:(ci + 1) * W], ewt,
                  preferred_element_type=f32) for ci in range(cin)]   # Cin x (Hp, Wp)

    # Lane-packed accumulator: all Cout output channels side by side on the lane
    # axis (here (32, 128) = 4 fully-occupied vregs).  Bias applied once at init.
    acc = jnp.zeros((Ho, cout * Wo), f32) + b_ref[...]

    # 3x3 conv as 9 shifted taps per input channel; each tap is one fully
    # lane-dense VPU multiply-add against a pre-packed weight row.
    for ci in range(cin):
        for ky in range(3):
            for kx in range(3):
                patch = up[ci][ky:ky + Ho, kx:kx + Wo]                # (Ho, Wo) static slice
                patch_t = jnp.concatenate([patch] * cout, axis=1)     # (Ho, Cout*Wo)
                r = (ci * 3 + ky) * 3 + kx
                acc = acc + patch_t * w_ref[r:r + 1, :]               # (1, Cout*Wo) row broadcast

    # Unpack lanes back into contiguous NCHW channel planes.
    for co in range(cout):
        o_ref[0, co] = acc[:, co * Wo:(co + 1) * Wo].astype(o_ref.dtype)


def upsample_forward(x_nchw, weight_oihw, bias, padding=1):
    """Nearest-2x upsample (H, W) followed by 3x3 conv (stride 1). NCHW in / out."""
    N, C, H, W = x_nchw.shape
    Cout, Cin, kh, kw = weight_oihw.shape
    assert Cin == C and kh == 3 and kw == 3, "kernel assumes a 3x3 conv"
    Ho = 2 * H + 2 * padding - 2
    Wo = 2 * W + 2 * padding - 2

    # Tap weights packed lane-wise: row (ci*3+ky)*3+kx holds w[co, ci, ky, kx]
    # repeated over the Wo lanes of output-channel block `co` (matches acc layout).
    w_rows = jnp.transpose(weight_oihw.astype(jnp.float32),
                           (1, 2, 3, 0)).reshape(Cin * 9, Cout)
    w_rows = jnp.repeat(w_rows, Wo, axis=1)                          # (Cin*9, Cout*Wo)
    b_row = jnp.repeat(bias.astype(jnp.float32), Wo).reshape(1, Cout * Wo)

    kernel = functools.partial(
        _upsample_conv3x3_kernel, cin=C, cout=Cout, pad=padding)

    return pl.pallas_call(
        kernel,
        out_shape=jax.ShapeDtypeStruct((N, Cout, Ho, Wo), x_nchw.dtype),
        grid=(N,),
        in_specs=[
            pl.BlockSpec((1, C, H, W), lambda n: (n, 0, 0, 0)),
            pl.BlockSpec((Cin * 9, Cout * Wo), lambda n: (0, 0)),
            pl.BlockSpec((1, Cout * Wo), lambda n: (0, 0)),
        ],
        out_specs=pl.BlockSpec((1, Cout, Ho, Wo), lambda n: (n, 0, 0, 0)),
        compiler_params=pltpu.CompilerParams(
            dimension_semantics=("parallel",),
            vmem_limit_bytes=64 * 1024 * 1024,
        ),
    )(x_nchw, w_rows, b_row)


def reference_forward(x_nchw, weight_oihw, bias, padding=1):
    """Pure-JAX reference (same semantics as F.interpolate(2x, nearest) + nn.Conv2d)."""
    x_up = jnp.repeat(jnp.repeat(x_nchw, 2, axis=2), 2, axis=3)
    y = lax.conv_general_dilated(
        x_up, weight_oihw,
        window_strides=(1, 1),
        padding=((padding, padding), (padding, padding)),
        dimension_numbers=("NCHW", "OIHW", "NCHW"),
        precision=lax.Precision.HIGHEST,
    )
    return y + bias.reshape(1, -1, 1, 1)


if __name__ == "__main__":
    # Module config: Upsample(channels=4, use_conv=True, dims=2, out_channels=4, padding=1)
    channels, out_channels, padding = 4, 4, 1

    key = jax.random.PRNGKey(0)
    kx, kw, kb = jax.random.split(key, 3)

    # Deterministic parameter init (PyTorch Conv2d-style uniform bounds), OIHW.
    fan_in = channels * 3 * 3
    bound = 1.0 / (fan_in ** 0.5)
    weight = jax.random.uniform(
        kw, (out_channels, channels, 3, 3), jnp.float32, -bound, bound)
    bias = jax.random.uniform(kb, (out_channels,), jnp.float32, -bound, bound)

    # Small NCHW input.  Values kept exactly bf16-representable so the check is
    # independent of MXU f32 pass decomposition (the 0/1 expansion matmuls are
    # exact selections either way).
    x = jax.random.normal(kx, (2, channels, 16, 16), jnp.float32)
    x = x.astype(jnp.bfloat16).astype(jnp.float32)

    y = jax.block_until_ready(upsample_forward(x, weight, bias, padding=padding))
    y_ref = reference_forward(x, weight, bias, padding=padding)

    assert y.shape == (2, out_channels, 32, 32), y.shape
    assert jnp.allclose(y, y_ref, atol=1e-4, rtol=1e-4), \
        float(jnp.max(jnp.abs(y - y_ref)))

    print("KERNEL_OK")
</pallas_src>

<mosaic_0001>
module attributes {stable_mosaic.version = 11 : i64} {
  func.func @_upsample_conv3x3_kernel(%arg0: i32, %arg1: memref<1x4x16x16xf32, #tpu.memory_space<vmem>>, %arg2: memref<36x128xf32, #tpu.memory_space<vmem>>, %arg3: memref<1x128xf32, #tpu.memory_space<vmem>>, %arg4: memref<1x4x32x32xf32, #tpu.memory_space<vmem>>) attributes {dimension_semantics = [#tpu.dimension_semantics<parallel>], iteration_bounds = array<i64: 2>, scalar_prefetch = 0 : i64, scratch_operands = 0 : i64, tpu.core_type = #tpu.core_type<tc>, window_params = [{transform_indices = @transform_0, window_bounds = array<i64: 1, 4, 16, 16>}, {pipeline_mode = #tpu.pipeline_mode<synchronous>, transform_indices = @transform_1, window_bounds = array<i64: 36, 128>}, {pipeline_mode = #tpu.pipeline_mode<synchronous>, transform_indices = @transform_2, window_bounds = array<i64: 1, 128>}, {transform_indices = @transform_3, window_bounds = array<i64: 1, 4, 32, 32>}]} {
    %0 = tpu.iota {dimensions = array<i32: 0>} : vector<34x16xi32>
    %1 = tpu.iota {dimensions = array<i32: 1>} : vector<34x16xi32>
    %c1_i32 = arith.constant 1 : i32
    %2 = vector.broadcast %c1_i32 : i32 to vector<34x16xi32>
    %3 = arith.subi %0, %2 : vector<34x16xi32>
    %c2_i32 = arith.constant 2 : i32
    %4 = vector.broadcast %c2_i32 : i32 to vector<34x16xi32>
    %5 = arith.muli %4, %1 : vector<34x16xi32>
    %6 = arith.subi %3, %5 : vector<34x16xi32>
    %c0_i32 = arith.constant 0 : i32
    %7 = vector.broadcast %c0_i32 : i32 to vector<34x16xi32>
    %8 = arith.cmpi eq, %6, %7 : vector<34x16xi32>
    %c1_i32_0 = arith.constant 1 : i32
    %9 = vector.broadcast %c1_i32_0 : i32 to vector<34x16xi32>
    %10 = arith.cmpi eq, %6, %9 : vector<34x16xi32>
    %11 = arith.ori %8, %10 : vector<34x16xi1>
    %cst = arith.constant 1.000000e+00 : f32
    %cst_1 = arith.constant 0.000000e+00 : f32
    %12 = vector.broadcast %cst : f32 to vector<34x16xf32>
    %13 = vector.broadcast %cst_1 : f32 to vector<34x16xf32>
    %14 = arith.select %11, %12, %13 : vector<34x16xi1>, vector<34x16xf32>
    %15 = tpu.iota {dimensions = array<i32: 0>} : vector<16x34xi32>
    %16 = tpu.iota {dimensions = array<i32: 1>} : vector<16x34xi32>
    %c1_i32_2 = arith.constant 1 : i32
    %17 = vector.broadcast %c1_i32_2 : i32 to vector<16x34xi32>
    %18 = arith.subi %16, %17 : vector<16x34xi32>
    %c2_i32_3 = arith.constant 2 : i32
    %19 = vector.broadcast %c2_i32_3 : i32 to vector<16x34xi32>
    %20 = arith.muli %19, %15 : vector<16x34xi32>
    %21 = arith.subi %18, %20 : vector<16x34xi32>
    %c0_i32_4 = arith.constant 0 : i32
    %22 = vector.broadcast %c0_i32_4 : i32 to vector<16x34xi32>
    %23 = arith.cmpi eq, %21, %22 : vector<16x34xi32>
    %c1_i32_5 = arith.constant 1 : i32
    %24 = vector.broadcast %c1_i32_5 : i32 to vector<16x34xi32>
    %25 = arith.cmpi eq, %21, %24 : vector<16x34xi32>
    %26 = arith.ori %23, %25 : vector<16x34xi1>
    %cst_6 = arith.constant 1.000000e+00 : f32
    %cst_7 = arith.constant 0.000000e+00 : f32
    %27 = vector.broadcast %cst_6 : f32 to vector<16x34xf32>
    %28 = vector.broadcast %cst_7 : f32 to vector<16x34xf32>
    %29 = arith.select %26, %27, %28 : vector<16x34xi1>, vector<16x34xf32>
    %c0 = arith.constant 0 : index
    %c0_8 = arith.constant 0 : index
    %c0_9 = arith.constant 0 : index
    %c0_10 = arith.constant 0 : index
    %30 = vector.load %arg1[%c0, %c0_8, %c0_9, %c0_10] : memref<1x4x16x16xf32, #tpu.memory_space<vmem>>, vector<1x1x16x16xf32>
    %31 = vector.shape_cast %30 : vector<1x1x16x16xf32> to vector<16x16xf32>
    %c0_11 = arith.constant 0 : index
    %c1 = arith.constant 1 : index
    %c0_12 = arith.constant 0 : index
    %c0_13 = arith.constant 0 : index
    %32 = vector.load %arg1[%c0_11, %c1, %c0_12, %c0_13] : memref<1x4x16x16xf32, #tpu.memory_space<vmem>>, vector<1x1x16x16xf32>
    %33 = vector.shape_cast %32 : vector<1x1x16x16xf32> to vector<16x16xf32>
    %c0_14 = arith.constant 0 : index
    %c2 = arith.constant 2 : index
    %c0_15 = arith.constant 0 : index
    %c0_16 = arith.constant 0 : index
    %34 = vector.load %arg1[%c0_14, %c2, %c0_15, %c0_16] : memref<1x4x16x16xf32, #tpu.memory_space<vmem>>, vector<1x1x16x16xf32>
    %35 = vector.shape_cast %34 : vector<1x1x16x16xf32> to vector<16x16xf32>
    %c0_17 = arith.constant 0 : index
    %c3 = arith.constant 3 : index
    %c0_18 = arith.constant 0 : index
    %c0_19 = arith.constant 0 : index
    %36 = vector.load %arg1[%c0_17, %c3, %c0_18, %c0_19] : memref<1x4x16x16xf32, #tpu.memory_space<vmem>>, vector<1x1x16x16xf32>
    %37 = vector.shape_cast %36 : vector<1x1x16x16xf32> to vector<16x16xf32>
    %38 = tpu.concatenate %31, %33, %35, %37 in 1 : vector<16x16xf32>, vector<16x16xf32>, vector<16x16xf32>, vector<16x16xf32> -> vector<16x64xf32>
    %cst_20 = arith.constant dense<0.000000e+00> : vector<34x64xf32>
    %39 = tpu.matmul %14, %38, %cst_20 {dimension_numbers = #tpu.dot_dimension_numbers<[1], [0], [0], [1], [0, 0, 1, 1], [], []>} : vector<34x16xf32>, vector<16x64xf32>, vector<34x64xf32> -> vector<34x64xf32>
    %40 = vector.extract_strided_slice %39 {offsets = [0, 0], sizes = [34, 16], strides = [1, 1]} : vector<34x64xf32> to vector<34x16xf32>
    %cst_21 = arith.constant dense<0.000000e+00> : vector<34x34xf32>
    %41 = tpu.matmul %40, %29, %cst_21 {dimension_numbers = #tpu.dot_dimension_numbers<[1], [0], [0], [1], [0, 0, 1, 1], [], []>} : vector<34x16xf32>, vector<16x34xf32>, vector<34x34xf32> -> vector<34x34xf32>
    %42 = vector.extract_strided_slice %39 {offsets = [0, 16], sizes = [34, 16], strides = [1, 1]} : vector<34x64xf32> to vector<34x16xf32>
    %cst_22 = arith.constant dense<0.000000e+00> : vector<34x34xf32>
    %43 = tpu.matmul %42, %29, %cst_22 {dimension_numbers = #tpu.dot_dimension_numbers<[1], [0], [0], [1], [0, 0, 1, 1], [], []>} : vector<34x16xf32>, vector<16x34xf32>, vector<34x34xf32> -> vector<34x34xf32>
    %44 = vector.extract_strided_slice %39 {offsets = [0, 32], sizes = [34, 16], strides = [1, 1]} : vector<34x64xf32> to vector<34x16xf32>
    %cst_23 = arith.constant dense<0.000000e+00> : vector<34x34xf32>
    %45 = tpu.matmul %44, %29, %cst_23 {dimension_numbers = #tpu.dot_dimension_numbers<[1], [0], [0], [1], [0, 0, 1, 1], [], []>} : vector<34x16xf32>, vector<16x34xf32>, vector<34x34xf32> -> vector<34x34xf32>
    %46 = vector.extract_strided_slice %39 {offsets = [0, 48], sizes = [34, 16], strides = [1, 1]} : vector<34x64xf32> to vector<34x16xf32>
    %cst_24 = arith.constant dense<0.000000e+00> : vector<34x34xf32>
    %47 = tpu.matmul %46, %29, %cst_24 {dimension_numbers = #tpu.dot_dimension_numbers<[1], [0], [0], [1], [0, 0, 1, 1], [], []>} : vector<34x16xf32>, vector<16x34xf32>, vector<34x34xf32> -> vector<34x34xf32>
    %cst_25 = arith.constant 0.000000e+00 : f32
    %48 = vector.broadcast %cst_25 : f32 to vector<32x128xf32>
    %c0_26 = arith.constant 0 : index
    %c0_27 = arith.constant 0 : index
    %49 = vector.load %arg3[%c0_26, %c0_27] : memref<1x128xf32, #tpu.memory_space<vmem>>, vector<1x128xf32>
    %50 = vector.broadcast %49 : vector<1x128xf32> to vector<32x128xf32>
    %51 = arith.addf %48, %50 : vector<32x128xf32>
    %52 = vector.extract_strided_slice %41 {offsets = [0, 0], sizes = [32, 32], strides = [1, 1]} : vector<34x34xf32> to vector<32x32xf32>
    %53 = tpu.concatenate %52, %52, %52, %52 in 1 : vector<32x32xf32>, vector<32x32xf32>, vector<32x32xf32>, vector<32x32xf32> -> vector<32x128xf32>
    %c0_28 = arith.constant 0 : index
    %c0_29 = arith.constant 0 : index
    %54 = vector.load %arg2[%c0_28, %c0_29] : memref<36x128xf32, #tpu.memory_space<vmem>>, vector<1x128xf32>
    %55 = vector.broadcast %54 : vector<1x128xf32> to vector<32x128xf32>
    %56 = arith.mulf %53, %55 : vector<32x128xf32>
    %57 = arith.addf %51, %56 : vector<32x128xf32>
    %58 = vector.extract_strided_slice %41 {offsets = [0, 1], sizes = [32, 32], strides = [1, 1]} : vector<34x34xf32> to vector<32x32xf32>
    %59 = tpu.concatenate %58, %58, %58, %58 in 1 : vector<32x32xf32>, vector<32x32xf32>, vector<32x32xf32>, vector<32x32xf32> -> vector<32x128xf32>
    %c1_30 = arith.constant 1 : index
    %c0_31 = arith.constant 0 : index
    %60 = vector.load %arg2[%c1_30, %c0_31] : memref<36x128xf32, #tpu.memory_space<vmem>>, vector<1x128xf32>
    %61 = vector.broadcast %60 : vector<1x128xf32> to vector<32x128xf32>
    %62 = arith.mulf %59, %61 : vector<32x128xf32>
    %63 = arith.addf %57, %62 : vector<32x128xf32>
    %64 = vector.extract_strided_slice %41 {offsets = [0, 2], sizes = [32, 32], strides = [1, 1]} : vector<34x34xf32> to vector<32x32xf32>
    %65 = tpu.concatenate %64, %64, %64, %64 in 1 : vector<32x32xf32>, vector<32x32xf32>, vector<32x32xf32>, vector<32x32xf32> -> vector<32x128xf32>
    %c2_32 = arith.constant 2 : index
    %c0_33 = arith.constant 0 : index
    %66 = vector.load %arg2[%c2_32, %c0_33] : memref<36x128xf32, #tpu.memory_space<vmem>>, vector<1x128xf32>
    %67 = vector.broadcast %66 : vector<1x128xf32> to vector<32x128xf32>
    %68 = arith.mulf %65, %67 : vector<32x128xf32>
    %69 = arith.addf %63, %68 : vector<32x128xf32>
    %70 = vector.extract_strided_slice %41 {offsets = [1, 0], sizes = [32, 32], strides = [1, 1]} : vector<34x34xf32> to vector<32x32xf32>
    %71 = tpu.concatenate %70, %70, %70, %70 in 1 : vector<32x32xf32>, vector<32x32xf32>, vector<32x32xf32>, vector<32x32xf32> -> vector<32x128xf32>
    %c3_34 = arith.constant 3 : index
    %c0_35 = arith.constant 0 : index
    %72 = vector.load %arg2[%c3_34, %c0_35] : memref<36x128xf32, #tpu.memory_space<vmem>>, vector<1x128xf32>
    %73 = vector.broadcast %72 : vector<1x128xf32> to vector<32x128xf32>
    %74 = arith.mulf %71, %73 : vector<32x128xf32>
    %75 = arith.addf %69, %74 : vector<32x128xf32>
    %76 = vector.extract_strided_slice %41 {offsets = [1, 1], sizes = [32, 32], strides = [1, 1]} : vector<34x34xf32> to vector<32x32xf32>
    %77 = tpu.concatenate %76, %76, %76, %76 in 1 : vector<32x32xf32>, vector<32x32xf32>, vector<32x32xf32>, vector<32x32xf32> -> vector<32x128xf32>
    %c4 = arith.constant 4 : index
    %c0_36 = arith.constant 0 : index
    %78 = vector.load %arg2[%c4, %c0_36] : memref<36x128xf32, #tpu.memory_space<vmem>>, vector<1x128xf32>
    %79 = vector.broadcast %78 : vector<1x128xf32> to vector<32x128xf32>
    %80 = arith.mulf %77, %79 : vector<32x128xf32>
    %81 = arith.addf %75, %80 : vector<32x128xf32>
    %82 = vector.extract_strided_slice %41 {offsets = [1, 2], sizes = [32, 32], strides = [1, 1]} : vector<34x34xf32> to vector<32x32xf32>
    %83 = tpu.concatenate %82, %82, %82, %82 in 1 : vector<32x32xf32>, vector<32x32xf32>, vector<32x32xf32>, vector<32x32xf32> -> vector<32x128xf32>
    %c5 = arith.constant 5 : index
    %c0_37 = arith.constant 0 : index
    %84 = vector.load %arg2[%c5, %c0_37] : memref<36x128xf32, #tpu.memory_space<vmem>>, vector<1x128xf32>
    %85 = vector.broadcast %84 : vector<1x128xf32> to vector<32x128xf32>
    %86 = arith.mulf %83, %85 : vector<32x128xf32>
    %87 = arith.addf %81, %86 : vector<32x128xf32>
    %88 = vector.extract_strided_slice %41 {offsets = [2, 0], sizes = [32, 32], strides = [1, 1]} : vector<34x34xf32> to vector<32x32xf32>
    %89 = tpu.concatenate %88, %88, %88, %88 in 1 : vector<32x32xf32>, vector<32x32xf32>, vector<32x32xf32>, vector<32x32xf32> -> vector<32x128xf32>
    %c6 = arith.constant 6 : index
    %c0_38 = arith.constant 0 : index
    %90 = vector.load %arg2[%c6, %c0_38] : memref<36x128xf32, #tpu.memory_space<vmem>>, vector<1x128xf32>
    %91 = vector.broadcast %90 : vector<1x128xf32> to vector<32x128xf32>
    %92 = arith.mulf %89, %91 : vector<32x128xf32>
    %93 = arith.addf %87, %92 : vector<32x128xf32>
    %94 = vector.extract_strided_slice %41 {offsets = [2, 1], sizes = [32, 32], strides = [1, 1]} : vector<34x34xf32> to vector<32x32xf32>
    %95 = tpu.concatenate %94, %94, %94, %94 in 1 : vector<32x32xf32>, vector<32x32xf32>, vector<32x32xf32>, vector<32x32xf32> -> vector<32x128xf32>
    %c7 = arith.constant 7 : index
    %c0_39 = arith.constant 0 : index
    %96 = vector.load %arg2[%c7, %c0_39] : memref<36x128xf32, #tpu.memory_space<vmem>>, vector<1x128xf32>
    %97 = vector.broadcast %96 : vector<1x128xf32> to vector<32x128xf32>
    %98 = arith.mulf %95, %97 : vector<32x128xf32>
    %99 = arith.addf %93, %98 : vector<32x128xf32>
    %100 = vector.extract_strided_slice %41 {offsets = [2, 2], sizes = [32, 32], strides = [1, 1]} : vector<34x34xf32> to vector<32x32xf32>
    %101 = tpu.concatenate %100, %100, %100, %100 in 1 : vector<32x32xf32>, vector<32x32xf32>, vector<32x32xf32>, vector<32x32xf32> -> vector<32x128xf32>
    %c8 = arith.constant 8 : index
    %c0_40 = arith.constant 0 : index
    %102 = vector.load %arg2[%c8, %c0_40] : memref<36x128xf32, #tpu.memory_space<vmem>>, vector<1x128xf32>
    %103 = vector.broadcast %102 : vector<1x128xf32> to vector<32x128xf32>
    %104 = arith.mulf %101, %103 : vector<32x128xf32>
    %105 = arith.addf %99, %104 : vector<32x128xf32>
    %106 = vector.extract_strided_slice %43 {offsets = [0, 0], sizes = [32, 32], strides = [1, 1]} : vector<34x34xf32> to vector<32x32xf32>
    %107 = tpu.concatenate %106, %106, %106, %106 in 1 : vector<32x32xf32>, vector<32x32xf32>, vector<32x32xf32>, vector<32x32xf32> -> vector<32x128xf32>
    %c9 = arith.constant 9 : index
    %c0_41 = arith.constant 0 : index
    %108 = vector.load %arg2[%c9, %c0_41] : memref<36x128xf32, #tpu.memory_space<vmem>>, vector<1x128xf32>
    %109 = vector.broadcast %108 : vector<1x128xf32> to vector<32x128xf32>
    %110 = arith.mulf %107, %109 : vector<32x128xf32>
    %111 = arith.addf %105, %110 : vector<32x128xf32>
    %112 = vector.extract_strided_slice %43 {offsets = [0, 1], sizes = [32, 32], strides = [1, 1]} : vector<34x34xf32> to vector<32x32xf32>
    %113 = tpu.concatenate %112, %112, %112, %112 in 1 : vector<32x32xf32>, vector<32x32xf32>, vector<32x32xf32>, vector<32x32xf32> -> vector<32x128xf32>
    %c10 = arith.constant 10 : index
    %c0_42 = arith.constant 0 : index
    %114 = vector.load %arg2[%c10, %c0_42] : memref<36x128xf32, #tpu.memory_space<vmem>>, vector<1x128xf32>
    %115 = vector.broadcast %114 : vector<1x128xf32> to vector<32x128xf32>
    %116 = arith.mulf %113, %115 : vector<32x128xf32>
    %117 = arith.addf %111, %116 : vector<32x128xf32>
    %118 = vector.extract_strided_slice %43 {offsets = [0, 2], sizes = [32, 32], strides = [1, 1]} : vector<34x34xf32> to vector<32x32xf32>
    %119 = tpu.concatenate %118, %118, %118, %118 in 1 : vector<32x32xf32>, vector<32x32xf32>, vector<32x32xf32>, vector<32x32xf32> -> vector<32x128xf32>
    %c11 = arith.constant 11 : index
    %c0_43 = arith.constant 0 : index
    %120 = vector.load %arg2[%c11, %c0_43] : memref<36x128xf32, #tpu.memory_space<vmem>>, vector<1x128xf32>
    %121 = vector.broadcast %120 : vector<1x128xf32> to vector<32x128xf32>
    %122 = arith.mulf %119, %121 : vector<32x128xf32>
    %123 = arith.addf %117, %122 : vector<32x128xf32>
    %124 = vector.extract_strided_slice %43 {offsets = [1, 0], sizes = [32, 32], strides = [1, 1]} : vector<34x34xf32> to vector<32x32xf32>
    %125 = tpu.concatenate %124, %124, %124, %124 in 1 : vector<32x32xf32>, vector<32x32xf32>, vector<32x32xf32>, vector<32x32xf32> -> vector<32x128xf32>
    %c12 = arith.constant 12 : index
    %c0_44 = arith.constant 0 : index
    %126 = vector.load %arg2[%c12, %c0_44] : memref<36x128xf32, #tpu.memory_space<vmem>>, vector<1x128xf32>
    %127 = vector.broadcast %126 : vector<1x128xf32> to vector<32x128xf32>
    %128 = arith.mulf %125, %127 : vector<32x128xf32>
    %129 = arith.addf %123, %128 : vector<32x128xf32>
    %130 = vector.extract_strided_slice %43 {offsets = [1, 1], sizes = [32, 32], strides = [1, 1]} : vector<34x34xf32> to vector<32x32xf32>
    %131 = tpu.concatenate %130, %130, %130, %130 in 1 : vector<32x32xf32>, vector<32x32xf32>, vector<32x32xf32>, vector<32x32xf32> -> vector<32x128xf32>
    %c13 = arith.constant 13 : index
    %c0_45 = arith.constant 0 : index
    %132 = vector.load %arg2[%c13, %c0_45] : memref<36x128xf32, #tpu.memory_space<vmem>>, vector<1x128xf32>
    %133 = vector.broadcast %132 : vector<1x128xf32> to vector<32x128xf32>
    %134 = arith.mulf %131, %133 : vector<32x128xf32>
    %135 = arith.addf %129, %134 : vector<32x128xf32>
    %136 = vector.extract_strided_slice %43 {offsets = [1, 2], sizes = [32, 32], strides = [1, 1]} : vector<34x34xf32> to vector<32x32xf32>
    %137 = tpu.concatenate %136, %136, %136, %136 in 1 : vector<32x32xf32>, vector<32x32xf32>, vector<32x32xf32>, vector<32x32xf32> -> vector<32x128xf32>
    %c14 = arith.constant 14 : index
    %c0_46 = arith.constant 0 : index
    %138 = vector.load %arg2[%c14, %c0_46] : memref<36x128xf32, #tpu.memory_space<vmem>>, vector<1x128xf32>
    %139 = vector.broadcast %138 : vector<1x128xf32> to vector<32x128xf32>
    %140 = arith.mulf %137, %139 : vector<32x128xf32>
    %141 = arith.addf %135, %140 : vector<32x128xf32>
    %142 = vector.extract_strided_slice %43 {offsets = [2, 0], sizes = [32, 32], strides = [1, 1]} : vector<34x34xf32> to vector<32x32xf32>
    %143 = tpu.concatenate %142, %142, %142, %142 in 1 : vector<32x32xf32>, vector<32x32xf32>, vector<32x32xf32>, vector<32x32xf32> -> vector<32x128xf32>
    %c15 = arith.constant 15 : index
    %c0_47 = arith.constant 0 : index
    %144 = vector.load %arg2[%c15, %c0_47] : memref<36x128xf32, #tpu.memory_space<vmem>>, vector<1x128xf32>
    %145 = vector.broadcast %144 : vector<1x128xf32> to vector<32x128xf32>
    %146 = arith.mulf %143, %145 : vector<32x128xf32>
    %147 = arith.addf %141, %146 : vector<32x128xf32>
    %148 = vector.extract_strided_slice %43 {offsets = [2, 1], sizes = [32, 32], strides = [1, 1]} : vector<34x34xf32> to vector<32x32xf32>
    %149 = tpu.concatenate %148, %148, %148, %148 in 1 : vector<32x32xf32>, vector<32x32xf32>, vector<32x32xf32>, vector<32x32xf32> -> vector<32x128xf32>
    %c16 = arith.constant 16 : index
    %c0_48 = arith.constant 0 : index
    %150 = vector.load %arg2[%c16, %c0_48] : memref<36x128xf32, #tpu.memory_space<vmem>>, vector<1x128xf32>
    %151 = vector.broadcast %150 : vector<1x128xf32> to vector<32x128xf32>
    %152 = arith.mulf %149, %151 : vector<32x128xf32>
    %153 = arith.addf %147, %152 : vector<32x128xf32>
    %154 = vector.extract_strided_slice %43 {offsets = [2, 2], sizes = [32, 32], strides = [1, 1]} : vector<34x34xf32> to vector<32x32xf32>
    %155 = tpu.concatenate %154, %154, %154, %154 in 1 : vector<32x32xf32>, vector<32x32xf32>, vector<32x32xf32>, vector<32x32xf32> -> vector<32x128xf32>
    %c17 = arith.constant 17 : index
    %c0_49 = arith.constant 0 : index
    %156 = vector.load %arg2[%c17, %c0_49] : memref<36x128xf32, #tpu.memory_space<vmem>>, vector<1x128xf32>
    %157 = vector.broadcast %156 : vector<1x128xf32> to vector<32x128xf32>
    %158 = arith.mulf %155, %157 : vector<32x128xf32>
    %159 = arith.addf %153, %158 : vector<32x128xf32>
    %160 = vector.extract_strided_slice %45 {offsets = [0, 0], sizes = [32, 32], strides = [1, 1]} : vector<34x34xf32> to vector<32x32xf32>
    %161 = tpu.concatenate %160, %160, %160, %160 in 1 : vector<32x32xf32>, vector<32x32xf32>, vector<32x32xf32>, vector<32x32xf32> -> vector<32x128xf32>
    %c18 = arith.constant 18 : index
    %c0_50 = arith.constant 0 : index
    %162 = vector.load %arg2[%c18, %c0_50] : memref<36x128xf32, #tpu.memory_space<vmem>>, vector<1x128xf32>
    %163 = vector.broadcast %162 : vector<1x128xf32> to vector<32x128xf32>
    %164 = arith.mulf %161, %163 : vector<32x128xf32>
    %165 = arith.addf %159, %164 : vector<32x128xf32>
    %166 = vector.extract_strided_slice %45 {offsets = [0, 1], sizes = [32, 32], strides = [1, 1]} : vector<34x34xf32> to vector<32x32xf32>
    %167 = tpu.concatenate %166, %166, %166, %166 in 1 : vector<32x32xf32>, vector<32x32xf32>, vector<32x32xf32>, vector<32x32xf32> -> vector<32x128xf32>
    %c19 = arith.constant 19 : index
    %c0_51 = arith.constant 0 : index
    %168 = vector.load %arg2[%c19, %c0_51] : memref<36x128xf32, #tpu.memory_space<vmem>>, vector<1x128xf32>
    %169 = vector.broadcast %168 : vector<1x128xf32> to vector<32x128xf32>
    %170 = arith.mulf %167, %169 : vector<32x128xf32>
    %171 = arith.addf %165, %170 : vector<32x128xf32>
    %172 = vector.extract_strided_slice %45 {offsets = [0, 2], sizes = [32, 32], strides = [1, 1]} : vector<34x34xf32> to vector<32x32xf32>
    %173 = tpu.concatenate %172, %172, %172, %172 in 1 : vector<32x32xf32>, vector<32x32xf32>, vector<32x32xf32>, vector<32x32xf32> -> vector<32x128xf32>
    %c20 = arith.constant 20 : index
    %c0_52 = arith.constant 0 : index
    %174 = vector.load %arg2[%c20, %c0_52] : memref<36x128xf32, #tpu.memory_space<vmem>>, vector<1x128xf32>
    %175 = vector.broadcast %174 : vector<1x128xf32> to vector<32x128xf32>
    %176 = arith.mulf %173, %175 : vector<32x128xf32>
    %177 = arith.addf %171, %176 : vector<32x128xf32>
    %178 = vector.extract_strided_slice %45 {offsets = [1, 0], sizes = [32, 32], strides = [1, 1]} : vector<34x34xf32> to vector<32x32xf32>
    %179 = tpu.concatenate %178, %178, %178, %178 in 1 : vector<32x32xf32>, vector<32x32xf32>, vector<32x32xf32>, vector<32x32xf32> -> vector<32x128xf32>
    %c21 = arith.constant 21 : index
    %c0_53 = arith.constant 0 : index
    %180 = vector.load %arg2[%c21, %c0_53] : memref<36x128xf32, #tpu.memory_space<vmem>>, vector<1x128xf32>
    %181 = vector.broadcast %180 : vector<1x128xf32> to vector<32x128xf32>
    %182 = arith.mulf %179, %181 : vector<32x128xf32>
    %183 = arith.addf %177, %182 : vector<32x128xf32>
    %184 = vector.extract_strided_slice %45 {offsets = [1, 1], sizes = [32, 32], strides = [1, 1]} : vector<34x34xf32> to vector<32x32xf32>
    %185 = tpu.concatenate %184, %184, %184, %184 in 1 : vector<32x32xf32>, vector<32x32xf32>, vector<32x32xf32>, vector<32x32xf32> -> vector<32x128xf32>
    %c22 = arith.constant 22 : index
    %c0_54 = arith.constant 0 : index
    %186 = vector.load %arg2[%c22, %c0_54] : memref<36x128xf32, #tpu.memory_space<vmem>>, vector<1x128xf32>
    %187 = vector.broadcast %186 : vector<1x128xf32> to vector<32x128xf32>
    %188 = arith.mulf %185, %187 : vector<32x128xf32>
    %189 = arith.addf %183, %188 : vector<32x128xf32>
    %190 = vector.extract_strided_slice %45 {offsets = [1, 2], sizes = [32, 32], strides = [1, 1]} : vector<34x34xf32> to vector<32x32xf32>
    %191 = tpu.concatenate %190, %190, %190, %190 in 1 : vector<32x32xf32>, vector<32x32xf32>, vector<32x32xf32>, vector<32x32xf32> -> vector<32x128xf32>
    %c23 = arith.constant 23 : index
    %c0_55 = arith.constant 0 : index
    %192 = vector.load %arg2[%c23, %c0_55] : memref<36x128xf32, #tpu.memory_space<vmem>>, vector<1x128xf32>
    %193 = vector.broadcast %192 : vector<1x128xf32> to vector<32x128xf32>
    %194 = arith.mulf %191, %193 : vector<32x128xf32>
    %195 = arith.addf %189, %194 : vector<32x128xf32>
    %196 = vector.extract_strided_slice %45 {offsets = [2, 0], sizes = [32, 32], strides = [1, 1]} : vector<34x34xf32> to vector<32x32xf32>
    %197 = tpu.concatenate %196, %196, %196, %196 in 1 : vector<32x32xf32>, vector<32x32xf32>, vector<32x32xf32>, vector<32x32xf32> -> vector<32x128xf32>
    %c24 = arith.constant 24 : index
    %c0_56 = arith.constant 0 : index
    %198 = vector.load %arg2[%c24, %c0_56] : memref<36x128xf32, #tpu.memory_space<vmem>>, vector<1x128xf32>
    %199 = vector.broadcast %198 : vector<1x128xf32> to vector<32x128xf32>
    %200 = arith.mulf %197, %199 : vector<32x128xf32>
    %201 = arith.addf %195, %200 : vector<32x128xf32>
    %202 = vector.extract_strided_slice %45 {offsets = [2, 1], sizes = [32, 32], strides = [1, 1]} : vector<34x34xf32> to vector<32x32xf32>
    %203 = tpu.concatenate %202, %202, %202, %202 in 1 : vector<32x32xf32>, vector<32x32xf32>, vector<32x32xf32>, vector<32x32xf32> -> vector<32x128xf32>
    %c25 = arith.constant 25 : index
    %c0_57 = arith.constant 0 : index
    %204 = vector.load %arg2[%c25, %c0_57] : memref<36x128xf32, #tpu.memory_space<vmem>>, vector<1x128xf32>
    %205 = vector.broadcast %204 : vector<1x128xf32> to vector<32x128xf32>
    %206 = arith.mulf %203, %205 : vector<32x128xf32>
    %207 = arith.addf %201, %206 : vector<32x128xf32>
    %208 = vector.extract_strided_slice %45 {offsets = [2, 2], sizes = [32, 32], strides = [1, 1]} : vector<34x34xf32> to vector<32x32xf32>
    %209 = tpu.concatenate %208, %208, %208, %208 in 1 : vector<32x32xf32>, vector<32x32xf32>, vector<32x32xf32>, vector<32x32xf32> -> vector<32x128xf32>
    %c26 = arith.constant 26 : index
    %c0_58 = arith.constant 0 : index
    %210 = vector.load %arg2[%c26, %c0_58] : memref<36x128xf32, #tpu.memory_space<vmem>>, vector<1x128xf32>
    %211 = vector.broadcast %210 : vector<1x128xf32> to vector<32x128xf32>
    %212 = arith.mulf %209, %211 : vector<32x128xf32>
    %213 = arith.addf %207, %212 : vector<32x128xf32>
    %214 = vector.extract_strided_slice %47 {offsets = [0, 0], sizes = [32, 32], strides = [1, 1]} : vector<34x34xf32> to vector<32x32xf32>
    %215 = tpu.concatenate %214, %214, %214, %214 in 1 : vector<32x32xf32>, vector<32x32xf32>, vector<32x32xf32>, vector<32x32xf32> -> vector<32x128xf32>
    %c27 = arith.constant 27 : index
    %c0_59 = arith.constant 0 : index
    %216 = vector.load %arg2[%c27, %c0_59] : memref<36x128xf32, #tpu.memory_space<vmem>>, vector<1x128xf32>
    %217 = vector.broadcast %216 : vector<1x128xf32> to vector<32x128xf32>
    %218 = arith.mulf %215, %217 : vector<32x128xf32>
    %219 = arith.addf %213, %218 : vector<32x128xf32>
    %220 = vector.extract_strided_slice %47 {offsets = [0, 1], sizes = [32, 32], strides = [1, 1]} : vector<34x34xf32> to vector<32x32xf32>
    %221 = tpu.concatenate %220, %220, %220, %220 in 1 : vector<32x32xf32>, vector<32x32xf32>, vector<32x32xf32>, vector<32x32xf32> -> vector<32x128xf32>
    %c28 = arith.constant 28 : index
    %c0_60 = arith.constant 0 : index
    %222 = vector.load %arg2[%c28, %c0_60] : memref<36x128xf32, #tpu.memory_space<vmem>>, vector<1x128xf32>
    %223 = vector.broadcast %222 : vector<1x128xf32> to vector<32x128xf32>
    %224 = arith.mulf %221, %223 : vector<32x128xf32>
    %225 = arith.addf %219, %224 : vector<32x128xf32>
    %226 = vector.extract_strided_slice %47 {offsets = [0, 2], sizes = [32, 32], strides = [1, 1]} : vector<34x34xf32> to vector<32x32xf32>
    %227 = tpu.concatenate %226, %226, %226, %226 in 1 : vector<32x32xf32>, vector<32x32xf32>, vector<32x32xf32>, vector<32x32xf32> -> vector<32x128xf32>
    %c29 = arith.constant 29 : index
    %c0_61 = arith.constant 0 : index
    %228 = vector.load %arg2[%c29, %c0_61] : memref<36x128xf32, #tpu.memory_space<vmem>>, vector<1x128xf32>
    %229 = vector.broadcast %228 : vector<1x128xf32> to vector<32x128xf32>
    %230 = arith.mulf %227, %229 : vector<32x128xf32>
    %231 = arith.addf %225, %230 : vector<32x128xf32>
    %232 = vector.extract_strided_slice %47 {offsets = [1, 0], sizes = [32, 32], strides = [1, 1]} : vector<34x34xf32> to vector<32x32xf32>
    %233 = tpu.concatenate %232, %232, %232, %232 in 1 : vector<32x32xf32>, vector<32x32xf32>, vector<32x32xf32>, vector<32x32xf32> -> vector<32x128xf32>
    %c30 = arith.constant 30 : index
    %c0_62 = arith.constant 0 : index
    %234 = vector.load %arg2[%c30, %c0_62] : memref<36x128xf32, #tpu.memory_space<vmem>>, vector<1x128xf32>
    %235 = vector.broadcast %234 : vector<1x128xf32> to vector<32x128xf32>
    %236 = arith.mulf %233, %235 : vector<32x128xf32>
    %237 = arith.addf %231, %236 : vector<32x128xf32>
    %238 = vector.extract_strided_slice %47 {offsets = [1, 1], sizes = [32, 32], strides = [1, 1]} : vector<34x34xf32> to vector<32x32xf32>
    %239 = tpu.concatenate %238, %238, %238, %238 in 1 : vector<32x32xf32>, vector<32x32xf32>, vector<32x32xf32>, vector<32x32xf32> -> vector<32x128xf32>
    %c31 = arith.constant 31 : index
    %c0_63 = arith.constant 0 : index
    %240 = vector.load %arg2[%c31, %c0_63] : memref<36x128xf32, #tpu.memory_space<vmem>>, vector<1x128xf32>
    %241 = vector.broadcast %240 : vector<1x128xf32> to vector<32x128xf32>
    %242 = arith.mulf %239, %241 : vector<32x128xf32>
    %243 = arith.addf %237, %242 : vector<32x128xf32>
    %244 = vector.extract_strided_slice %47 {offsets = [1, 2], sizes = [32, 32], strides = [1, 1]} : vector<34x34xf32> to vector<32x32xf32>
    %245 = tpu.concatenate %244, %244, %244, %244 in 1 : vector<32x32xf32>, vector<32x32xf32>, vector<32x32xf32>, vector<32x32xf32> -> vector<32x128xf32>
    %c32 = arith.constant 32 : index
    %c0_64 = arith.constant 0 : index
    %246 = vector.load %arg2[%c32, %c0_64] : memref<36x128xf32, #tpu.memory_space<vmem>>, vector<1x128xf32>
    %247 = vector.broadcast %246 : vector<1x128xf32> to vector<32x128xf32>
    %248 = arith.mulf %245, %247 : vector<32x128xf32>
    %249 = arith.addf %243, %248 : vector<32x128xf32>
    %250 = vector.extract_strided_slice %47 {offsets = [2, 0], sizes = [32, 32], strides = [1, 1]} : vector<34x34xf32> to vector<32x32xf32>
    %251 = tpu.concatenate %250, %250, %250, %250 in 1 : vector<32x32xf32>, vector<32x32xf32>, vector<32x32xf32>, vector<32x32xf32> -> vector<32x128xf32>
    %c33 = arith.constant 33 : index
    %c0_65 = arith.constant 0 : index
    %252 = vector.load %arg2[%c33, %c0_65] : memref<36x128xf32, #tpu.memory_space<vmem>>, vector<1x128xf32>
    %253 = vector.broadcast %252 : vector<1x128xf32> to vector<32x128xf32>
    %254 = arith.mulf %251, %253 : vector<32x128xf32>
    %255 = arith.addf %249, %254 : vector<32x128xf32>
    %256 = vector.extract_strided_slice %47 {offsets = [2, 1], sizes = [32, 32], strides = [1, 1]} : vector<34x34xf32> to vector<32x32xf32>
    %257 = tpu.concatenate %256, %256, %256, %256 in 1 : vector<32x32xf32>, vector<32x32xf32>, vector<32x32xf32>, vector<32x32xf32> -> vector<32x128xf32>
    %c34 = arith.constant 34 : index
    %c0_66 = arith.constant 0 : index
    %258 = vector.load %arg2[%c34, %c0_66] : memref<36x128xf32, #tpu.memory_space<vmem>>, vector<1x128xf32>
    %259 = vector.broadcast %258 : vector<1x128xf32> to vector<32x128xf32>
    %260 = arith.mulf %257, %259 : vector<32x128xf32>
    %261 = arith.addf %255, %260 : vector<32x128xf32>
    %262 = vector.extract_strided_slice %47 {offsets = [2, 2], sizes = [32, 32], strides = [1, 1]} : vector<34x34xf32> to vector<32x32xf32>
    %263 = tpu.concatenate %262, %262, %262, %262 in 1 : vector<32x32xf32>, vector<32x32xf32>, vector<32x32xf32>, vector<32x32xf32> -> vector<32x128xf32>
    %c35 = arith.constant 35 : index
    %c0_67 = arith.constant 0 : index
    %264 = vector.load %arg2[%c35, %c0_67] : memref<36x128xf32, #tpu.memory_space<vmem>>, vector<1x128xf32>
    %265 = vector.broadcast %264 : vector<1x128xf32> to vector<32x128xf32>
    %266 = arith.mulf %263, %265 : vector<32x128xf32>
    %267 = arith.addf %261, %266 : vector<32x128xf32>
    %268 = vector.extract_strided_slice %267 {offsets = [0, 0], sizes = [32, 32], strides = [1, 1]} : vector<32x128xf32> to vector<32x32xf32>
    %c0_68 = arith.constant 0 : index
    %c0_69 = arith.constant 0 : index
    %c0_70 = arith.constant 0 : index
    %c0_71 = arith.constant 0 : index
    %269 = vector.load %arg4[%c0_68, %c0_69, %c0_70, %c0_71] : memref<1x4x32x32xf32, #tpu.memory_space<vmem>>, vector<1x1x32x32xf32>
    %270 = vector.shape_cast %269 : vector<1x1x32x32xf32> to vector<32x32xf32>
    %271 = vector.shape_cast %268 : vector<32x32xf32> to vector<1x1x32x32xf32>
    tpu.vector_store %arg4[%c0_68, %c0_69, %c0_70, %c0_71], %271 {strides = array<i32>} : memref<1x4x32x32xf32, #tpu.memory_space<vmem>>, vector<1x1x32x32xf32>,
    %272 = vector.extract_strided_slice %267 {offsets = [0, 32], sizes = [32, 32], strides = [1, 1]} : vector<32x128xf32> to vector<32x32xf32>
    %c0_72 = arith.constant 0 : index
    %c1_73 = arith.constant 1 : index
    %c0_74 = arith.constant 0 : index
    %c0_75 = arith.constant 0 : index
    %273 = vector.load %arg4[%c0_72, %c1_73, %c0_74, %c0_75] : memref<1x4x32x32xf32, #tpu.memory_space<vmem>>, vector<1x1x32x32xf32>
    %274 = vector.shape_cast %273 : vector<1x1x32x32xf32> to vector<32x32xf32>
    %275 = vector.shape_cast %272 : vector<32x32xf32> to vector<1x1x32x32xf32>
    tpu.vector_store %arg4[%c0_72, %c1_73, %c0_74, %c0_75], %275 {strides = array<i32>} : memref<1x4x32x32xf32, #tpu.memory_space<vmem>>, vector<1x1x32x32xf32>,
    %276 = vector.extract_strided_slice %267 {offsets = [0, 64], sizes = [32, 32], strides = [1, 1]} : vector<32x128xf32> to vector<32x32xf32>
    %c0_76 = arith.constant 0 : index
    %c2_77 = arith.constant 2 : index
    %c0_78 = arith.constant 0 : index
    %c0_79 = arith.constant 0 : index
    %277 = vector.load %arg4[%c0_76, %c2_77, %c0_78, %c0_79] : memref<1x4x32x32xf32, #tpu.memory_space<vmem>>, vector<1x1x32x32xf32>
    %278 = vector.shape_cast %277 : vector<1x1x32x32xf32> to vector<32x32xf32>
    %279 = vector.shape_cast %276 : vector<32x32xf32> to vector<1x1x32x32xf32>
    tpu.vector_store %arg4[%c0_76, %c2_77, %c0_78, %c0_79], %279 {strides = array<i32>} : memref<1x4x32x32xf32, #tpu.memory_space<vmem>>, vector<1x1x32x32xf32>,
    %280 = vector.extract_strided_slice %267 {offsets = [0, 96], sizes = [32, 32], strides = [1, 1]} : vector<32x128xf32> to vector<32x32xf32>
    %c0_80 = arith.constant 0 : index
    %c3_81 = arith.constant 3 : index
    %c0_82 = arith.constant 0 : index
    %c0_83 = arith.constant 0 : index
    %281 = vector.load %arg4[%c0_80, %c3_81, %c0_82, %c0_83] : memref<1x4x32x32xf32, #tpu.memory_space<vmem>>, vector<1x1x32x32xf32>
    %282 = vector.shape_cast %281 : vector<1x1x32x32xf32> to vector<32x32xf32>
    %283 = vector.shape_cast %280 : vector<32x32xf32> to vector<1x1x32x32xf32>
    tpu.vector_store %arg4[%c0_80, %c3_81, %c0_82, %c0_83], %283 {strides = array<i32>} : memref<1x4x32x32xf32, #tpu.memory_space<vmem>>, vector<1x1x32x32xf32>,
    return
  }
  func.func @transform_0(%arg0: i32) -> (i32, i32, i32, i32) {
    %c0_i32 = arith.constant 0 : i32
    %c0_i32_0 = arith.constant 0 : i32
    %c0_i32_1 = arith.constant 0 : i32
    %c0_i32_2 = arith.constant 0 : i32
    return %arg0, %c0_i32, %c0_i32_0, %c0_i32_1 : i32, i32, i32, i32
  }
  func.func @transform_1(%arg0: i32) -> (i32, i32) {
    %c0_i32 = arith.constant 0 : i32
    %c0_i32_0 = arith.constant 0 : i32
    %c0_i32_1 = arith.constant 0 : i32
    return %c0_i32, %c0_i32_0 : i32, i32
  }
  func.func @transform_2(%arg0: i32) -> (i32, i32) {
    %c0_i32 = arith.constant 0 : i32
    %c0_i32_0 = arith.constant 0 : i32
    %c0_i32_1 = arith.constant 0 : i32
    return %c0_i32, %c0_i32_0 : i32, i32
  }
  func.func @transform_3(%arg0: i32) -> (i32, i32, i32, i32) {
    %c0_i32 = arith.constant 0 : i32
    %c0_i32_0 = arith.constant 0 : i32
    %c0_i32_1 = arith.constant 0 : i32
    %c0_i32_2 = arith.constant 0 : i32
    return %arg0, %c0_i32, %c0_i32_0, %c0_i32_1 : i32, i32, i32, i32
  }
}

</mosaic_0001>

<bundles_post_ra>
// kernel: tpu_custom_call.1
= control target key start
LH: loop header
LB: loop body
LE: loop exit
PB: predicated region body
PF: predicated region fallthrough
CT: control target
= control target key end

     0   :  { %8 = vsyncpa [#allocation3], 0  ;;  %s5513_s0 = inlined_call_operand.hbm [shape: f32[2,4,16,16], index: 0, kind: input, shape index: {}]   ;;  %s5514_s1 = inlined_call_operand.hbm [shape: f32[36,128], index: 1, kind: input, shape index: {}]   ;;  %s5515_s2 = inlined_call_operand.hbm [shape: f32[1,128], index: 2, kind: input, shape index: {}]   ;;  %s5516_s3 = inlined_call_operand.hbm [shape: f32[2,4,32,32], index: 3, kind: output, shape index: {}]  }
   0x1   :  { %10 = vsyncpa [#allocation3 + $0x1], 0 }
   0x2   :  { %11 = vsyncpa [#allocation6], 0 }
   0x3   :  { %12 = vsyncpa [#allocation4], 0 }
   0x4   :  { %14 = vsyncpa [#allocation4 + $0x1], 0  ;;  %s3384_s12 = smov 0   ;;  %s3386_s13 = smov 0  }
   0x5   :  { %s3388_s14 = smov 0   ;;  %s3390_s15 = smov 0  }
   0x6 LB: > { %s3405_s16 = sadd.s32 4294967295, %s3335_s15   ;;  %s2813_s17 = sadd.s32 4294967294, %s3335_s15   ;;  %s3335_s15 = sphi %s3390_s15, %s5720_s15   ;;  %s3331_s14 = sphi %s3388_s14, %s5719_s14   ;;  %s3327_s13 = sphi %s3386_s13, %s5718_s13   ;;  %s3323_s12 = sphi %s3384_s12, %s5717_s12  }
   0x7   : > { %p40_p0 = scmp.ne.s32.totalorder %s3327_s13, %s3323_s12  ;;  %p5517_p1 = scmp.eq.s32.totalorder %s3405_s16, 0 }
   0x8   : > { %p112_p3 = scmp.eq.s32.totalorder %s2813_s17, 1  ;;  %p2814_p5 = scmp.ge.s32.totalorder %s3335_s15, 1 }
   0x9   : > { %p3414_p4 = por %p5517_p1, %p40_p0  ;;  %p119_p7 = scmp.lt.s32.totalorder %s3335_s15, 3 }
   0xa   : > { %p3419_p6 = por %p112_p3, %p40_p0  ;;  %s3337_s21 = smov [#allocation5]  }
   0xb   : > { %s5558_s18 = scalar_select %p3414_p4, 1, 0 }
   0xc   : > { %s5559_s19 = scalar_select %p3419_p6, 1, 0 }
   0xd   : > { %p3424_p8 = pnand %p2814_p5, %p119_p7  ;;  %s131_s22 = sshll.u32 %s3337_s21, 4  ;;  %s3428_s22 = int_to_ptr.vmem [resolvable:$true] %s131_s22 }
   0xe   : > { %s3338_s24 = smov [#allocation7]   ;;  %s3179_s28 = scalar_lea.hbm %s5514_s1, 640 }
   0xf   : > { %p3086_p9 = pneg %p3424_p8  ;;  %s145_s25 = sshll.u32 %s3338_s24, 4  ;;  %s3439_s25 = int_to_ptr.vmem [resolvable:$true] %s145_s25 }
  0x10   : > { %p3180_p12 = scmp.ne.s32.totalorder %s5514_s1, %s3179_s28  ;;  %p3186_p5 = scmp.lt.u32.totalorder %s3179_s28, %s5514_s1 }
  0x11   : > { %p3435_p11 = pnand %p3086_p9, %p5517_p1 }
  0x13   : > { %p3181_p13 = pneg %p3435_p11 }
  0x15   : > { %p3182_p0 = pnand %p3181_p13, %p3180_p12 }
  0x17   : > { %p3183_p3 = pneg %p3182_p0 }
  0x19   : > { %p3188_p7 = pnand %p3186_p5, %p3183_p3 }
  0x1b   : > { %3191 = shalt.err (!%p3188_p7)
}
  0x1c   : > { %s3192_s6 = scalar_lea.vmem %s3428_s22, 640  ;;  %p3200_p2 = scmp.lt.s32.totalorder %s3428_s22, %s3428_s22 }
  0x1d   : > { %p3193_p9 = scmp.ne.s32.totalorder %s3428_s22, %s3192_s6  ;;  %p3201_p12 = scmp.lt.s32.totalorder %s3192_s6, %s3192_s6 }
  0x1f   : > { %p3195_p10 = pnand %p3193_p9, %p3181_p13  ;;  %p3202_p0 = por %p3201_p12, %p3200_p2 }
  0x21   : > { %p3196_p1 = pneg %p3195_p10 }
  0x23   : > { %p3203_p6 = pnand %p3202_p0, %p3196_p1 }
  0x25   : > { %3206 = shalt.err (!%p3203_p6)
}
  0x26   : > { %s3339_s7 = smov 128   ;;  %s3340_s8 = smov 8  }
  0x27   : > { %3089 = dma.hbm_to_vmem [thread:$0]  (!%p3435_p11), %s5514_s1, 640, %s3428_s22, [#allocation6], %s3339_s7, %s3339_s7, %s3340_s8  }
  0x28   : > { %s3207_s21 = scalar_lea.hbm %s5515_s2, 16 }
  0x29   : > { %p3208_p1 = scmp.ne.s32.totalorder %s5515_s2, %s3207_s21  ;;  %p3214_p10 = scmp.lt.u32.totalorder %s3207_s21, %s5515_s2 }
  0x2b   : > { %p3210_p2 = pnand %p3208_p1, %p3181_p13 }
  0x2d   : > { %p3211_p6 = pneg %p3210_p2 }
  0x2f   : > { %p3216_p3 = pnand %p3214_p10, %p3211_p6 }
  0x31   : > { %3219 = shalt.err (!%p3216_p3)
}
  0x32   : > { %s3220_s22 = scalar_lea.vmem %s3439_s25, 16  ;;  %s3227_s29 = scalar_lea.vmem %s3439_s25, 32 }
  0x33   : > { %p3221_p5 = scmp.ne.s32.totalorder %s3439_s25, %s3220_s22  ;;  %p3228_p12 = scmp.lt.s32.totalorder %s3439_s25, %s3439_s25 }
  0x34   : > { %p3229_p0 = scmp.lt.s32.totalorder %s3227_s29, %s3220_s22 }
  0x35   : > { %p3223_p7 = pnand %p3221_p5, %p3181_p13 }
  0x36   : > { %p3230_p1 = por %p3229_p0, %p3228_p12 }
  0x37   : > { %p3224_p9 = pneg %p3223_p7 }
  0x39   : > { %p3231_p2 = pnand %p3230_p1, %p3224_p9 }
  0x3b   : > { %3234 = shalt.err (!%p3231_p2)
}
  0x3c   : > { %3092 = dma.hbm_to_vmem [thread:$0]  (!%p3435_p11), %s5515_s2, 16, %s3439_s25, [#allocation6]  }
  0x3d   : > { %s3498_s5 = sadd.s32 1, %s3335_s15   ;;  %s27_s23 = sadd.s32 1, %s3331_s14 }
  0x3e   : > { %s24_s6 = ssub.s32 %s3335_s15, %s3498_s5  ;;  %p34_p13 = scmp.ne.s32.totalorder %s3331_s14, %s3327_s13 }
  0x3f   : > { %p25_p6 = scmp.eq.s32.totalorder %s24_s6, 0  ;;  %p35_p10 = scmp.eq.s32.totalorder %s3335_s15, 0 }
  0x40   : > { %p5562_p3 = scmp.eq.s32.totalorder %s3405_s16, 1  ;;  %p3103_p7 = scmp.lt.s32.totalorder %s3335_s15, 2 }
  0x41   : > { %s3514_s10 = scalar_select %p25_p6, %s3331_s14, %s27_s23  }
  0x42   : > { %p3508_p5 = por %p5562_p3, %p34_p13  ;;  %p36_p9 = por %p35_p10, %p34_p13 }
  0x43   : > { %s156_s11 = sand.u32 1, %s3331_s14   ;;  %s2925_s25 = sshll.u32 %s3335_s15, 10 }
  0x44   : > { %s5563_s9 = scalar_select %p3508_p5, 1, 0 }
  0x45   : > { %s2818_s17 = sshll.u32 %s156_s11, 6  ;;  %s3521_s26 = scalar_lea.hbm %s5513_s0, %s2925_s25 }
  0x46   : > { %s160_s27 = scalar_lea.vmem [#allocation2], %s2818_s17  ;;  %p3525_p11 = pnand %p3103_p7, %p36_p9 }
  0x47   : > { %s167_s28 = sshll.u32 %s160_s27, 4  ;;  %s3529_s29 = scalar_lea.sflag [#allocation3], %s156_s11  ;;  %s3523_s28 = int_to_ptr.vmem [resolvable:$true] %s167_s28 }
  0x48   : > { %s3235_s30 = scalar_lea.hbm %s3521_s26, 1024  ;;  %p3237_p0 = pneg %p3525_p11 }
  0x49   : > { %p3236_p12 = scmp.ne.s32.totalorder %s3521_s26, %s3235_s30  ;;  %s3240_s6 = scalar_lea.hbm %s5513_s0, 2048 }
  0x4a   : > { %p3241_p13 = scmp.lt.u32.totalorder %s3521_s26, %s5513_s0  ;;  %p3242_p6 = scmp.lt.u32.totalorder %s3240_s6, %s3235_s30 }
  0x4b   : > { %p3238_p1 = pnand %p3237_p0, %p3236_p12  ;;  %p3244_p3 = scmp.lt.u32.totalorder %s3235_s30, %s3521_s26 }
  0x4c   : > { %p3243_p10 = por %p3242_p6, %p3241_p13 }
  0x4d   : > { %p3239_p2 = pneg %p3238_p1 }
  0x4e   : > { %p3245_p7 = por %p3244_p3, %p3243_p10 }
  0x50   : > { %p3246_p9 = pnand %p3245_p7, %p3239_p2 }
  0x52   : > { %3249 = shalt.err (!%p3246_p9)
}
  0x53   : > { %s3250_s11 = scalar_lea.vmem %s3523_s28, 1024  ;;  %s3341_s21 = smov [#allocation2]  }
  0x54   : > { %p3251_p12 = scmp.ne.s32.totalorder %s3523_s28, %s3250_s11  ;;  %s3255_s24 = sshll.u32 %s3341_s21, 4  ;;  %s3256_s24 = int_to_ptr.vmem [resolvable:$false] %s3255_s24 }
  0x55   : > { %s3257_s27 = scalar_lea.vmem %s3256_s24, 2048  ;;  %p3258_p4 = scmp.lt.s32.totalorder %s3523_s28, %s3256_s24 }
  0x56   : > { %p3253_p1 = pnand %p3251_p12, %p3237_p0  ;;  %p3259_p13 = scmp.lt.s32.totalorder %s3257_s27, %s3250_s11 }
  0x58   : > { %p3254_p5 = pneg %p3253_p1  ;;  %p3260_p6 = por %p3259_p13, %p3258_p4 }
  0x5a   : > { %p3261_p10 = pnand %p3260_p6, %p3254_p5 }
  0x5c   : > { %3264 = shalt.err (!%p3261_p10)
}
  0x5d   : > { %3096 = dma.hbm_to_vmem [thread:$0]  (!%p3525_p11), %s3521_s26, 1024, %s3523_s28, %s3529_s29, %s3339_s7, %s3339_s7, %s3340_s8  }
  0x5e   : > { %179 = sbr.rel (%p3424_p8) target bundleno = 1375 (0x55f), region = 32 }
  0x65   : > { %s3563_s30 = sand.u32 1, %s3327_s13   ;;  %p5565_p4 = scmp.ne.s32.totalorder %s5558_s18, 0 }
  0x66   : > { %s2822_s4 = sshll.u32 %s3563_s30, 6  ;;  %s182_s23 = scalar_lea.sflag [#allocation3], %s3563_s30 }
  0x67   : > { %s3567_s6 = scalar_lea.vmem [#allocation2], %s2822_s4 }
  0x68   : > { %3310 = dma.done.wait (%p5565_p4), %s182_s23, 1024  }
  0x69   : > { %3312 = vsyncadd (%p5565_p4), %s182_s23, 4294966272  ;;  %p5566_p5 = scmp.eq.s32.totalorder %s3405_s16, 0 }
  0x6b   : > { %3314 = dma.done.wait (%p5566_p5), [#allocation6], 656   ;;  %p5567_p8 = pmov %p5566_p5 }
  0x6c   : > { %v3342_v0 = vmov 0.0|0.0   ;;  %v2832_v1 = vld [vmem:[%s3567_s6 + $0x10] sm:$0xff]  ;;  %v2833_v2 = vld [vmem:[%s3567_s6 + $0x18] sm:$0xff]  ;;  %v2834_v3 = vld [vmem:[%s3567_s6 + $0x20] sm:$0xff]  ;;  %vm5521_vm0 = vmmov 0   ;;  %v3344_v8 = vmov 0.0   ;;  %v216_v11 = vlaneseq }
  0x6d   : > { %3316 = vsyncadd (%p5567_p8), [#allocation6], 4294966640  ;;  %3057 = vmatprep.subr.bf16.mxu0 %v3342_v0  ;;  %3072 = vmatprep.subr.bf16.mxu1 %v3342_v0  ;;  %v3164_v4 = vpack.i.bf16 %v2833_v2, %v2832_v1  ;;  %v2835_v5 = vld [vmem:[%s3567_s6 + $0x28] sm:$0xff]  ;;  %v2836_v6 = vld [vmem:[%s3567_s6 + $0x30] sm:$0xff]  ;;  %s3345_s18 = smov 16   ;;  %s3346_s20 = smov 48  }
  0x6e   : > { %v2837_v7 = vld [vmem:[%s3567_s6 + $0x38] sm:$0xff]  ;;  %2966 = vmatprep.mubr.msk.f32.mxu0 %vm5521_vm0, %v3344_v8  ;;  %2975 = vmatprep.mubr.msk.f32.mxu1 %vm5521_vm0, %v3344_v8  ;;  %v3169_v10 = vpack.i.bf16 %v2835_v5, %v2834_v3  ;;  %s3347_s7 = smov 32   ;;  %v217_v12 = vshrl.u32 %v216_v11, 7  ;;  %v223_v13 = vand.u32 127, %v216_v11  ;;  %vm5523_vm1 = vcmask 130048   ;;  %v268_v33 = vld [vmem:[%s3567_s6] sm:$0xff] }
  0x6f   : > { %v3174_v9 = vpack.i.bf16 %v2837_v7, %v2836_v6  ;;  %3165 = vrot.lane.b32.xlu0 %v3164_v4, %s3345_s18  ;;  %vm5520_vm2 = vcmask 261120   ;;  %vm309_vm3 = vcmask 392192   ;;  %v269_v34 = vld [vmem:[%s3567_s6 + $0x8] sm:$0xff]  ;;  %v3348_v58 = vmov 1.0|1.0   ;;  %s3349_s8 = smov 112  }
  0x70   : > { %v220_v14 = vadd.s32 24, %v217_v12  ;;  %v2826_v15 = vadd.s32 4294967295, %v217_v12  ;;  %v229_v16 = vmul.u32 2, %v223_v13  ;;  %v218_v17 = vadd.s32 8, %v217_v12  ;;  %s3350_s26 = smov 96   ;;  %s3351_s28 = smov 80  }
  0x71   : > { %3175 = vrot.lane.b32.xlu1 %v3174_v9, %s3346_s20  ;;  %v221_v19 = vadd.s32 32, %v217_v12  ;;  %v2831_v20 = vadd.s32 4294967295, %v223_v13  ;;  %v256_v21 = vmul.u32 2, %v217_v12  ;;  %v219_v28 = vadd.s32 16, %v217_v12  ;;  %s3352_s22 = smov 64   ;;  %s3353_s29 = smov 127  }
  0x72   : > { %v2829_v18 = vadd.s32 4294967295, %v220_v14  ;;  %v230_v22 = vsub.s32 %v2826_v15, %v229_v16  ;;  %v2827_v23 = vadd.s32 4294967295, %v218_v17  ;;  %v257_v24 = vmul.u32 2, %v218_v17  ;;  %s3354_s17 = smov 31   ;;  %s3355_s25 = smov 63  }
  0x73   : > { %3170 = vrot.lane.b32.xlu0 %v3169_v10, %s3347_s7  ;;  %v2830_v29 = vadd.s32 4294967295, %v221_v19  ;;  %v258_v32 = vsub.s32 %v2831_v20, %v256_v21  ;;  %v2828_v42 = vadd.s32 4294967295, %v219_v28  ;;  %s3356_s11 = smov 95   ;;  %s3357_s21 = smov 126  }
  0x74   : > { %v233_v26 = vsub.s32 %v2829_v18, %v229_v16  ;;  %vm235_vm4 = vcmp.eq.s32.totalorder %v230_v22, 0  ;;  %vm240_vm5 = vcmp.eq.s32.totalorder %v230_v22, 1  ;;  %v231_v35 = vsub.s32 %v2827_v23, %v229_v16  ;;  %s3358_s24 = smov 30   ;;  %s3359_s27 = smov 62  }
  0x75   : > { %v259_v36 = vsub.s32 %v2831_v20, %v257_v24  ;;  %v234_v43 = vsub.s32 %v2830_v29, %v229_v16  ;;  %vm260_vm8 = vcmp.eq.s32.totalorder %v258_v32, 0  ;;  %vm262_vm9 = vcmp.eq.s32.totalorder %v258_v32, 1  ;;  %vm3598_vm10 = vmor %vm235_vm4, %vm240_vm5  ;;  %s3360_s4 = smov 94   ;;  %s2825_s23 = sshll.u32 %s3563_s30, 7 }
  0x76   : > { %vm238_vm6 = vcmp.eq.s32.totalorder %v233_v26, 0  ;;  %vm243_vm7 = vcmp.eq.s32.totalorder %v233_v26, 1  ;;  %vm236_vm14 = vcmp.eq.s32.totalorder %v231_v35, 0  ;;  %vm241_vm15 = vcmp.eq.s32.totalorder %v231_v35, 1  ;;  %vm264_vm4 = vmor %vm260_vm8, %vm262_vm9  ;;  %s5314_s6 = scalar_lea.vmem [#allocation8], %s2825_s23  ;;  %s2926_s18 = sshll.u32 %s3405_s16, 11 }
  0x77   : > { %vm261_vm11 = vcmp.eq.s32.totalorder %v259_v36, 0  ;;  %vm263_vm12 = vcmp.eq.s32.totalorder %v259_v36, 1  ;;  %vm248_vm13 = vmor %vm238_vm6, %vm243_vm7  ;;  %v232_v52 = vsub.s32 %v2828_v42, %v229_v16  ;;  %vm244_vm0 = vcmp.eq.s32.totalorder %v234_v43, 1  ;;  %v3849_v42 = vld [vmem:[#allocation5 + $0x3] ss:$0 sm:$0xff]  ;;  %s2721_s20 = sshll.u32 %s5314_s6, 4  ;;  %s5467_s20 = int_to_ptr.vmem [resolvable:$true] %s2721_s20 }
  0x78   : > { %vm265_vm5 = vmor %vm261_vm11, %vm263_vm12  ;;  %v250_v53 = vsel %vm3598_vm10, 1.0, %v3344_v8  ;;  %v253_v54 = vsel %vm248_vm13, 1.0, %v3344_v8  ;;  %vm5572_vm9 = vcmask 130048   ;;  %vm5574_vm10 = vmmov 0   ;;  %p5714_p0 = scmp.ne.s32.totalorder %s5563_s9, 0  ;;  %s3361_s16 = smov [#allocation8]  }
  0x79   : > { %vm237_vm7 = vcmp.eq.s32.totalorder %v232_v52, 0  ;;  %vm3614_vm8 = vmpackc.low %vm265_vm5, %vm264_vm4 }
  0x7a   : > { %vm5573_vm11 = vmmov %vm5572_vm9 }
  0xe1   : > { %v3166_v25 = vpop.permute.xlu0 %3165 }
  0xe2   : > { %v3168_v30 = vunpack.i.h.bf16 %v3166_v25  ;;  %v3167_v31 = vunpack.i.l.bf16 %v3166_v25 }
  0xe3   : > { %v3176_v27 = vpop.permute.xlu1 %3175 }
  0xe4   : > { %v3178_v38 = vunpack.i.h.bf16 %v3176_v27  ;;  %v3177_v39 = vunpack.i.l.bf16 %v3176_v27  ;;  %v304_v44 = vsel %vm5523_vm1, %v268_v33, %v3167_v31  ;;  %v305_v45 = vsel %vm5523_vm1, %v269_v34, %v3168_v30 }
  0xe5   : > { %v3171_v37 = vpop.permute.xlu0 %3170  ;;  %vm242_vm1 = vcmp.eq.s32.totalorder %v232_v52, 1 }
  0xe6   : > { %v3173_v40 = vunpack.i.h.bf16 %v3171_v37  ;;  %v3172_v41 = vunpack.i.l.bf16 %v3171_v37 }
  0xe8   : > { %v307_v46 = vsel %vm5520_vm2, %v304_v44, %v3172_v41  ;;  %v308_v47 = vsel %vm5520_vm2, %v305_v45, %v3173_v40  ;;  %vm239_vm2 = vcmp.eq.s32.totalorder %v234_v43, 0  ;;  %v3851_v43 = vld [vmem:[#allocation5 + $0x6] ss:$0 sm:$0xff] }
  0xe9   : > { %v310_v49 = vsel %vm309_vm3, %v307_v46, %v3177_v39  ;;  %v311_v50 = vsel %vm309_vm3, %v308_v47, %v3178_v38  ;;  %vm246_vm3 = vmor %vm236_vm14, %vm241_vm15 }
  0xea   : > { %v3058_v51 = vpack.c.bf16 %v311_v50, %v310_v49  ;;  %vm249_vm6 = vmor %vm239_vm2, %vm244_vm0  ;;  %v251_v56 = vsel %vm246_vm3, 1.0, %v3344_v8 }
  0xeb   : > { %v254_v57 = vsel %vm249_vm6, 1.0, %v3344_v8  ;;  %vm247_vm0 = vmor %vm237_vm7, %vm242_vm1 }
  0xec   : > { %3059 = vmatpush3.bf16.msra.mxu0 %v3058_v51  ;;  %3073 = vmatpush3.bf16.msra.mxu1 %v3058_v51  ;;  %vm5575_vm2 = vmmov %vm5572_vm9  ;;  %v252_v59 = vsel %vm247_vm0, 1.0, %v3344_v8 }
  0xed   : > { %3060 = vmatprep.subr.bf16.mxu1 %v3342_v0  ;;  %3063 = vmatprep.subr.bf16.mxu0 %v3342_v0  ;;  %vm5576_vm12 = vmmov %vm5575_vm2 }
  0xee   : > { %vm5577_vm1 = vmmov %vm5575_vm2 }
  0xef   : > { %2967 = vmatmul.mubr.msk.f32.vlgmr.msra.gmra.mrb[0].mxu0 %vm5572_vm9, %v250_v53  ;;  %2976 = vmatmul.mubr.msk.f32.vlgmr.msra.gmra.mrb[0].mxu1 %vm5573_vm11, %v253_v54  ;;  %vm5578_vm13 = vmmov %vm5577_vm1 }
  0xf0   : > { %2969 = vmatprep.mubr.msk.f32.mxu0 %vm5574_vm10, %v3344_v8  ;;  %2978 = vmatprep.mubr.msk.f32.mxu1 %vm5574_vm10, %v3344_v8  ;;  %vm5579_vm14 = vmmov %vm5577_vm1 }
  0xf1   : > { %3062 = vmatpush3.bf16.msk.msra.mxu1 %vm3614_vm8, %v3348_v58  ;;  %3065 = vmatpush3.bf16.msk.msra.mxu0 %vm3614_vm8, %v3348_v58  ;;  %vm5580_vm15 = vmmov %vm5577_vm1 }
  0xf2   : > { %3066 = vmatprep.subr.bf16.mxu1 %v3342_v0  ;;  %3069 = vmatprep.subr.bf16.mxu0 %v3342_v0  ;;  %vm5581_vm4 = vmmov %vm5577_vm1 }
  0xf3   : > { %2970 = vmatmul.mubr.msk.f32.gmra.mrb[2].mxu0 %vm5575_vm2, %v251_v56  ;;  %2979 = vmatmul.mubr.msk.f32.gmra.mrb[2].mxu1 %vm5576_vm12, %v254_v57  ;;  %vm5582_vm5 = vmmov %vm5577_vm1 }
  0xf4   : > { %2972 = vmatprep.mubr.msk.f32.mxu0 %vm5574_vm10, %v3344_v8  ;;  %2985 = vmatprep.mubr.msk.f32.mxu1 %vm5574_vm10, %v3344_v8  ;;  %vm5583_vm3 = vmmov %vm5577_vm1 }
  0xf5   : > { %vm5584_vm6 = vmmov %vm5577_vm1 }
  0xf6   : > { %vm5585_vm7 = vmmov %vm5577_vm1 }
  0xf7   : > { %2973 = vmatmul.mubr.msk.f32.gmra.mrb[4].mxu0 %vm5577_vm1, %v252_v59  ;;  %vm5586_vm9 = vmmov %vm5577_vm1 }
  0xf8   : > { %3004 = vmatprep.mubr.msk.f32.mxu0 %vm5574_vm10, %v3344_v8  ;;  %vm5588_vm11 = vmmov %vm5577_vm1 }
  0xf9   : > { %vm5589_vm0 = vmmov %vm5577_vm1 }
  0xfa   : > { %vm5590_vm2 = vmmov %vm5589_vm0 }
  0xfb   : > { %vm5591_vm12 = vmmov %vm5589_vm0 }
 0x1c2   : > { %v393_v60 = vpop.f32.mrb[0].mxu0  ;;  %v408_v61 = vpop.f32.mrb[0].mxu1 }
 0x1c3   : > { %528 = vrot.lane.b32.xlu0 %v408_v61, %s3349_s8  ;;  %v2977_v62 = vpop.f32.mrb[1].mxu1  ;;  %522 = vrot.lane.b32.xlu1 %v393_v60, %s3349_s8  ;;  %v2968_v63 = vpop.f32.mrb[1].mxu0 }
 0x1c4   : > { %2986 = vmatmul.mubr.msk.f32.vlgmr.msra.gmra.mrb[4].mxu1 %vm5578_vm13, %v393_v60  ;;  %vm5593_vm13 = vmmov %vm5589_vm0 }
 0x1c5   : > { %2988 = vmatprep.mubr.msk.f32.mxu1 %vm5574_vm10, %v3344_v8  ;;  %3068 = vmatpush3.bf16.msk.msra.mxu1 %vm3614_vm8, %v3348_v58 }
 0x1c6   : > { %v398_v0 = vpop.f32.mrb[2].mxu0  ;;  %v413_v1 = vpop.f32.mrb[2].mxu1 }
 0x1c7   : > { %632 = vrot.lane.b32.xlu0 %v393_v60, %s3350_s26  ;;  %638 = vrot.lane.b32.xlu1 %v408_v61, %s3350_s26  ;;  %v2971_v2 = vpop.f32.mrb[3].mxu0  ;;  %v2980_v3 = vpop.f32.mrb[3].mxu1 }
 0x1c8   : > { %2989 = vmatmul.mubr.msk.f32.gmra.mrb[6].mxu1 %vm5579_vm14, %v398_v0  ;;  %vm5594_vm14 = vmmov %vm5589_vm0 }
 0x1c9   : > { %2991 = vmatprep.mubr.msk.f32.mxu1 %vm5574_vm10, %v3344_v8 }
 0x1ca   : > { %v403_v4 = vpop.f32.mrb[4].mxu0 }
 0x1cb   : > { %748 = vrot.lane.b32.xlu0 %v408_v61, %s3351_s28  ;;  %742 = vrot.lane.b32.xlu1 %v393_v60, %s3351_s28  ;;  %v2974_v5 = vpop.f32.mrb[5].mxu0 }
 0x1cc   : > { %2992 = vmatmul.mubr.msk.f32.gmra.mrb[8].mxu1 %vm5580_vm15, %v403_v4  ;;  %vm5595_vm15 = vmmov %vm5589_vm0 }
 0x1cd   : > { %2994 = vmatprep.mubr.msk.f32.mxu1 %vm5574_vm10, %v3344_v8 }
 0x1cf   : > { %530 = vrot.lane.b32.xlu1 %v413_v1, %s3349_s8  ;;  %524 = vrot.lane.b32.xlu0 %v398_v0, %s3349_s8 }
 0x1d0   : > { %2995 = vmatmul.mubr.msk.f32.gmra.mrb[10].mxu1 %vm5581_vm4, %v408_v61  ;;  %vm5596_vm4 = vmmov %vm5589_vm0 }
 0x1d1   : > { %2997 = vmatprep.mubr.msk.f32.mxu1 %vm5574_vm10, %v3344_v8 }
 0x1d3   : > { %634 = vrot.lane.b32.xlu1 %v398_v0, %s3350_s26  ;;  %640 = vrot.lane.b32.xlu0 %v413_v1, %s3350_s26 }
 0x1d4   : > { %2998 = vmatmul.mubr.msk.f32.gmra.mrb[12].mxu1 %vm5582_vm5, %v413_v1  ;;  %vm5597_vm5 = vmmov %vm5589_vm0 }
 0x1d5   : > { %3023 = vmatprep.mubr.msk.f32.mxu1 %vm5574_vm10, %v3344_v8 }
 0x1d7   : > { %750 = vrot.lane.b32.xlu1 %v413_v1, %s3351_s28  ;;  %744 = vrot.lane.b32.xlu0 %v398_v0, %s3351_s28 }
 0x1db   : > { %636 = vrot.lane.b32.xlu0 %v403_v4, %s3350_s26  ;;  %526 = vrot.lane.b32.xlu1 %v403_v4, %s3349_s8 }
 0x1df   : > { %746 = vrot.lane.b32.xlu1 %v403_v4, %s3351_s28  ;;  %s2708_s28 = scalar_lea.sflag [#allocation4], %s3563_s30 }
 0x235   : > { %v529_v6 = vpop.permute.xlu0 %528  ;;  %v523_v7 = vpop.permute.xlu1 %522 }
 0x236   : > { %3005 = vmatmul.mubr.msk.f32.vlgmr.msra.gmra.mrb[6].mxu0 %vm5583_vm3, %v523_v7  ;;  %vm909_vm3 = vcmask 785408  }
 0x237   : > { %3007 = vmatprep.mubr.msk.f32.mxu0 %vm5574_vm10, %v3344_v8  ;;  %3071 = vmatpush3.bf16.msk.msra.mxu0 %vm3614_vm8, %v3348_v58  ;;  %vm5587_vm8 = vmmov %vm5577_vm1 }
 0x238   : > { %vm5592_vm1 = vmmov %vm5589_vm0 }
 0x239   : > { %v633_v9 = vpop.permute.xlu0 %632  ;;  %v639_v10 = vpop.permute.xlu1 %638 }
 0x23a   : > { %3024 = vmatmul.mubr.msk.f32.vlgmr.msra.gmra.mrb[14].mxu1 %vm5584_vm6, %v633_v9  ;;  %vm5598_vm6 = vcmask 261120  }
 0x23b   : > { %3026 = vmatprep.mubr.msk.f32.mxu1 %vm5574_vm10, %v3344_v8 }
 0x23d   : > { %v749_v11 = vpop.permute.xlu0 %748  ;;  %v743_v12 = vpop.permute.xlu1 %742 }
 0x241   : > { %v531_v13 = vpop.permute.xlu1 %530  ;;  %v525_v14 = vpop.permute.xlu0 %524 }
 0x242   : > { %3008 = vmatmul.mubr.msk.f32.gmra.mrb[8].mxu0 %vm5585_vm7, %v525_v14  ;;  %vm5599_vm7 = vmmov %vm5598_vm6 }
 0x243   : > { %3010 = vmatprep.mubr.msk.f32.mxu0 %vm5574_vm10, %v3344_v8 }
 0x245   : > { %v635_v15 = vpop.permute.xlu1 %634  ;;  %v641_v16 = vpop.permute.xlu0 %640 }
 0x246   : > { %3027 = vmatmul.mubr.msk.f32.gmra.mrb[16].mxu1 %vm5586_vm9, %v635_v15  ;;  %vm1228_vm9 = vcmask 1045504  }
 0x247   : > { %3029 = vmatprep.mubr.msk.f32.mxu1 %vm5574_vm10, %v3344_v8 }
 0x249   : > { %v751_v17 = vpop.permute.xlu1 %750  ;;  %v745_v18 = vpop.permute.xlu0 %744 }
 0x24d   : > { %v637_v19 = vpop.permute.xlu0 %636  ;;  %v527_v20 = vpop.permute.xlu1 %526 }
 0x24e   : > { %3011 = vmatmul.mubr.msk.f32.gmra.mrb[10].mxu0 %vm5587_vm8, %v527_v20  ;;  %3030 = vmatmul.mubr.msk.f32.gmra.mrb[18].mxu1 %vm5588_vm11, %v637_v19  ;;  %vm1101_vm8 = vcmask 1046528   ;;  %vm5603_vm11 = vmmov %vm5598_vm6 }
 0x24f   : > { %3013 = vmatprep.mubr.msk.f32.mxu0 %vm5574_vm10, %v3344_v8  ;;  %3032 = vmatprep.mubr.msk.f32.mxu1 %vm5574_vm10, %v3344_v8 }
 0x251   : > { %v747_v21 = vpop.permute.xlu1 %746 }
 0x252   : > { %3014 = vmatmul.mubr.msk.f32.gmra.mrb[12].mxu0 %vm5589_vm0, %v529_v6  ;;  %3033 = vmatmul.mubr.msk.f32.gmra.mrb[20].mxu1 %vm5590_vm2, %v639_v10  ;;  %vm5604_vm0 = vmmov %vm5598_vm6 }
 0x253   : > { %3016 = vmatprep.mubr.msk.f32.mxu0 %vm5574_vm10, %v3344_v8  ;;  %3035 = vmatprep.mubr.msk.f32.mxu1 %vm5574_vm10, %v3344_v8  ;;  %vm5605_vm2 = vmmov %vm5604_vm0 }
 0x256   : > { %3017 = vmatmul.mubr.msk.f32.gmra.mrb[14].mxu0 %vm5591_vm12, %v531_v13  ;;  %3036 = vmatmul.mubr.msk.f32.gmra.mrb[22].mxu1 %vm5592_vm1, %v641_v16  ;;  %vm5606_vm12 = vmmov %vm5604_vm0 }
 0x257   : > { %3042 = vmatprep.mubr.msk.f32.mxu0 %vm5574_vm10, %v3344_v8  ;;  %vm5609_vm1 = vmmov %vm5604_vm0 }
 0x25a   : > { %3043 = vmatmul.mubr.msk.f32.vlgmr.msra.gmra.mrb[16].mxu0 %vm5593_vm13, %v743_v12  ;;  %vm5611_vm13 = vmmov %vm5604_vm0 }
 0x25b   : > { %3045 = vmatprep.mubr.msk.f32.mxu0 %vm5574_vm10, %v3344_v8 }
 0x25e   : > { %3046 = vmatmul.mubr.msk.f32.gmra.mrb[18].mxu0 %vm5594_vm14, %v745_v18  ;;  %vm5612_vm14 = vmmov %vm5604_vm0 }
 0x25f   : > { %3048 = vmatprep.mubr.msk.f32.mxu0 %vm5574_vm10, %v3344_v8 }
 0x262   : > { %3049 = vmatmul.mubr.msk.f32.gmra.mrb[20].mxu0 %vm5595_vm15, %v747_v21  ;;  %v3926_v21 = vld [vmem:[#allocation5] ss:$0 sm:$0xff]  ;;  %vm5613_vm15 = vmmov %vm5604_vm0 }
 0x263   : > { %3051 = vmatprep.mubr.msk.f32.mxu0 %vm5574_vm10, %v3344_v8 }
 0x266   : > { %3052 = vmatmul.mubr.msk.f32.gmra.mrb[22].mxu0 %vm5596_vm4, %v749_v11  ;;  %vm5614_vm4 = vmmov %vm5604_vm0 }
 0x267   : > { %3054 = vmatprep.mubr.msk.f32.mxu0 %vm5574_vm10, %v3344_v8  ;;  %vm904_vm10 = vcmask 523264  }
 0x26a   : > { %3055 = vmatmul.mubr.msk.f32.gmra.mrb[24].mxu0 %vm5597_vm5, %v751_v17  ;;  %vm5615_vm5 = vmmov %vm5604_vm0 }
 0x297   : > { %v3712_v22 = vpop.f32.mrb[4].mxu1 }
 0x298   : > { %v2987_v23 = vpop.f32.mrb[5].mxu1  ;;  %864 = vrot.lane.b32.xlu0 %v3712_v22, %s3347_s7 }
 0x29b   : > { %v3716_v24 = vpop.f32.mrb[6].mxu1 }
 0x29c   : > { %876 = vrot.lane.b32.xlu0 %v3712_v22, %s3352_s22  ;;  %866 = vrot.lane.b32.xlu1 %v3716_v24, %s3347_s7  ;;  %v2990_v25 = vpop.f32.mrb[7].mxu1 }
 0x29f   : > { %v3722_v26 = vpop.f32.mrb[8].mxu1 }
 0x2a0   : > { %888 = vrot.lane.b32.xlu0 %v3712_v22, %s3350_s26  ;;  %878 = vrot.lane.b32.xlu1 %v3716_v24, %s3352_s22  ;;  %v2993_v8 = vpop.f32.mrb[9].mxu1 }
 0x2a3   : > { %v3728_v27 = vpop.f32.mrb[10].mxu1 }
 0x2a4   : > { %927 = vrot.lane.b32.xlu0 %v3712_v22, %s3353_s29  ;;  %890 = vrot.lane.b32.xlu1 %v3716_v24, %s3350_s26  ;;  %v2996_v28 = vpop.f32.mrb[11].mxu1 }
 0x2a5   : > { %v3931_v28 = vld [vmem:[#allocation5 + $0x1] ss:$0 sm:$0xff] }
 0x2a7   : > { %v3734_v29 = vpop.f32.mrb[12].mxu1 }
 0x2a8   : > { %939 = vrot.lane.b32.xlu0 %v3712_v22, %s3354_s17  ;;  %929 = vrot.lane.b32.xlu1 %v3716_v24, %s3353_s29  ;;  %v2999_v30 = vpop.f32.mrb[13].mxu1 }
 0x2ac   : > { %951 = vrot.lane.b32.xlu0 %v3712_v22, %s3355_s25  ;;  %941 = vrot.lane.b32.xlu1 %v3716_v24, %s3354_s17 }
 0x2b0   : > { %963 = vrot.lane.b32.xlu0 %v3712_v22, %s3356_s11  ;;  %953 = vrot.lane.b32.xlu1 %v3716_v24, %s3355_s25 }
 0x2b4   : > { %1000 = vrot.lane.b32.xlu0 %v3712_v22, %s3357_s21  ;;  %965 = vrot.lane.b32.xlu1 %v3716_v24, %s3356_s11 }
 0x2b8   : > { %1012 = vrot.lane.b32.xlu0 %v3712_v22, %s3358_s24  ;;  %1002 = vrot.lane.b32.xlu1 %v3716_v24, %s3357_s21 }
 0x2bc   : > { %1024 = vrot.lane.b32.xlu0 %v3712_v22, %s3359_s27  ;;  %1014 = vrot.lane.b32.xlu1 %v3716_v24, %s3358_s24 }
 0x2c0   : > { %1036 = vrot.lane.b32.xlu0 %v3712_v22, %s3360_s4  ;;  %1026 = vrot.lane.b32.xlu1 %v3716_v24, %s3359_s27 }
 0x2c4   : > { %1038 = vrot.lane.b32.xlu1 %v3716_v24, %s3360_s4  ;;  %868 = vrot.lane.b32.xlu0 %v3722_v26, %s3347_s7 }
 0x2c8   : > { %880 = vrot.lane.b32.xlu0 %v3722_v26, %s3352_s22  ;;  %870 = vrot.lane.b32.xlu1 %v3728_v27, %s3347_s7 }
 0x2cc   : > { %892 = vrot.lane.b32.xlu0 %v3722_v26, %s3350_s26  ;;  %882 = vrot.lane.b32.xlu1 %v3728_v27, %s3352_s22 }
 0x2d0   : > { %931 = vrot.lane.b32.xlu0 %v3722_v26, %s3353_s29  ;;  %894 = vrot.lane.b32.xlu1 %v3728_v27, %s3350_s26 }
 0x2d4   : > { %943 = vrot.lane.b32.xlu0 %v3722_v26, %s3354_s17  ;;  %933 = vrot.lane.b32.xlu1 %v3728_v27, %s3353_s29 }
 0x2d8   : > { %955 = vrot.lane.b32.xlu0 %v3722_v26, %s3355_s25  ;;  %945 = vrot.lane.b32.xlu1 %v3728_v27, %s3354_s17 }
 0x2dc   : > { %967 = vrot.lane.b32.xlu0 %v3722_v26, %s3356_s11  ;;  %957 = vrot.lane.b32.xlu1 %v3728_v27, %s3355_s25 }
 0x2e0   : > { %1004 = vrot.lane.b32.xlu0 %v3722_v26, %s3357_s21  ;;  %969 = vrot.lane.b32.xlu1 %v3728_v27, %s3356_s11 }
 0x2e4   : > { %1016 = vrot.lane.b32.xlu0 %v3722_v26, %s3358_s24  ;;  %1006 = vrot.lane.b32.xlu1 %v3728_v27, %s3357_s21 }
 0x2e8   : > { %1028 = vrot.lane.b32.xlu0 %v3722_v26, %s3359_s27  ;;  %1018 = vrot.lane.b32.xlu1 %v3728_v27, %s3358_s24 }
 0x2ec   : > { %1040 = vrot.lane.b32.xlu0 %v3722_v26, %s3360_s4  ;;  %1030 = vrot.lane.b32.xlu1 %v3728_v27, %s3359_s27 }
 0x2f0   : > { %1042 = vrot.lane.b32.xlu1 %v3728_v27, %s3360_s4  ;;  %1074 = vrot.lane.b32.xlu0 %v3734_v29, %s3347_s7 }
 0x2f4   : > { %1077 = vrot.lane.b32.xlu1 %v3734_v29, %s3352_s22  ;;  %1080 = vrot.lane.b32.xlu0 %v3734_v29, %s3350_s26 }
 0x2f8   : > { %1119 = vrot.lane.b32.xlu1 %v3734_v29, %s3353_s29  ;;  %1122 = vrot.lane.b32.xlu0 %v3734_v29, %s3354_s17 }
 0x2fc   : > { %1125 = vrot.lane.b32.xlu1 %v3734_v29, %s3355_s25  ;;  %1128 = vrot.lane.b32.xlu0 %v3734_v29, %s3356_s11 }
 0x300   : > { %1166 = vrot.lane.b32.xlu1 %v3734_v29, %s3357_s21  ;;  %1169 = vrot.lane.b32.xlu0 %v3734_v29, %s3358_s24 }
 0x304   : > { %1172 = vrot.lane.b32.xlu1 %v3734_v29, %s3359_s27  ;;  %1175 = vrot.lane.b32.xlu0 %v3734_v29, %s3360_s4 }
 0x309   : > { %v3832_v31 = vpop.f32.mrb[6].mxu0 }
 0x30a   : > { %v865_v32 = vpop.permute.xlu0 %864  ;;  %1314 = vrot.lane.b32.xlu1 %v3832_v31, %s3347_s7  ;;  %v3006_v33 = vpop.f32.mrb[7].mxu0 }
 0x30b   : > { %v900_v38 = vsel %vm5598_vm6, %v3712_v22, %v865_v32  ;;  %vm5616_vm6 = vmmov %vm5604_vm0 }
 0x30d   : > { %v3836_v34 = vpop.f32.mrb[14].mxu1 }
 0x30e   : > { %v877_v35 = vpop.permute.xlu0 %876  ;;  %v867_v36 = vpop.permute.xlu1 %866  ;;  %1760 = vrot.lane.b32.xlu0 %v3836_v34, %s3347_s7  ;;  %1326 = vrot.lane.b32.xlu1 %v3832_v31, %s3352_s22 }
 0x30f   : > { %v3025_v37 = vpop.f32.mrb[15].mxu1  ;;  %v905_v39 = vsel %vm904_vm10, %v900_v38, %v877_v35  ;;  %v901_v45 = vsel %vm5599_vm7, %v3716_v24, %v867_v36  ;;  %vm5617_vm7 = vmmov %vm5604_vm0 }
 0x312   : > { %v889_v40 = vpop.permute.xlu0 %888  ;;  %v879_v41 = vpop.permute.xlu1 %878  ;;  %1772 = vrot.lane.b32.xlu0 %v3836_v34, %s3352_s22  ;;  %1338 = vrot.lane.b32.xlu1 %v3832_v31, %s3350_s26 }
 0x313   : > { %v3854_v44 = vsel %vm909_vm3, %v905_v39, %v889_v40  ;;  %v906_v49 = vsel %vm904_vm10, %v901_v45, %v879_v41  ;;  %v3948_v39 = vld [vmem:[#allocation7] ss:$0 sm:$0xff]  ;;  %v3950_v41 = vld [vmem:[#allocation5 + $0x4] ss:$0 sm:$0xff] }
 0x314   : > { %v1091_v47 = vmul.f32 %v3849_v42, %v3854_v44  ;;  %v1218_v48 = vmul.f32 %v3851_v43, %v3854_v44  ;;  %v919_v35 = vmul.f32 %v3926_v21, %v3854_v44 }
 0x315   : > { %v3858_v46 = vpop.f32.mrb[8].mxu0 }
 0x316   : > { %v928_v50 = vpop.permute.xlu0 %927  ;;  %v891_v51 = vpop.permute.xlu1 %890  ;;  %1784 = vrot.lane.b32.xlu0 %v3836_v34, %s3350_s26  ;;  %1375 = vrot.lane.b32.xlu1 %v3832_v31, %s3353_s29  ;;  %v1102_v57 = vrot.slane %v1091_v47, 1  ;;  %v1229_v58 = vrot.slane %v1218_v48, 2  ;;  %v3959_v48 = vld [vmem:[#allocation5 + $0x2] ss:$0 sm:$0xff] }
 0x317   : > { %v3870_v52 = vsel %vm909_vm3, %v906_v49, %v891_v51  ;;  %v3009_v53 = vpop.f32.mrb[9].mxu0 }
 0x318   : > { %v3874_v54 = vmul.f32 %v3849_v42, %v3870_v52  ;;  %v3878_v55 = vmul.f32 %v3851_v43, %v3870_v52 }
 0x319   : > { %v3880_v56 = vpop.f32.mrb[16].mxu1 }
 0x31a   : > { %v1103_v59 = vrot.slane %v3874_v54, 1  ;;  %v1230_v60 = vrot.slane %v3878_v55, 2  ;;  %v940_v61 = vpop.permute.xlu0 %939  ;;  %v930_v62 = vpop.permute.xlu1 %929  ;;  %1821 = vrot.lane.b32.xlu0 %v3836_v34, %s3353_s29  ;;  %1387 = vrot.lane.b32.xlu1 %v3832_v31, %s3354_s17 }
 0x31b   : > { %v3028_v63 = vpop.f32.mrb[17].mxu1  ;;  %v975_v22 = vsel %vm5603_vm11, %v928_v50, %v940_v61  ;;  %v923_v50 = vadd.f32 %v3948_v39, %v919_v35  ;;  %v3971_v61 = vld [vmem:[#allocation5 + $0x5] ss:$0 sm:$0xff]  ;;  %vm5618_vm11 = vmmov %vm5604_vm0 }
 0x31c   : > { %v3891_v0 = vsel %vm1228_vm9, %v1229_v58, %v1230_v60  ;;  %v3896_v1 = vsel %vm1101_vm8, %v1102_v57, %v1103_v59 }
 0x31e   : > { %v952_v2 = vpop.permute.xlu0 %951  ;;  %v942_v3 = vpop.permute.xlu1 %941  ;;  %1833 = vrot.lane.b32.xlu0 %v3836_v34, %s3354_s17  ;;  %1399 = vrot.lane.b32.xlu1 %v3832_v31, %s3355_s25 }
 0x31f   : > { %v979_v25 = vsel %vm904_vm10, %v975_v22, %v952_v2  ;;  %v976_v8 = vsel %vm5604_vm0, %v930_v62, %v942_v3 }
 0x321   : > { %v3902_v4 = vpop.f32.mrb[10].mxu0  ;;  %v3904_v5 = vpop.f32.mrb[18].mxu1 }
 0x322   : > { %v964_v6 = vpop.permute.xlu0 %963  ;;  %v954_v7 = vpop.permute.xlu1 %953  ;;  %1845 = vrot.lane.b32.xlu0 %v3836_v34, %s3355_s25  ;;  %1411 = vrot.lane.b32.xlu1 %v3832_v31, %s3356_s11 }
 0x323   : > { %v3012_v9 = vpop.f32.mrb[11].mxu0  ;;  %v3031_v10 = vpop.f32.mrb[19].mxu1  ;;  %v3934_v30 = vsel %vm909_vm3, %v979_v25, %v964_v6  ;;  %v980_v32 = vsel %vm904_vm10, %v976_v8, %v954_v7 }
 0x324   : > { %v992_v45 = vmul.f32 %v3931_v28, %v3934_v30  ;;  %v1139_v58 = vmul.f32 %v3950_v41, %v3934_v30 }
 0x325   : > { %v3910_v11 = vpop.f32.mrb[12].mxu0  ;;  %v3912_v12 = vpop.f32.mrb[20].mxu1 }
 0x326   : > { %5600 = vst [vmem:[#allocation12_spill] sm:$0xff] %v3910_v11  ;;  %5601 = vst [vmem:[#allocation13_spill] sm:$0xff] %v3912_v12  ;;  %v1001_v13 = vpop.permute.xlu0 %1000  ;;  %v966_v14 = vpop.permute.xlu1 %965  ;;  %1857 = vrot.lane.b32.xlu0 %v3836_v34, %s3356_s11  ;;  %1448 = vrot.lane.b32.xlu1 %v3832_v31, %s3357_s21  ;;  %v996_v2 = vadd.f32 %v992_v45, %v923_v50 }
 0x327   : > { %v3034_v15 = vpop.f32.mrb[21].mxu1  ;;  %v3015_v16 = vpop.f32.mrb[13].mxu0  ;;  %v3942_v36 = vsel %vm909_vm3, %v980_v32, %v966_v14 }
 0x328   : > { %v3956_v44 = vmul.f32 %v3950_v41, %v3942_v36  ;;  %v993_v50 = vmul.f32 %v3931_v28, %v3942_v36 }
 0x329   : > { %v3918_v17 = vpop.f32.mrb[14].mxu0  ;;  %v3920_v18 = vpop.f32.mrb[22].mxu1 }
 0x32a   : > { %5602 = vst [vmem:[#allocation14_spill] sm:$0xff] %v3918_v17  ;;  %v1013_v19 = vpop.permute.xlu0 %1012  ;;  %v1003_v20 = vpop.permute.xlu1 %1002  ;;  %1894 = vrot.lane.b32.xlu0 %v3836_v34, %s3357_s21  ;;  %1460 = vrot.lane.b32.xlu1 %v3832_v31, %s3358_s24  ;;  %v1150_v6 = vrot.slane %v3956_v44, 1 }
 0x32b   : > { %v3018_v23 = vpop.f32.mrb[15].mxu0  ;;  %v3037_v24 = vpop.f32.mrb[23].mxu1  ;;  %v1048_v47 = vsel %vm5605_vm2, %v1001_v13, %v1013_v19  ;;  %v1149_v19 = vrot.slane %v1139_v58, 1  ;;  %vm5620_vm2 = vmmov %vm5604_vm0 }
 0x32d   : > { %v3937_v33 = vpop.f32.mrb[16].mxu0  ;;  %v1151_v25 = vsel %vm1101_vm8, %v1149_v19, %v1150_v6 }
 0x32e   : > { %v1025_v37 = vpop.permute.xlu0 %1024  ;;  %v1015_v38 = vpop.permute.xlu1 %1014  ;;  %1906 = vrot.lane.b32.xlu0 %v3836_v34, %s3358_s24  ;;  %1472 = vrot.lane.b32.xlu1 %v3832_v31, %s3359_s27 }
 0x32f   : > { %v3044_v40 = vpop.f32.mrb[17].mxu0  ;;  %v1052_v51 = vsel %vm904_vm10, %v1048_v47, %v1025_v37  ;;  %v1049_v7 = vsel %vm5606_vm12, %v1003_v20, %v1015_v38  ;;  %vm5621_vm12 = vmmov %vm5604_vm0 }
 0x331   : > { %v3961_v49 = vpop.f32.mrb[18].mxu0 }
 0x332   : > { %v1037_v53 = vpop.permute.xlu0 %1036  ;;  %v1027_v57 = vpop.permute.xlu1 %1026  ;;  %1918 = vrot.lane.b32.xlu0 %v3836_v34, %s3359_s27  ;;  %1484 = vrot.lane.b32.xlu1 %v3832_v31, %s3360_s4 }
 0x333   : > { %v3974_v62 = vsel %vm909_vm3, %v1052_v51, %v1037_v53  ;;  %v3047_v63 = vpop.f32.mrb[19].mxu0  ;;  %v1053_v14 = vsel %vm904_vm10, %v1049_v7, %v1027_v57 }
 0x334   : > { %v1065_v3 = vmul.f32 %v3959_v48, %v3974_v62  ;;  %v1186_v13 = vmul.f32 %v3971_v61, %v3974_v62 }
 0x335   : > { %v3980_v9 = vpop.f32.mrb[20].mxu0 }
 0x336   : > { %5607 = vst [vmem:[#allocation15_spill] sm:$0xff] %v3980_v9  ;;  %v1069_v10 = vadd.f32 %v1065_v3, %v996_v2  ;;  %v1039_v15 = vpop.permute.xlu1 %1038  ;;  %v869_v16 = vpop.permute.xlu0 %868  ;;  %1930 = vrot.lane.b32.xlu0 %v3836_v34, %s3360_s4  ;;  %1762 = vrot.lane.b32.xlu1 %v3880_v56, %s3347_s7  ;;  %v1196_v35 = vrot.slane %v1186_v13, 1 }
 0x337   : > { %v3990_v22 = vsel %vm909_vm3, %v1053_v14, %v1039_v15  ;;  %v3050_v20 = vpop.f32.mrb[21].mxu0  ;;  %v902_v53 = vsel %vm5609_vm1, %v3722_v26, %v869_v16  ;;  %vm5622_vm1 = vmmov %vm5604_vm0 }
 0x338   : > { %v1115_v23 = vadd.f32 %v3896_v1, %v1069_v10  ;;  %v3995_v24 = vmul.f32 %v3971_v61, %v3990_v22  ;;  %v920_v1 = vmul.f32 %v3926_v21, %v3870_v52  ;;  %v1066_v3 = vmul.f32 %v3959_v48, %v3990_v22 }
 0x339   : > { %v4000_v8 = vpop.f32.mrb[22].mxu0 }
 0x33a   : > { %5608 = vst [vmem:[#allocation16_spill] sm:$0xff] %v4000_v8  ;;  %v1162_v32 = vadd.f32 %v1151_v25, %v1115_v23  ;;  %v1197_v37 = vrot.slane %v3995_v24, 1  ;;  %v881_v38 = vpop.permute.xlu0 %880  ;;  %v871_v40 = vpop.permute.xlu1 %870  ;;  %1774 = vrot.lane.b32.xlu1 %v3880_v56, %s3352_s22  ;;  %1316 = vrot.lane.b32.xlu0 %v3858_v46, %s3347_s7  ;;  %v924_v52 = vadd.f32 %v3948_v39, %v920_v1 }
 0x33b   : > { %v3053_v45 = vpop.f32.mrb[23].mxu0  ;;  %v907_v58 = vsel %vm904_vm10, %v902_v53, %v881_v38  ;;  %v903_v16 = vsel %vm5611_vm13, %v3728_v27, %v871_v40  ;;  %vm5623_vm13 = vmmov %vm5604_vm0 }
 0x33c   : > { %v1198_v47 = vsel %vm1101_vm8, %v1196_v35, %v1197_v37  ;;  %v997_v15 = vadd.f32 %v993_v50, %v924_v52 }
 0x33d   : > { %v1209_v51 = vadd.f32 %v1198_v47, %v1162_v32  ;;  %v4016_v57 = vpop.f32.mrb[24].mxu0 }
 0x33e   : > { %5610 = vst [vmem:[#allocation17_spill] sm:$0xff] %v4016_v57  ;;  %v893_v63 = vpop.permute.xlu0 %892  ;;  %v883_v2 = vpop.permute.xlu1 %882  ;;  %1786 = vrot.lane.b32.xlu1 %v3880_v56, %s3350_s26  ;;  %1328 = vrot.lane.b32.xlu0 %v3858_v46, %s3352_s22  ;;  %v4508_v57 = vld [vmem:[#allocation5 + $0x10] ss:$0 sm:$0xff] }
 0x33f   : > { %v912_v7 = vsel %vm909_vm3, %v907_v58, %v893_v63  ;;  %v3056_v26 = vpop.f32.mrb[25].mxu0  ;;  %v4028_v10 = vadd.f32 %v3891_v0, %v1209_v51  ;;  %v908_v23 = vsel %vm904_vm10, %v903_v16, %v883_v2  ;;  %v1070_v0 = vadd.f32 %v1066_v3, %v997_v15 }
 0x340   : > { %v1093_v13 = vmul.f32 %v3849_v42, %v912_v7  ;;  %v1220_v14 = vmul.f32 %v3851_v43, %v912_v7 }
 0x342   : > { %v1105_v19 = vrot.slane %v1093_v13, 1  ;;  %v1232_v20 = vrot.slane %v1220_v14, 2  ;;  %v932_v25 = vpop.permute.xlu0 %931  ;;  %v895_v32 = vpop.permute.xlu1 %894  ;;  %1823 = vrot.lane.b32.xlu1 %v3880_v56, %s3353_s29  ;;  %1340 = vrot.lane.b32.xlu0 %v3858_v46, %s3350_s26 }
 0x343   : > { %v913_v35 = vsel %vm909_vm3, %v908_v23, %v895_v32 }
 0x344   : > { %v1106_v38 = vsel %vm1101_vm8, %v1103_v59, %v1105_v19  ;;  %v4046_v27 = vsel %vm1228_vm9, %v1230_v60, %v1232_v20  ;;  %v922_v40 = vmul.f32 %v3926_v21, %v913_v35  ;;  %v4050_v1 = vmul.f32 %v3849_v42, %v913_v35 }
 0x345   : > { %v4052_v45 = vadd.f32 %v1106_v38, %v1070_v0  ;;  %v4055_v47 = vmul.f32 %v3851_v43, %v913_v35  ;;  %v921_v38 = vmul.f32 %v3926_v21, %v912_v7 }
 0x346   : > { %v926_v50 = vadd.f32 %v3948_v39, %v922_v40  ;;  %v1107_v54 = vrot.slane %v4050_v1, 1  ;;  %v944_v59 = vpop.permute.xlu0 %943  ;;  %v934_v51 = vpop.permute.xlu1 %933  ;;  %1835 = vrot.lane.b32.xlu1 %v3880_v56, %s3354_s17  ;;  %1377 = vrot.lane.b32.xlu0 %v3858_v46, %s3353_s29 }
 0x347   : > { %v1234_v55 = vrot.slane %v4055_v47, 2  ;;  %v977_v15 = vsel %vm5613_vm15, %v932_v25, %v944_v59  ;;  %v925_v21 = vadd.f32 %v3948_v39, %v921_v38  ;;  %vm5626_vm15 = vmmov %vm5604_vm0 }
 0x348   : > { %v1108_v60 = vsel %vm1101_vm8, %v1105_v19, %v1107_v54 }
 0x349   : > { %v4070_v53 = vsel %vm1228_vm9, %v1232_v20, %v1234_v55 }
 0x34a   : > { %v956_v58 = vpop.permute.xlu0 %955  ;;  %v946_v63 = vpop.permute.xlu1 %945  ;;  %1847 = vrot.lane.b32.xlu1 %v3880_v56, %s3355_s25  ;;  %1389 = vrot.lane.b32.xlu0 %v3858_v46, %s3354_s17 }
 0x34b   : > { %v978_v3 = vsel %vm5612_vm14, %v934_v51, %v946_v63  ;;  %v981_v19 = vsel %vm904_vm10, %v977_v15, %v956_v58  ;;  %vm5625_vm14 = vmmov %vm5604_vm0 }
 0x34e   : > { %v968_v2 = vpop.permute.xlu0 %967  ;;  %v958_v52 = vpop.permute.xlu1 %957  ;;  %1859 = vrot.lane.b32.xlu1 %v3880_v56, %s3356_s11  ;;  %1401 = vrot.lane.b32.xlu0 %v3858_v46, %s3355_s25 }
 0x34f   : > { %v982_v26 = vsel %vm904_vm10, %v978_v3, %v958_v52  ;;  %v4094_v23 = vsel %vm909_vm3, %v981_v19, %v968_v2 }
 0x350   : > { %v1141_v25 = vmul.f32 %v3950_v41, %v4094_v23 }
 0x352   : > { %v1005_v13 = vpop.permute.xlu0 %1004  ;;  %v970_v14 = vpop.permute.xlu1 %969  ;;  %1896 = vrot.lane.b32.xlu1 %v3880_v56, %s3357_s21  ;;  %1413 = vrot.lane.b32.xlu0 %v3858_v46, %s3356_s11  ;;  %v1152_v51 = vrot.slane %v1141_v25, 1 }
 0x353   : > { %v4088_v16 = vsel %vm909_vm3, %v982_v26, %v970_v14 }
 0x354   : > { %v995_v20 = vmul.f32 %v3931_v28, %v4088_v16  ;;  %v4111_v58 = vmul.f32 %v3950_v41, %v4088_v16  ;;  %v1153_v26 = vsel %vm1101_vm8, %v1150_v6, %v1152_v51 }
 0x355   : > { %v1163_v44 = vadd.f32 %v1153_v26, %v4052_v45 }
 0x356   : > { %v999_v32 = vadd.f32 %v995_v20, %v926_v50  ;;  %v1017_v0 = vpop.permute.xlu0 %1016  ;;  %v1007_v35 = vpop.permute.xlu1 %1006  ;;  %1908 = vrot.lane.b32.xlu1 %v3880_v56, %s3358_s24  ;;  %1450 = vrot.lane.b32.xlu0 %v3858_v46, %s3357_s21  ;;  %v994_v50 = vmul.f32 %v3931_v28, %v4094_v23  ;;  %v1154_v14 = vrot.slane %v4111_v58, 1 }
 0x357   : > { %v1050_v63 = vsel %vm5614_vm4, %v1005_v13, %v1017_v0  ;;  %vm5628_vm4 = vmmov %vm5604_vm0 }
 0x358   : > { %v998_v3 = vadd.f32 %v994_v50, %v925_v21  ;;  %v1155_v58 = vsel %vm1101_vm8, %v1152_v51, %v1154_v14 }
 0x35a   : > { %v1029_v40 = vpop.permute.xlu0 %1028  ;;  %v1019_v59 = vpop.permute.xlu1 %1018  ;;  %1920 = vrot.lane.b32.xlu1 %v3880_v56, %s3359_s27  ;;  %1462 = vrot.lane.b32.xlu0 %v3858_v46, %s3358_s24 }
 0x35b   : > { %v1054_v7 = vsel %vm904_vm10, %v1050_v63, %v1029_v40  ;;  %v1051_v15 = vsel %vm5615_vm5, %v1007_v35, %v1019_v59  ;;  %vm5629_vm5 = vmmov %vm5604_vm0 }
 0x35e   : > { %v1041_v2 = vpop.permute.xlu0 %1040  ;;  %v1031_v52 = vpop.permute.xlu1 %1030  ;;  %1932 = vrot.lane.b32.xlu1 %v3880_v56, %s3360_s4  ;;  %1474 = vrot.lane.b32.xlu0 %v3858_v46, %s3359_s27 }
 0x35f   : > { %v4121_v28 = vsel %vm909_vm3, %v1054_v7, %v1041_v2  ;;  %v1055_v0 = vsel %vm904_vm10, %v1051_v15, %v1031_v52 }
 0x360   : > { %v1067_v39 = vmul.f32 %v3959_v48, %v4121_v28  ;;  %v1188_v13 = vmul.f32 %v3971_v61, %v4121_v28 }
 0x362   : > { %v1071_v19 = vadd.f32 %v1067_v39, %v998_v3  ;;  %v1199_v20 = vrot.slane %v1188_v13, 1  ;;  %v1043_v25 = vpop.permute.xlu1 %1042  ;;  %v1075_v38 = vpop.permute.xlu0 %1074  ;;  %1486 = vrot.lane.b32.xlu0 %v3858_v46, %s3360_s4  ;;  %1318 = vrot.lane.b32.xlu1 %v3902_v4, %s3347_s7 }
 0x363   : > { %v4139_v6 = vsel %vm909_vm3, %v1055_v0, %v1043_v25 }
 0x364   : > { %v1117_v40 = vadd.f32 %v1108_v60, %v1071_v19  ;;  %v1200_v35 = vsel %vm1101_vm8, %v1197_v37, %v1199_v20  ;;  %v1068_v59 = vmul.f32 %v3959_v48, %v4139_v6  ;;  %v4148_v50 = vmul.f32 %v3971_v61, %v4139_v6 }
 0x365   : > { %v1210_v63 = vadd.f32 %v1200_v35, %v1163_v44  ;;  %v1083_v60 = vsel %vm5616_vm6, %v3734_v29, %v1075_v38  ;;  %vm5633_vm6 = vmmov %vm5604_vm0 }
 0x366   : > { %v1164_v21 = vadd.f32 %v1155_v58, %v1117_v40  ;;  %v1072_v45 = vadd.f32 %v1068_v59, %v999_v32  ;;  %v1201_v7 = vrot.slane %v4148_v50, 1  ;;  %v1078_v24 = vpop.permute.xlu1 %1077  ;;  %v1081_v2 = vpop.permute.xlu0 %1080  ;;  %1764 = vrot.lane.b32.xlu0 %v3904_v5, %s3347_s7  ;;  %1330 = vrot.lane.b32.xlu1 %v3902_v4, %s3352_s22 }
 0x367   : > { %v1084_v48 = vsel %vm904_vm10, %v1083_v60, %v1078_v24  ;;  %v4160_v37 = vadd.f32 %v4046_v27, %v1210_v63  ;;  %v4207_v60 = vld [vmem:[#allocation5 + $0x8] ss:$0 sm:$0xff] }
 0x368   : > { %v1202_v32 = vsel %vm1101_vm8, %v1199_v20, %v1201_v7  ;;  %v1085_v51 = vsel %vm909_vm3, %v1084_v48, %v1081_v2 }
 0x369   : > { %v1211_v52 = vadd.f32 %v1202_v32, %v1164_v21  ;;  %v1095_v29 = vmul.f32 %v3849_v42, %v1085_v51  ;;  %v1222_v3 = vmul.f32 %v3851_v43, %v1085_v51  ;;  %v4223_v51 = vmul.f32 %v4207_v60, %v3990_v22 }
 0x36a   : > { %v1120_v26 = vpop.permute.xlu1 %1119  ;;  %v1123_v39 = vpop.permute.xlu0 %1122  ;;  %1776 = vrot.lane.b32.xlu0 %v3904_v5, %s3352_s22  ;;  %1342 = vrot.lane.b32.xlu1 %v3902_v4, %s3350_s26 }
 0x36b   : > { %v1109_v13 = vrot.slane %v1095_v29, 1  ;;  %v1236_v27 = vrot.slane %v1222_v3, 2  ;;  %v4171_v15 = vadd.f32 %v4070_v53, %v1211_v52  ;;  %v1131_v20 = vsel %vm5617_vm7, %v1120_v26, %v1123_v39  ;;  %vm5634_vm7 = vmmov %vm5604_vm0 }
 0x36c   : > { %v4227_v52 = vmul.f32 %v4207_v60, %v4139_v6  ;;  %v1283_v26 = vmul.f32 %v4207_v60, %v3974_v62 }
 0x36d   : > { %v1110_v19 = vsel %vm1101_vm8, %v1107_v54, %v1109_v13  ;;  %v1237_v42 = vsel %vm1228_vm9, %v1234_v55, %v1236_v27 }
 0x36e   : > { %v1118_v43 = vadd.f32 %v1110_v19, %v1072_v45  ;;  %v1126_v0 = vpop.permute.xlu1 %1125  ;;  %v1129_v25 = vpop.permute.xlu0 %1128  ;;  %1788 = vrot.lane.b32.xlu0 %v3904_v5, %s3350_s26  ;;  %1379 = vrot.lane.b32.xlu1 %v3902_v4, %s3353_s29  ;;  %v1294_v19 = vrot.slane %v4223_v51, 2 }
 0x36f   : > { %v1132_v53 = vsel %vm904_vm10, %v1131_v20, %v1126_v0  ;;  %v1293_v0 = vrot.slane %v1283_v26, 2 }
 0x370   : > { %v1133_v1 = vsel %vm909_vm3, %v1132_v53, %v1129_v25 }
 0x371   : > { %v1143_v54 = vmul.f32 %v3950_v41, %v1133_v1  ;;  %v4197_v41 = vld [vmem:[#allocation5 + $0x7] ss:$0 sm:$0xff] }
 0x372   : > { %v1167_v47 = vpop.permute.xlu1 %1166  ;;  %v1170_v38 = vpop.permute.xlu0 %1169  ;;  %1825 = vrot.lane.b32.xlu0 %v3904_v5, %s3353_s29  ;;  %1391 = vrot.lane.b32.xlu1 %v3902_v4, %s3354_s17  ;;  %v4202_v63 = vmul.f32 %v4197_v41, %v3942_v36  ;;  %v1255_v21 = vmul.f32 %v4197_v41, %v1133_v1  ;;  %v1251_v24 = vmul.f32 %v4197_v41, %v3934_v30  ;;  %v4255_v1 = vld [vmem:[#allocation5 + $0x9] ss:$0 sm:$0xff] }
 0x373   : > { %v1156_v55 = vrot.slane %v1143_v54, 1  ;;  %v1178_v35 = vsel %vm5618_vm11, %v1167_v47, %v1170_v38  ;;  %v4217_v36 = vmul.f32 %v4197_v41, %v4088_v16  ;;  %vm5635_vm11 = vmmov %vm5604_vm0 }
 0x374   : > { %v1268_v29 = vrot.slane %v1255_v21, 2  ;;  %v1261_v16 = vrot.slane %v1251_v24, 2 }
 0x375   : > { %v1157_v44 = vsel %vm1101_vm8, %v1154_v14, %v1156_v55  ;;  %v1266_v22 = vrot.slane %v4217_v36, 2 }
 0x376   : > { %v1165_v40 = vadd.f32 %v1157_v44, %v1118_v43  ;;  %v1173_v59 = vpop.permute.xlu1 %1172  ;;  %v1176_v50 = vpop.permute.xlu0 %1175  ;;  %1837 = vrot.lane.b32.xlu0 %v3904_v5, %s3354_s17  ;;  %1403 = vrot.lane.b32.xlu1 %v3902_v4, %s3355_s25  ;;  %v5529_v43 = vrot.slane %v4227_v52, 2 }
 0x377   : > { %v1179_v58 = vsel %vm904_vm10, %v1178_v35, %v1173_v59  ;;  %v1269_v20 = vsel %vm1228_vm9, %v1266_v22, %v1268_v29 }
 0x378   : > { %v1180_v14 = vsel %vm909_vm3, %v1179_v58, %v1176_v50 }
 0x379   : > { %v1190_v45 = vmul.f32 %v3971_v61, %v1180_v14  ;;  %v1287_v48 = vmul.f32 %v4207_v60, %v1180_v14  ;;  %v1262_v61 = vrot.slane %v4202_v63, 2 }
 0x37a   : > { %1849 = vrot.lane.b32.xlu0 %v3904_v5, %s3355_s25  ;;  %1415 = vrot.lane.b32.xlu1 %v3902_v4, %s3356_s11 }
 0x37b   : > { %v1203_v2 = vrot.slane %v1190_v45, 1  ;;  %v1300_v39 = vrot.slane %v1287_v48, 2 }
 0x37c   : > { %v1315_v32 = vpop.permute.xlu1 %1314 }
 0x37d   : > { %v1204_v30 = vsel %vm1101_vm8, %v1201_v7, %v1203_v2  ;;  %v1263_v7 = vsel %vm1228_vm9, %v1261_v16, %v1262_v61  ;;  %v1301_v25 = vsel %vm1228_vm9, %v5529_v43, %v1300_v39  ;;  %v1350_v53 = vsel %vm5604_vm0, %v3832_v31, %v1315_v32  ;;  %v4488_v43 = vld [vmem:[#allocation5 + $0xd] ss:$0 sm:$0xff] }
 0x37e   : > { %v1212_v3 = vadd.f32 %v1204_v30, %v1165_v40  ;;  %1861 = vrot.lane.b32.xlu0 %v3904_v5, %s3356_s11  ;;  %1452 = vrot.lane.b32.xlu1 %v3902_v4, %s3357_s21  ;;  %v1274_v62 = vadd.f32 %v1263_v7, %v4028_v10  ;;  %v1295_v10 = vsel %vm1228_vm9, %v1293_v0, %v1294_v19 }
 0x380   : > { %v1245_v13 = vadd.f32 %v1237_v42, %v1212_v3  ;;  %v1761_v6 = vpop.permute.xlu0 %1760  ;;  %v1327_v27 = vpop.permute.xlu1 %1326  ;;  %v1306_v40 = vadd.f32 %v1295_v10, %v1274_v62  ;;  %v4361_v10 = vld [vmem:[#allocation5 + $0xc] ss:$0 sm:$0xff] }
 0x381   : > { %v1354_v54 = vsel %vm904_vm10, %v1350_v53, %v1327_v27  ;;  %v1796_v62 = vsel %vm5620_vm2, %v3836_v34, %v1761_v6  ;;  %v4344_v34 = vld [vmem:[#allocation5 + $0x18] ss:$0 sm:$0xff]  ;;  %vm5636_vm2 = vmmov %vm5604_vm0 }
 0x382   : > { %1898 = vrot.lane.b32.xlu0 %v3904_v5, %s3357_s21  ;;  %1464 = vrot.lane.b32.xlu1 %v3902_v4, %s3358_s24  ;;  %v1277_v42 = vadd.f32 %v1269_v20, %v1245_v13  ;;  %v4322_v13 = vmul.f32 %v4197_v41, %v4094_v23  ;;  %v4328_v20 = vmul.f32 %v4207_v60, %v4121_v28  ;;  %v4338_v41 = vld [vmem:[#allocation5 + $0x15] ss:$0 sm:$0xff] }
 0x384   : > { %v1773_v47 = vpop.permute.xlu0 %1772  ;;  %v1339_v38 = vpop.permute.xlu1 %1338  ;;  %v4258_v55 = vadd.f32 %v1301_v25, %v1277_v42  ;;  %v5530_v42 = vrot.slane %v4322_v13, 2  ;;  %v5528_v25 = vrot.slane %v4328_v20, 2 }
 0x385   : > { %v4264_v44 = vsel %vm909_vm3, %v1354_v54, %v1339_v38  ;;  %v1800_v23 = vsel %vm904_vm10, %v1796_v62, %v1773_v47  ;;  %v4382_v62 = vld [vmem:[#allocation5 + $0xf] ss:$0 sm:$0xff] }
 0x386   : > { %5619 = vst [vmem:[#allocation18_spill] sm:$0xff] %v4258_v55  ;;  %v1367_v35 = vmul.f32 %v4255_v1, %v4264_v44  ;;  %1910 = vrot.lane.b32.xlu0 %v3904_v5, %s3358_s24  ;;  %1476 = vrot.lane.b32.xlu1 %v3902_v4, %s3359_s27  ;;  %v1265_v53 = vsel %vm1228_vm9, %v1262_v61, %v5530_v42  ;;  %v4519_v55 = vld [vmem:[#allocation5 + $0x12] ss:$0 sm:$0xff] }
 0x387   : > { %v1539_v51 = vmul.f32 %v4361_v10, %v4264_v44 }
 0x388   : > { %v4272_v31 = vadd.f32 %v1367_v35, %v1306_v40  ;;  %v1785_v59 = vpop.permute.xlu0 %1784  ;;  %v1376_v50 = vpop.permute.xlu1 %1375  ;;  %v4365_v35 = vld [vmem:[#allocation5 + $0xa] ss:$0 sm:$0xff] }
 0x389   : > { %v4341_v0 = vsel %vm909_vm3, %v1800_v23, %v1785_v59 }
 0x38a   : > { %1922 = vrot.lane.b32.xlu0 %v3904_v5, %s3359_s27  ;;  %1488 = vrot.lane.b32.xlu1 %v3902_v4, %s3360_s4  ;;  %v1985_v54 = vmul.f32 %v4338_v41, %v4341_v0  ;;  %v2111_v40 = vmul.f32 %v4344_v34, %v4341_v0 }
 0x38c   : > { %v4278_v58 = vpop.permute.xlu0 %1821  ;;  %v1388_v14 = vpop.permute.xlu1 %1387 }
 0x38d   : > { %v1423_v6 = vsel %vm5621_vm12, %v1376_v50, %v1388_v14  ;;  %vm5641_vm12 = vmmov %vm5604_vm0 }
 0x38e   : > { %1934 = vrot.lane.b32.xlu0 %v3904_v5, %s3360_s4  ;;  %1766 = vrot.lane.b32.xlu1 %v3912_v12, %s3347_s7 }
 0x390   : > { %v4284_v21 = vpop.permute.xlu0 %1833  ;;  %v1400_v45 = vpop.permute.xlu1 %1399 }
 0x391   : > { %v1427_v47 = vsel %vm904_vm10, %v1423_v6, %v1400_v45 }
 0x392   : > { %1778 = vrot.lane.b32.xlu1 %v3912_v12, %s3352_s22  ;;  %1320 = vrot.lane.b32.xlu0 %v3910_v11, %s3347_s7 }
 0x394   : > { %v4290_v24 = vpop.permute.xlu0 %1845  ;;  %v1412_v2 = vpop.permute.xlu1 %1411 }
 0x395   : > { %v4368_v59 = vsel %vm909_vm3, %v1427_v47, %v1412_v2  ;;  %v1297_v2 = vsel %vm1228_vm9, %v1294_v19, %v5528_v25  ;;  %v1995_v19 = vrot.slane %v1985_v54, 1 }
 0x396   : > { %1790 = vrot.lane.b32.xlu1 %v3912_v12, %s3350_s26  ;;  %1332 = vrot.lane.b32.xlu0 %v3910_v11, %s3352_s22 }
 0x398   : > { %v4296_v48 = vpop.permute.xlu0 %1857  ;;  %v1449_v32 = vpop.permute.xlu1 %1448 }
 0x39a   : > { %1827 = vrot.lane.b32.xlu1 %v3912_v12, %s3353_s29  ;;  %1344 = vrot.lane.b32.xlu0 %v3910_v11, %s3350_s26 }
 0x39c   : > { %v4302_v29 = vpop.permute.xlu0 %1894  ;;  %v1461_v30 = vpop.permute.xlu1 %1460 }
 0x39d   : > { %v1496_v63 = vsel %vm5623_vm13, %v1449_v32, %v1461_v30  ;;  %v4384_v32 = vld [vmem:[#allocation5 + $0xb] ss:$0 sm:$0xff]  ;;  %vm5644_vm13 = vmmov %vm5604_vm0 }
 0x39e   : > { %1839 = vrot.lane.b32.xlu1 %v3912_v12, %s3354_s17  ;;  %1381 = vrot.lane.b32.xlu0 %v3910_v11, %s3353_s29 }
 0x3a0   : > { %v4308_v3 = vpop.permute.xlu0 %1906  ;;  %v1473_v16 = vpop.permute.xlu1 %1472 }
 0x3a1   : > { %v1500_v45 = vsel %vm904_vm10, %v1496_v63, %v1473_v16 }
 0x3a2   : > { %1851 = vrot.lane.b32.xlu1 %v3912_v12, %s3355_s25  ;;  %1393 = vrot.lane.b32.xlu0 %v3910_v11, %s3354_s17 }
 0x3a4   : > { %v4314_v26 = vpop.permute.xlu0 %1918  ;;  %v1485_v39 = vpop.permute.xlu1 %1484 }
 0x3a5   : > { %v4387_v30 = vsel %vm909_vm3, %v1500_v45, %v1485_v39  ;;  %v1440_v39 = vmul.f32 %v4365_v35, %v4368_v59 }
 0x3a6   : > { %1863 = vrot.lane.b32.xlu1 %v3912_v12, %s3356_s11  ;;  %1405 = vrot.lane.b32.xlu0 %v3910_v11, %s3355_s25  ;;  %v1513_v54 = vmul.f32 %v4384_v32, %v4387_v30 }
 0x3a8   : > { %v4324_v27 = vpop.permute.xlu0 %1930  ;;  %v1763_v7 = vpop.permute.xlu1 %1762 }
 0x3a9   : > { %v1797_v38 = vsel %vm5622_vm1, %v3880_v56, %v1763_v7  ;;  %v1275_v7 = vadd.f32 %v1265_v53, %v4160_v37  ;;  %vm5642_vm1 = vmmov %vm5604_vm0 }
 0x3aa   : > { %1900 = vrot.lane.b32.xlu1 %v3912_v12, %s3357_s21  ;;  %1417 = vrot.lane.b32.xlu0 %v3910_v11, %s3356_s11 }
 0x3ac   : > { %v1775_v28 = vpop.permute.xlu1 %1774  ;;  %v1317_v60 = vpop.permute.xlu0 %1316 }
 0x3ad   : > { %v1801_v61 = vsel %vm904_vm10, %v1797_v38, %v1775_v28  ;;  %v1351_v23 = vsel %vm5625_vm14, %v3858_v46, %v1317_v60  ;;  %v2121_v28 = vrot.slane %v2111_v40, 2  ;;  %vm5646_vm14 = vmmov %vm5604_vm0 }
 0x3ae   : > { %1912 = vrot.lane.b32.xlu1 %v3912_v12, %s3358_s24  ;;  %1454 = vrot.lane.b32.xlu0 %v3910_v11, %s3357_s21 }
 0x3b0   : > { %v1787_v50 = vpop.permute.xlu1 %1786  ;;  %v1329_v14 = vpop.permute.xlu0 %1328 }
 0x3b1   : > { %v4374_v56 = vsel %vm909_vm3, %v1801_v61, %v1787_v50  ;;  %v1355_v47 = vsel %vm904_vm10, %v1351_v23, %v1329_v14  ;;  %v1665_v61 = vmul.f32 %v4382_v62, %v4264_v44  ;;  %v1307_v50 = vadd.f32 %v1297_v2, %v1275_v7 }
 0x3b2   : > { %5624 = vst [vmem:[#allocation19_spill] sm:$0xff] %v4374_v56  ;;  %v4391_v16 = vmul.f32 %v4338_v41, %v4374_v56  ;;  %v4395_v37 = vmul.f32 %v4344_v34, %v4374_v56  ;;  %1924 = vrot.lane.b32.xlu1 %v3912_v12, %s3359_s27  ;;  %1466 = vrot.lane.b32.xlu0 %v3910_v11, %s3358_s24  ;;  %v1549_v2 = vrot.slane %v1539_v51, 1 }
 0x3b3   : > { %v1444_v14 = vadd.f32 %v1440_v39, %v4272_v31  ;;  %v1869_v56 = vsel %vm5629_vm5, %v4278_v58, %v4284_v21  ;;  %vm5661_vm5 = vmmov %vm5604_vm0 }
 0x3b4   : > { %v5525_v6 = vrot.slane %v4391_v16, 1  ;;  %v5524_v53 = vrot.slane %v4395_v37, 2  ;;  %v4410_v38 = vpop.permute.xlu1 %1823  ;;  %v1341_v63 = vpop.permute.xlu0 %1340 }
 0x3b5   : > { %v1359_v45 = vsel %vm909_vm3, %v1355_v47, %v1341_v63  ;;  %v1675_v63 = vrot.slane %v1665_v61, 2 }
 0x3b6   : > { %v4420_v46 = vsel %vm1101_vm8, %v1995_v19, %v5525_v6  ;;  %v4425_v60 = vsel %vm1228_vm9, %v2121_v28, %v5524_v53  ;;  %v1368_v40 = vmul.f32 %v4255_v1, %v1359_v45  ;;  %v4429_v44 = vmul.f32 %v4361_v10, %v1359_v45  ;;  %1936 = vrot.lane.b32.xlu1 %v3912_v12, %s3360_s4 }
 0x3b7   : > { %v4435_v7 = vmul.f32 %v4382_v62, %v1359_v45  ;;  %1478 = vrot.lane.b32.xlu0 %v3910_v11, %s3359_s27  ;;  %v1517_v53 = vadd.f32 %v1513_v54, %v1444_v14 }
 0x3b8   : > { %v4439_v19 = vadd.f32 %v1368_v40, %v1307_v50  ;;  %v5527_v23 = vrot.slane %v4429_v44, 1  ;;  %v4442_v28 = vpop.permute.xlu1 %1835  ;;  %v1378_v47 = vpop.permute.xlu0 %1377 }
 0x3b9   : > { %v5526_v6 = vrot.slane %v4435_v7, 2 }
 0x3ba   : > { %v1551_v31 = vsel %vm1101_vm8, %v1549_v2, %v5527_v23  ;;  %1522 = vrot.lane.b32.xlu1 %v3918_v17, %s3347_s7 }
 0x3bb   : > { %v4450_v39 = vadd.f32 %v1551_v31, %v1517_v53  ;;  %v4455_v51 = vsel %vm1228_vm9, %v1675_v63, %v5526_v6  ;;  %1490 = vrot.lane.b32.xlu0 %v3910_v11, %s3360_s4 }
 0x3bc   : > { %v4459_v61 = vpop.permute.xlu1 %1847  ;;  %v1390_v54 = vpop.permute.xlu0 %1389 }
 0x3bd   : > { %v1424_v63 = vsel %vm5626_vm15, %v1378_v47, %v1390_v54  ;;  %v1586_v47 = vmul.f32 %v4488_v43, %v4368_v59  ;;  %vm5648_vm15 = vmmov %vm5604_vm0 }
 0x3be   : > { %1528 = vrot.lane.b32.xlu1 %v3918_v17, %s3350_s26 }
 0x3bf   : > { %1525 = vrot.lane.b32.xlu0 %v3918_v17, %s3352_s22 }
 0x3c0   : > { %v4465_v50 = vpop.permute.xlu1 %1859  ;;  %v1402_v53 = vpop.permute.xlu0 %1401 }
 0x3c1   : > { %v1428_v31 = vsel %vm904_vm10, %v1424_v63, %v1402_v53  ;;  %v5627_v63 = vrot.slane %v4322_v13, 2  ;;  %v1596_v13 = vrot.slane %v1586_v47, 1  ;;  %v5631_v47 = vrot.slane %v4328_v20, 2 }
 0x3c2   : > { %1569 = vrot.lane.b32.xlu1 %v3918_v17, %s3354_s17 }
 0x3c3   : > { %1566 = vrot.lane.b32.xlu0 %v3918_v17, %s3353_s29 }
 0x3c4   : > { %v4471_v45 = vpop.permute.xlu1 %1896  ;;  %v1414_v40 = vpop.permute.xlu0 %1413 }
 0x3c5   : > { %v1432_v6 = vsel %vm909_vm3, %v1428_v31, %v1414_v40  ;;  %v4501_v40 = vld [vmem:[#allocation5 + $0xe] ss:$0 sm:$0xff]  ;;  %v1267_v31 = vsel %vm1228_vm9, %v5627_v63, %v1266_v22 }
 0x3c6   : > { %1575 = vrot.lane.b32.xlu1 %v3918_v17, %s3356_s11  ;;  %v4491_v42 = vmul.f32 %v4488_v43, %v1432_v6  ;;  %v1276_v36 = vadd.f32 %v1267_v31, %v4171_v15  ;;  %v1633_v22 = vmul.f32 %v4501_v40, %v4387_v30  ;;  %v5630_v15 = vrot.slane %v4227_v52, 2 }
 0x3c7   : > { %1572 = vrot.lane.b32.xlu0 %v3918_v17, %s3355_s25  ;;  %v4541_v58 = vmul.f32 %v4508_v57, %v1432_v6  ;;  %v1873_v52 = vsel %vm904_vm10, %v1869_v56, %v4290_v24 }
 0x3c8   : > { %v4477_v14 = vpop.permute.xlu1 %1908  ;;  %v1451_v2 = vpop.permute.xlu0 %1450  ;;  %v1299_v31 = vsel %vm1228_vm9, %v5631_v47, %v5630_v15  ;;  %v4566_v24 = vsel %vm909_vm3, %v1873_v52, %v4296_v48 }
 0x3ca   : > { %1616 = vrot.lane.b32.xlu1 %v3918_v17, %s3358_s24 }
 0x3cb   : > { %1613 = vrot.lane.b32.xlu0 %v3918_v17, %s3357_s21 }
 0x3cc   : > { %v4486_v23 = vpop.permute.xlu1 %1920  ;;  %v1463_v25 = vpop.permute.xlu0 %1462 }
 0x3cd   : > { %v1497_v9 = vsel %vm5628_vm4, %v1451_v2, %v1463_v25  ;;  %v1697_v25 = vmul.f32 %v4508_v57, %v4368_v59  ;;  %v1308_v59 = vadd.f32 %v1299_v31, %v1276_v36  ;;  %vm5652_vm4 = vmmov %vm5604_vm0 }
 0x3ce   : > { %1622 = vrot.lane.b32.xlu1 %v3918_v17, %s3360_s4 }
 0x3cf   : > { %1619 = vrot.lane.b32.xlu0 %v3918_v17, %s3359_s27  ;;  %v4513_v17 = vld [vmem:[#allocation5 + $0x11] ss:$0 sm:$0xff] }
 0x3d0   : > { %v4499_v54 = vpop.permute.xlu1 %1932  ;;  %v1475_v53 = vpop.permute.xlu0 %1474 }
 0x3d1   : > { %v1501_v63 = vsel %vm904_vm10, %v1497_v9, %v1475_v53  ;;  %v1729_v9 = vmul.f32 %v4513_v17, %v4387_v30  ;;  %v5632_v53 = vrot.slane %v4491_v42, 1  ;;  %v1942_v30 = vsel %vm5633_vm6, %v4302_v29, %v4308_v3  ;;  %vm5662_vm6 = vmmov %vm5604_vm0 }
 0x3d2   : > { %1971 = vrot.lane.b32.xlu1 %v3920_v18, %s3352_s22  ;;  %v1946_v56 = vsel %vm904_vm10, %v1942_v30, %v4314_v26  ;;  %v1870_v29 = vsel %vm5634_vm7, %v4410_v38, %v4442_v28  ;;  %v5546_v3 = vrot.slane %v4541_v58, 2  ;;  %vm5664_vm7 = vmmov %vm5604_vm0 }
 0x3d3   : > { %1968 = vrot.lane.b32.xlu0 %v3920_v18, %s3347_s7  ;;  %v1598_v12 = vsel %vm1101_vm8, %v1596_v13, %v5632_v53  ;;  %v1643_v13 = vrot.slane %v1633_v22, 1  ;;  %v1707_v53 = vrot.slane %v1697_v25, 2  ;;  %v1739_v31 = vrot.slane %v1729_v9, 2 }
 0x3d4   : > { %v1487_v8 = vpop.permute.xlu0 %1486  ;;  %v1319_v11 = vpop.permute.xlu1 %1318  ;;  %v1609_v36 = vadd.f32 %v1598_v12, %v4450_v39  ;;  %v1874_v48 = vsel %vm904_vm10, %v1870_v29, %v4459_v61  ;;  %v4589_v38 = vsel %vm909_vm3, %v1946_v56, %v4324_v27 }
 0x3d5   : > { %v1505_v2 = vsel %vm909_vm3, %v1501_v63, %v1487_v8  ;;  %v4550_v8 = vmul.f32 %v4519_v55, %v4341_v0  ;;  %v1441_v63 = vmul.f32 %v4365_v35, %v1432_v6  ;;  %v1352_v39 = vsel %vm5635_vm11, %v3902_v4, %v1319_v11  ;;  %vm5667_vm11 = vmmov %vm5604_vm0 }
 0x3d6   : > { %v4544_v21 = vmul.f32 %v4501_v40, %v1505_v2  ;;  %2012 = vrot.lane.b32.xlu1 %v3920_v18, %s3353_s29  ;;  %v4555_v20 = vmul.f32 %v4513_v17, %v1505_v2  ;;  %v4593_v28 = vsel %vm909_vm3, %v1874_v48, %v4465_v50  ;;  %v1943_v4 = vsel %vm5604_vm0, %v4471_v45, %v4477_v14 }
 0x3d7   : > { %1974 = vrot.lane.b32.xlu0 %v3920_v18, %s3350_s26  ;;  %v1445_v22 = vadd.f32 %v1441_v63, %v4439_v19  ;;  %v1514_v11 = vmul.f32 %v4384_v32, %v1505_v2  ;;  %v1709_v50 = vsel %vm1228_vm9, %v1707_v53, %v5546_v3  ;;  %v4624_v63 = vld [vmem:[#allocation5 + $0x13] ss:$0 sm:$0xff] }
 0x3d8   : > { %v1644_v0 = vrot.slane %v4544_v21, 1  ;;  %v1765_v15 = vpop.permute.xlu0 %1764  ;;  %v1331_v47 = vpop.permute.xlu1 %1330  ;;  %v5545_v12 = vrot.slane %v4555_v20, 2 }
 0x3d9   : > { %v1356_v61 = vsel %vm904_vm10, %v1352_v39, %v1331_v47  ;;  %v1798_v2 = vsel %vm5636_vm2, %v3904_v5, %v1765_v15  ;;  %v1518_v15 = vadd.f32 %v1514_v11, %v1445_v22  ;;  %v5637_v39 = vrot.slane %v4429_v44, 1  ;;  %v4666_v44 = vld [vmem:[#allocation5 + $0x17] ss:$0 sm:$0xff]  ;;  %vm5669_vm2 = vmmov %vm5604_vm0 }
 0x3da   : > { %v1645_v6 = vsel %vm1101_vm8, %v1643_v13, %v1644_v0  ;;  %2018 = vrot.lane.b32.xlu1 %v3920_v18, %s3355_s25  ;;  %v1741_v14 = vsel %vm1228_vm9, %v1739_v31, %v5545_v12 }
 0x3db   : > { %v1656_v26 = vadd.f32 %v1645_v6, %v1609_v36  ;;  %2015 = vrot.lane.b32.xlu0 %v3920_v18, %s3354_s17  ;;  %v4631_v6 = vld [vmem:[#allocation5 + $0x16] ss:$0 sm:$0xff] }
 0x3dc   : > { %v1777_v25 = vpop.permute.xlu0 %1776  ;;  %v1343_v9 = vpop.permute.xlu1 %1342 }
 0x3dd   : > { %v1688_v52 = vadd.f32 %v4455_v51, %v1656_v26  ;;  %v1360_v27 = vsel %vm909_vm3, %v1356_v61, %v1343_v9  ;;  %v1947_v51 = vsel %vm904_vm10, %v1943_v4, %v4486_v23  ;;  %v1802_v47 = vsel %vm904_vm10, %v1798_v2, %v1777_v25  ;;  %v4640_v26 = vld [vmem:[#allocation5 + $0x14] ss:$0 sm:$0xff] }
 0x3de   : > { %v1369_v19 = vmul.f32 %v4255_v1, %v1360_v27  ;;  %v4608_v30 = vmul.f32 %v4361_v10, %v1360_v27  ;;  %v4611_v13 = vmul.f32 %v4382_v62, %v1360_v27  ;;  %2059 = vrot.lane.b32.xlu1 %v3920_v18, %s3357_s21  ;;  %v4635_v5 = vsel %vm909_vm3, %v1947_v51, %v4499_v54 }
 0x3df   : > { %v1720_v45 = vadd.f32 %v1709_v50, %v1688_v52  ;;  %2021 = vrot.lane.b32.xlu0 %v3920_v18, %s3356_s11  ;;  %v5638_v54 = vrot.slane %v4435_v7, 2  ;;  %v1886_v9 = vmul.f32 %v4624_v63, %v4566_v24  ;;  %v2032_v52 = vmul.f32 %v4631_v6, %v4566_v24 }
 0x3e0   : > { %v4627_v53 = vadd.f32 %v1369_v19, %v1308_v59  ;;  %v5539_v56 = vrot.slane %v4608_v30, 1  ;;  %v5538_v23 = vrot.slane %v4611_v13, 2  ;;  %v1789_v36 = vpop.permute.xlu0 %1788  ;;  %v1380_v29 = vpop.permute.xlu1 %1379  ;;  %v4644_v59 = vmul.f32 %v4631_v6, %v4593_v28 }
 0x3e1   : > { %v1752_v31 = vadd.f32 %v1741_v14, %v1720_v45  ;;  %v4638_v48 = vsel %vm909_vm3, %v1802_v47, %v1789_v36  ;;  %v4681_v27 = vmul.f32 %v4666_v44, %v4635_v5  ;;  %v1959_v51 = vmul.f32 %v4640_v26, %v4589_v38 }
 0x3e2   : > { %v1553_v61 = vsel %vm1101_vm8, %v5637_v39, %v5539_v56  ;;  %v4656_v22 = vsel %vm1228_vm9, %v5638_v54, %v5538_v23  ;;  %v4660_v25 = vmul.f32 %v4338_v41, %v4638_v48  ;;  %2065 = vrot.lane.b32.xlu1 %v3920_v18, %s3359_s27  ;;  %v4673_v7 = vmul.f32 %v4344_v34, %v4638_v48 }
 0x3e3   : > { %v1817_v4 = vadd.f32 %v4550_v8, %v1752_v31  ;;  %v4669_v11 = vadd.f32 %v1553_v61, %v1518_v15  ;;  %2062 = vrot.lane.b32.xlu0 %v3920_v18, %s3358_s24  ;;  %v2079_v2 = vmul.f32 %v4666_v44, %v4589_v38  ;;  %v5541_v47 = vrot.slane %v4644_v59, 1 }
 0x3e4   : > { %v5544_v50 = vrot.slane %v4660_v25, 1  ;;  %v4684_v19 = vpop.permute.xlu0 %1825  ;;  %v1392_v8 = vpop.permute.xlu1 %1391  ;;  %v5542_v14 = vrot.slane %v4673_v7, 2  ;;  %v5639_v36 = vrot.slane %v4391_v16, 1  ;;  %v5640_v39 = vrot.slane %v4395_v37, 2 }
 0x3e5   : > { %v1890_v45 = vadd.f32 %v1886_v9, %v1817_v4  ;;  %v2042_v54 = vrot.slane %v2032_v52, 1  ;;  %v5540_v16 = vrot.slane %v4681_v27, 1  ;;  %v2089_v23 = vrot.slane %v2079_v2, 1 }
 0x3e6   : > { %v4697_v15 = vsel %vm1101_vm8, %v5639_v36, %v5544_v50  ;;  %2206 = vrot.lane.b32.xlu1 %v3937_v33, %s3347_s7  ;;  %v4706_v61 = vsel %vm1228_vm9, %v5640_v39, %v5542_v14 }
 0x3e7   : > { %v1963_v31 = vadd.f32 %v1959_v51, %v1890_v45  ;;  %2068 = vrot.lane.b32.xlu0 %v3920_v18, %s3360_s4  ;;  %v2044_v51 = vsel %vm1101_vm8, %v2042_v54, %v5541_v47  ;;  %v2091_v52 = vsel %vm1101_vm8, %v2089_v23, %v5540_v16  ;;  %v1425_v54 = vsel %vm5641_vm12, %v1380_v29, %v1392_v8  ;;  %vm5674_vm12 = vmmov %vm5604_vm0 }
 0x3e8   : > { %v1838_v9 = vpop.permute.xlu0 %1837  ;;  %v1404_v4 = vpop.permute.xlu1 %1403  ;;  %v5643_v16 = vrot.slane %v4491_v42, 1 }
 0x3e9   : > { %v2008_v36 = vadd.f32 %v4420_v46, %v1963_v31  ;;  %v1871_v50 = vsel %vm5644_vm13, %v4684_v19, %v1838_v9  ;;  %vm5681_vm13 = vmmov %vm5604_vm0 }
 0x3ea   : > { %2218 = vrot.lane.b32.xlu1 %v3937_v33, %s3352_s22 }
 0x3eb   : > { %2303 = vrot.lane.b32.xlu0 %v3937_v33, %s3356_s11  ;;  %v2055_v37 = vadd.f32 %v2044_v51, %v2008_v36  ;;  %v1429_v36 = vsel %vm904_vm10, %v1425_v54, %v1404_v4 }
 0x3ec   : > { %v1850_v45 = vpop.permute.xlu0 %1849  ;;  %v1416_v39 = vpop.permute.xlu1 %1415 }
 0x3ed   : > { %v2102_v56 = vadd.f32 %v2091_v52, %v2055_v37  ;;  %v1433_v23 = vsel %vm909_vm3, %v1429_v36, %v1416_v39  ;;  %v1875_v3 = vsel %vm904_vm10, %v1871_v50, %v1850_v45 }
 0x3ee   : > { %2230 = vrot.lane.b32.xlu1 %v3937_v33, %s3350_s26  ;;  %v4737_v52 = vmul.f32 %v4488_v43, %v1433_v23  ;;  %v4757_v14 = vmul.f32 %v4508_v57, %v1433_v23 }
 0x3ef   : > { %2340 = vrot.lane.b32.xlu0 %v3937_v33, %s3357_s21  ;;  %v4727_v46 = vadd.f32 %v4425_v60, %v2102_v56 }
 0x3f0   : > { %v1862_v2 = vpop.permute.xlu0 %1861  ;;  %v1453_v31 = vpop.permute.xlu1 %1452  ;;  %v5543_v29 = vrot.slane %v4737_v52, 1 }
 0x3f2   : > { %2267 = vrot.lane.b32.xlu1 %v3937_v33, %s3353_s29  ;;  %v1600_v47 = vsel %vm1101_vm8, %v5643_v16, %v5543_v29 }
 0x3f3   : > { %2352 = vrot.lane.b32.xlu0 %v3937_v33, %s3358_s24  ;;  %v1610_v16 = vadd.f32 %v1600_v47, %v4669_v11 }
 0x3f4   : > { %v1899_v51 = vpop.permute.xlu0 %1898  ;;  %v1465_v37 = vpop.permute.xlu1 %1464 }
 0x3f5   : > { %v1498_v8 = vsel %vm5642_vm1, %v1453_v31, %v1465_v37  ;;  %vm5679_vm1 = vmmov %vm5604_vm0 }
 0x3f6   : > { %2279 = vrot.lane.b32.xlu1 %v3937_v33, %s3354_s17 }
 0x3f7   : > { %2376 = vrot.lane.b32.xlu0 %v3937_v33, %s3360_s4 }
 0x3f8   : > { %v1911_v60 = vpop.permute.xlu0 %1910  ;;  %v1477_v56 = vpop.permute.xlu1 %1476 }
 0x3f9   : > { %v1502_v4 = vsel %vm904_vm10, %v1498_v8, %v1477_v56  ;;  %v1944_v19 = vsel %vm5646_vm14, %v1899_v51, %v1911_v60  ;;  %vm5684_vm14 = vmmov %vm5604_vm0 }
 0x3fa   : > { %2291 = vrot.lane.b32.xlu1 %v3937_v33, %s3355_s25 }
 0x3fb   : > { %2208 = vrot.lane.b32.xlu0 %v3961_v49, %s3347_s7 }
 0x3fc   : > { %v1923_v39 = vpop.permute.xlu0 %1922  ;;  %v1489_v54 = vpop.permute.xlu1 %1488 }
 0x3fd   : > { %v1506_v36 = vsel %vm909_vm3, %v1502_v4, %v1489_v54  ;;  %v5549_v4 = vrot.slane %v4757_v14, 2  ;;  %v1948_v45 = vsel %vm904_vm10, %v1944_v19, %v1923_v39  ;;  %v1442_v19 = vmul.f32 %v4365_v35, %v1433_v23 }
 0x3fe   : > { %v4760_v31 = vmul.f32 %v4501_v40, %v1506_v36  ;;  %2364 = vrot.lane.b32.xlu1 %v3937_v33, %s3359_s27  ;;  %v4768_v56 = vmul.f32 %v4513_v17, %v1506_v36 }
 0x3ff   : > { %2220 = vrot.lane.b32.xlu0 %v3961_v49, %s3352_s22 }
 0x400   : > { %v5547_v37 = vrot.slane %v4760_v31, 1  ;;  %v1935_v42 = vpop.permute.xlu0 %1934  ;;  %v1767_v8 = vpop.permute.xlu1 %1766  ;;  %v5548_v11 = vrot.slane %v4768_v56, 2 }
 0x402   : > { %v1647_v54 = vsel %vm1101_vm8, %v1644_v0, %v5547_v37  ;;  %2305 = vrot.lane.b32.xlu1 %v3961_v49, %s3356_s11  ;;  %v5645_v0 = vrot.slane %v4541_v58, 2  ;;  %v5647_v37 = vld [vmem:[#allocation13_spill] sm:$0xff] }
 0x403   : > { %v1657_v29 = vadd.f32 %v1647_v54, %v1610_v16  ;;  %2232 = vrot.lane.b32.xlu0 %v3961_v49, %s3350_s26  ;;  %v4792_v54 = vsel %vm909_vm3, %v1875_v3, %v1862_v2  ;;  %v1799_v50 = vsel %vm5648_vm15, %v5647_v37, %v1767_v8  ;;  %v5650_v3 = vrot.slane %v4555_v20, 2  ;;  %vm5685_vm15 = vmmov %vm5604_vm0 }
 0x404   : > { %v1779_v47 = vpop.permute.xlu1 %1778  ;;  %v1321_v12 = vpop.permute.xlu0 %1320  ;;  %v1711_v16 = vsel %vm1228_vm9, %v5645_v0, %v5549_v4  ;;  %v4812_v37 = vmul.f32 %v4631_v6, %v4792_v54  ;;  %v1887_v0 = vmul.f32 %v4624_v63, %v4593_v28 }
 0x405   : > { %v1689_v21 = vadd.f32 %v4656_v22, %v1657_v29  ;;  %v5649_v22 = vld [vmem:[#allocation19_spill] sm:$0xff]  ;;  %v1743_v2 = vsel %vm1228_vm9, %v5650_v3, %v5548_v11  ;;  %v1803_v51 = vsel %vm904_vm10, %v1799_v50, %v1779_v47  ;;  %v5651_v50 = vld [vmem:[#allocation12_spill] sm:$0xff] }
 0x406   : > { %2342 = vrot.lane.b32.xlu1 %v3961_v49, %s3357_s21  ;;  %v1814_v58 = vmul.f32 %v4519_v55, %v5649_v22  ;;  %v1353_v22 = vsel %vm5652_vm4, %v5651_v50, %v1321_v12  ;;  %v1515_v12 = vmul.f32 %v4384_v32, %v1506_v36  ;;  %v5653_v50 = vrot.slane %v4660_v25, 1  ;;  %vm5686_vm4 = vmmov %vm5604_vm0 }
 0x407   : > { %v1721_v9 = vadd.f32 %v1711_v16, %v1689_v21  ;;  %2269 = vrot.lane.b32.xlu0 %v3961_v49, %s3353_s29  ;;  %v4815_v21 = vsel %vm909_vm3, %v1948_v45, %v1935_v42  ;;  %v1960_v42 = vmul.f32 %v4640_v26, %v4635_v5  ;;  %v1446_v25 = vadd.f32 %v1442_v19, %v4627_v53 }
 0x408   : > { %v1791_v60 = vpop.permute.xlu1 %1790  ;;  %v1333_v29 = vpop.permute.xlu0 %1332  ;;  %v4840_v45 = vmul.f32 %v4666_v44, %v4815_v21 }
 0x409   : > { %v1753_v8 = vadd.f32 %v1743_v2, %v1721_v9  ;;  %v1807_v39 = vsel %vm909_vm3, %v1803_v51, %v1791_v60  ;;  %v1357_v51 = vsel %vm904_vm10, %v1353_v22, %v1333_v29  ;;  %v5654_v29 = vrot.slane %v4673_v7, 2 }
 0x40a   : > { %v4821_v20 = vmul.f32 %v4519_v55, %v1807_v39  ;;  %v4824_v47 = vmul.f32 %v4338_v41, %v1807_v39  ;;  %v4827_v16 = vmul.f32 %v4344_v34, %v1807_v39  ;;  %2354 = vrot.lane.b32.xlu1 %v3961_v49, %s3358_s24  ;;  %v5552_v7 = vrot.slane %v4840_v45, 1 }
 0x40b   : > { %v1818_v9 = vadd.f32 %v1814_v58, %v1753_v8  ;;  %2281 = vrot.lane.b32.xlu0 %v3961_v49, %s3354_s17  ;;  %v5553_v58 = vrot.slane %v4812_v37, 1 }
 0x40c   : > { %v5551_v3 = vrot.slane %v4824_v47, 1  ;;  %v5550_v2 = vrot.slane %v4827_v16, 2  ;;  %v4845_v60 = vpop.permute.xlu1 %1827  ;;  %v1345_v23 = vpop.permute.xlu0 %1344 }
 0x40d   : > { %v1891_v8 = vadd.f32 %v1887_v0, %v1818_v9  ;;  %v1361_v39 = vsel %vm909_vm3, %v1357_v51, %v1345_v23  ;;  %v5655_v51 = vld [vmem:[#allocation18_spill] sm:$0xff] }
 0x40e   : > { %v4855_v11 = vsel %vm1101_vm8, %v5653_v50, %v5551_v3  ;;  %v4862_v22 = vsel %vm1228_vm9, %v5654_v29, %v5550_v2  ;;  %v1370_v4 = vmul.f32 %v4255_v1, %v1361_v39  ;;  %v4866_v36 = vmul.f32 %v4361_v10, %v1361_v39  ;;  %2378 = vrot.lane.b32.xlu1 %v3961_v49, %s3360_s4 }
 0x40f   : > { %v1964_v0 = vadd.f32 %v1960_v42, %v1891_v8  ;;  %v4872_v9 = vmul.f32 %v4382_v62, %v1361_v39  ;;  %2293 = vrot.lane.b32.xlu0 %v3961_v49, %s3355_s25  ;;  %v1519_v2 = vadd.f32 %v1515_v12, %v1446_v25  ;;  %v5656_v42 = vrot.slane %v4644_v59, 1  ;;  %v5658_v39 = vld [vmem:[#allocation15_spill] sm:$0xff] }
 0x410   : > { %v1374_v23 = vadd.f32 %v1370_v4, %v5655_v51  ;;  %v5556_v1 = vrot.slane %v4866_v36, 1  ;;  %v4879_v50 = vpop.permute.xlu1 %1839  ;;  %v1382_v29 = vpop.permute.xlu0 %1381  ;;  %v5657_v4 = vrot.slane %v4608_v30, 1  ;;  %v5660_v30 = vrot.slane %v4681_v27, 1 }
 0x411   : > { %v2009_v3 = vadd.f32 %v4697_v15, %v1964_v0  ;;  %v5555_v53 = vrot.slane %v4872_v9, 2  ;;  %v2046_v19 = vsel %vm1101_vm8, %v5656_v42, %v5553_v58  ;;  %v5659_v15 = vrot.slane %v4611_v13, 2 }
 0x412   : > { %v1555_v8 = vsel %vm1101_vm8, %v5657_v4, %v5556_v1  ;;  %2210 = vrot.lane.b32.xlu1 %v5658_v39, %s3347_s7  ;;  %v2093_v59 = vsel %vm1101_vm8, %v5660_v30, %v5552_v7 }
 0x413   : > { %v2056_v12 = vadd.f32 %v2046_v19, %v2009_v3  ;;  %v1564_v25 = vadd.f32 %v1555_v8, %v1519_v2  ;;  %v4900_v0 = vsel %vm1228_vm9, %v5659_v15, %v5555_v53  ;;  %2366 = vrot.lane.b32.xlu0 %v3961_v49, %s3359_s27 }
 0x414   : > { %v4909_v51 = vpop.permute.xlu1 %1851  ;;  %v1394_v3 = vpop.permute.xlu0 %1393 }
 0x415   : > { %v2103_v2 = vadd.f32 %v2093_v59, %v2056_v12  ;;  %v1426_v27 = vsel %vm5661_vm5, %v1382_v29, %v1394_v3  ;;  %vm5687_vm5 = vmmov %vm5604_vm0 }
 0x416   : > { %2222 = vrot.lane.b32.xlu1 %v5658_v39, %s3352_s22 }
 0x417   : > { %2307 = vrot.lane.b32.xlu0 %v5658_v39, %s3356_s11  ;;  %v4916_v13 = vadd.f32 %v4706_v61, %v2103_v2 }
 0x418   : > { %v4918_v42 = vpop.permute.xlu1 %1863  ;;  %v1406_v19 = vpop.permute.xlu0 %1405 }
 0x419   : > { %v1430_v4 = vsel %vm904_vm10, %v1426_v27, %v1406_v19 }
 0x41a   : > { %2234 = vrot.lane.b32.xlu1 %v5658_v39, %s3350_s26 }
 0x41b   : > { %2344 = vrot.lane.b32.xlu0 %v5658_v39, %s3357_s21 }
 0x41c   : > { %v1901_v8 = vpop.permute.xlu1 %1900  ;;  %v1418_v12 = vpop.permute.xlu0 %1417 }
 0x41d   : > { %v1434_v15 = vsel %vm909_vm3, %v1430_v4, %v1418_v12 }
 0x41e   : > { %v1443_v61 = vmul.f32 %v4365_v35, %v1434_v15  ;;  %v4929_v30 = vmul.f32 %v4488_v43, %v1434_v15  ;;  %2271 = vrot.lane.b32.xlu1 %v5658_v39, %s3353_s29  ;;  %v5663_v35 = vrot.slane %v4737_v52, 1  ;;  %v5665_v52 = vld [vmem:[#allocation16_spill] sm:$0xff] }
 0x41f   : > { %2356 = vrot.lane.b32.xlu0 %v5658_v39, %s3358_s24 }
 0x420   : > { %v1447_v29 = vadd.f32 %v1443_v61, %v1374_v23  ;;  %v5554_v59 = vrot.slane %v4929_v30, 1  ;;  %v1913_v3 = vpop.permute.xlu1 %1912  ;;  %v1455_v2 = vpop.permute.xlu0 %1454 }
 0x421   : > { %v1945_v19 = vsel %vm5662_vm6, %v1901_v8, %v1913_v3  ;;  %vm5688_vm6 = vmmov %vm5604_vm0 }
 0x422   : > { %v1602_v27 = vsel %vm1101_vm8, %v5663_v35, %v5554_v59  ;;  %2283 = vrot.lane.b32.xlu1 %v5658_v39, %s3354_s17 }
 0x423   : > { %v1611_v4 = vadd.f32 %v1602_v27, %v1564_v25  ;;  %2380 = vrot.lane.b32.xlu0 %v5658_v39, %s3360_s4 }
 0x424   : > { %v1925_v23 = vpop.permute.xlu1 %1924  ;;  %v1467_v12 = vpop.permute.xlu0 %1466 }
 0x425   : > { %v1949_v61 = vsel %vm904_vm10, %v1945_v19, %v1925_v23  ;;  %v1499_v7 = vsel %vm5664_vm7, %v1455_v2, %v1467_v12  ;;  %v5666_v23 = vld [vmem:[#allocation14_spill] sm:$0xff]  ;;  %vm5689_vm7 = vmmov %vm5604_vm0 }
 0x426   : > { %2295 = vrot.lane.b32.xlu1 %v5658_v39, %s3355_s25 }
 0x427   : > { %2212 = vrot.lane.b32.xlu0 %v5665_v52, %s3347_s7 }
 0x428   : > { %v1937_v8 = vpop.permute.xlu1 %1936 }
 0x429   : > { %v4953_v3 = vsel %vm909_vm3, %v1949_v61, %v1937_v8  ;;  %v1479_v25 = vpop.permute.xlu0 %1478  ;;  %v4970_v8 = vmul.f32 %v4508_v57, %v1434_v15  ;;  %v5668_v15 = vrot.slane %v4760_v31, 1 }
 0x42a   : > { %v4957_v35 = vmul.f32 %v4640_v26, %v4953_v3  ;;  %v1503_v27 = vsel %vm904_vm10, %v1499_v7, %v1479_v25  ;;  %2368 = vrot.lane.b32.xlu1 %v5658_v39, %s3359_s27 }
 0x42b   : > { %2224 = vrot.lane.b32.xlu0 %v5665_v52, %s3352_s22 }
 0x42c   : > { %v1523_v2 = vpop.permute.xlu1 %1522 }
 0x42d   : > { %v1491_v19 = vpop.permute.xlu0 %1490  ;;  %v1531_v12 = vsel %vm5667_vm11, %v5666_v23, %v1523_v2  ;;  %vm5690_vm11 = vmmov %vm5604_vm0 }
 0x42e   : > { %v1507_v61 = vsel %vm909_vm3, %v1503_v27, %v1491_v19  ;;  %2309 = vrot.lane.b32.xlu1 %v5665_v52, %s3356_s11 }
 0x42f   : > { %v1516_v7 = vmul.f32 %v4384_v32, %v1507_v61  ;;  %v4974_v25 = vmul.f32 %v4501_v40, %v1507_v61  ;;  %2236 = vrot.lane.b32.xlu0 %v5665_v52, %s3350_s26  ;;  %v4980_v27 = vmul.f32 %v4513_v17, %v1507_v61  ;;  %v1712_v32 = vrot.slane %v4970_v8, 2 }
 0x430   : > { %v1529_v58 = vpop.permute.xlu1 %1528  ;;  %v1872_v8 = vsel %vm5604_vm0, %v4845_v60, %v4879_v50 }
 0x431   : > { %v1520_v59 = vadd.f32 %v1516_v7, %v1447_v29  ;;  %v5557_v2 = vrot.slane %v4974_v25, 1  ;;  %v1526_v19 = vpop.permute.xlu0 %1525  ;;  %v1744_v1 = vrot.slane %v4980_v27, 2 }
 0x432   : > { %v1532_v23 = vsel %vm904_vm10, %v1531_v12, %v1526_v19  ;;  %2346 = vrot.lane.b32.xlu1 %v5665_v52, %s3357_s21 }
 0x433   : > { %v1649_v53 = vsel %vm1101_vm8, %v5668_v15, %v5557_v2  ;;  %v1533_v29 = vsel %vm909_vm3, %v1532_v23, %v1529_v58  ;;  %2273 = vrot.lane.b32.xlu0 %v5665_v52, %s3353_s29 }
 0x434   : > { %v1658_v61 = vadd.f32 %v1649_v53, %v1611_v4  ;;  %v1543_v7 = vmul.f32 %v4361_v10, %v1533_v29  ;;  %v1669_v12 = vmul.f32 %v4382_v62, %v1533_v29  ;;  %v1570_v19 = vpop.permute.xlu1 %1569  ;;  %v1876_v10 = vsel %vm904_vm10, %v1872_v8, %v4909_v51 }
 0x435   : > { %v1567_v31 = vpop.permute.xlu0 %1566  ;;  %v5670_v62 = vrot.slane %v4757_v14, 2  ;;  %v5013_v60 = vsel %vm909_vm3, %v1876_v10, %v4918_v42  ;;  %v5672_v29 = vrot.slane %v4872_v9, 2 }
 0x436   : > { %v1690_v15 = vadd.f32 %v4900_v0, %v1658_v61  ;;  %v1556_v2 = vrot.slane %v1543_v7, 1  ;;  %v1682_v58 = vrot.slane %v1669_v12, 2  ;;  %v1578_v23 = vsel %vm5669_vm2, %v1567_v31, %v1570_v19  ;;  %2358 = vrot.lane.b32.xlu1 %v5665_v52, %s3358_s24  ;;  %vm5691_vm2 = vmmov %vm5604_vm0 }
 0x437   : > { %v1713_v53 = vsel %vm1228_vm9, %v5670_v62, %v1712_v32  ;;  %2285 = vrot.lane.b32.xlu0 %v5665_v52, %s3354_s17  ;;  %v5671_v0 = vrot.slane %v4866_v36, 1  ;;  %v5673_v61 = vrot.slane %v4768_v56, 2  ;;  %v1815_v19 = vmul.f32 %v4519_v55, %v4638_v48 }
 0x438   : > { %v1722_v50 = vadd.f32 %v1713_v53, %v1690_v15  ;;  %v5021_v51 = vsel %vm1228_vm9, %v5672_v29, %v1682_v58  ;;  %v1576_v14 = vpop.permute.xlu1 %1575  ;;  %v5035_v9 = vmul.f32 %v4631_v6, %v5013_v60  ;;  %v1888_v56 = vmul.f32 %v4624_v63, %v4792_v54 }
 0x439   : > { %v1557_v4 = vsel %vm1101_vm8, %v5671_v0, %v1556_v2  ;;  %v1745_v7 = vsel %vm1228_vm9, %v5673_v61, %v1744_v1  ;;  %v1573_v42 = vpop.permute.xlu0 %1572  ;;  %v1961_v15 = vmul.f32 %v4640_v26, %v4815_v21  ;;  %v5048_v58 = vmul.f32 %v4666_v44, %v4953_v3  ;;  %v5675_v0 = vld [vmem:[#allocation17_spill] sm:$0xff] }
 0x43a   : > { %v1565_v12 = vadd.f32 %v1557_v4, %v1520_v59  ;;  %v1754_v36 = vadd.f32 %v1745_v7, %v1722_v50  ;;  %v1579_v2 = vsel %vm904_vm10, %v1578_v23, %v1573_v42  ;;  %2382 = vrot.lane.b32.xlu1 %v5665_v52, %s3360_s4  ;;  %v5676_v4 = vrot.slane %v4929_v30, 1 }
 0x43b   : > { %v1580_v8 = vsel %vm909_vm3, %v1579_v2, %v1576_v14  ;;  %2297 = vrot.lane.b32.xlu0 %v5665_v52, %s3355_s25  ;;  %v2094_v42 = vrot.slane %v5048_v58, 1  ;;  %v5067_v2 = vld [vmem:[#allocation5 + $0x1a] ss:$0 sm:$0xff] }
 0x43c   : > { %v1819_v59 = vadd.f32 %v1815_v19, %v1754_v36  ;;  %v1590_v55 = vmul.f32 %v4488_v43, %v1580_v8  ;;  %v1701_v48 = vmul.f32 %v4508_v57, %v1580_v8  ;;  %v1617_v31 = vpop.permute.xlu1 %1616  ;;  %v2047_v43 = vrot.slane %v5035_v9, 1  ;;  %v5056_v57 = vld [vmem:[#allocation5 + $0x19] ss:$0 sm:$0xff] }
 0x43d   : > { %v1614_v23 = vpop.permute.xlu0 %1613  ;;  %v5064_v7 = vmul.f32 %v5056_v57, %v5013_v60 }
 0x43e   : > { %v1892_v10 = vadd.f32 %v1888_v56, %v1819_v59  ;;  %v1603_v62 = vrot.slane %v1590_v55, 1  ;;  %v1714_v53 = vrot.slane %v1701_v48, 2  ;;  %v1625_v50 = vsel %vm5674_vm12, %v1614_v23, %v1617_v31  ;;  %2414 = vrot.lane.b32.xlu1 %v5675_v0, %s3347_s7  ;;  %vm5692_vm12 = vmmov %vm5604_vm0 }
 0x43f   : > { %2370 = vrot.lane.b32.xlu0 %v5665_v52, %s3359_s27  ;;  %v5677_v56 = vrot.slane %v4812_v37, 1  ;;  %v5084_v59 = vmul.f32 %v5067_v2, %v4953_v3  ;;  %v5093_v37 = vmul.f32 %v5067_v2, %v4815_v21  ;;  %v5678_v3 = vrot.slane %v4840_v45, 1 }
 0x440   : > { %v1965_v26 = vadd.f32 %v1961_v15, %v1892_v10  ;;  %v1604_v29 = vsel %vm1101_vm8, %v5676_v4, %v1603_v62  ;;  %v1715_v14 = vsel %vm1228_vm9, %v1712_v32, %v1714_v53  ;;  %v1623_v61 = vpop.permute.xlu1 %1622  ;;  %v5075_v32 = vmul.f32 %v5056_v57, %v4792_v54 }
 0x441   : > { %v1612_v19 = vadd.f32 %v1604_v29, %v1565_v12  ;;  %v1620_v36 = vpop.permute.xlu0 %1619  ;;  %v2048_v12 = vsel %vm1101_vm8, %v5677_v56, %v2047_v43  ;;  %v2158_v15 = vrot.slane %v5064_v7, 2  ;;  %v2095_v23 = vsel %vm1101_vm8, %v5678_v3, %v2094_v42  ;;  %v5204_v7 = vld [vmem:[#allocation5 + $0x1e] ss:$0 sm:$0xff] }
 0x442   : > { %v1626_v8 = vsel %vm904_vm10, %v1625_v50, %v1620_v36  ;;  %2420 = vrot.lane.b32.xlu1 %v5675_v0, %s3350_s26  ;;  %v2010_v30 = vadd.f32 %v4855_v11, %v1965_v26  ;;  %v2156_v21 = vrot.slane %v5075_v32, 2  ;;  %v2190_v50 = vrot.slane %v5084_v59, 2 }
 0x443   : > { %v1627_v55 = vsel %vm909_vm3, %v1626_v8, %v1623_v61  ;;  %2417 = vrot.lane.b32.xlu0 %v5675_v0, %s3352_s22  ;;  %v5680_v45 = vrot.slane %v4974_v25, 1  ;;  %v2188_v36 = vrot.slane %v5093_v37, 2  ;;  %v5682_v3 = vrot.slane %v4824_v47, 1 }
 0x444   : > { %v1637_v11 = vmul.f32 %v4501_v40, %v1627_v55  ;;  %v1733_v54 = vmul.f32 %v4513_v17, %v1627_v55  ;;  %v1972_v48 = vpop.permute.xlu1 %1971  ;;  %v2057_v31 = vadd.f32 %v2048_v12, %v2010_v30  ;;  %v2159_v8 = vsel %vm1228_vm9, %v2156_v21, %v2158_v15 }
 0x445   : > { %v1969_v10 = vpop.permute.xlu0 %1968 }
 0x446   : > { %v1650_v62 = vrot.slane %v1637_v11, 1  ;;  %v1746_v53 = vrot.slane %v1733_v54, 2  ;;  %v1977_v17 = vsel %vm5679_vm1, %v3920_v18, %v1969_v10  ;;  %2461 = vrot.lane.b32.xlu1 %v5675_v0, %s3354_s17  ;;  %v2104_v40 = vadd.f32 %v2095_v23, %v2057_v31  ;;  %vm5693_vm1 = vmmov %vm5604_vm0 }
 0x447   : > { %v1978_v26 = vsel %vm904_vm10, %v1977_v17, %v1972_v48  ;;  %2458 = vrot.lane.b32.xlu0 %v5675_v0, %s3353_s29  ;;  %v5683_v10 = vrot.slane %v4827_v16, 2  ;;  %v1889_v17 = vmul.f32 %v4624_v63, %v5013_v60  ;;  %v2144_v63 = vmul.f32 %v5056_v57, %v4593_v28  ;;  %s3269_s29 = sshll.u32 %s3361_s16, 4  ;;  %s3270_s29 = int_to_ptr.vmem [resolvable:$false] %s3269_s29 }
 0x448   : > { %v1651_v4 = vsel %vm1101_vm8, %v5680_v45, %v1650_v62  ;;  %v1747_v18 = vsel %vm1228_vm9, %v1744_v1, %v1746_v53  ;;  %v2013_v29 = vpop.permute.xlu1 %2012  ;;  %v2136_v61 = vadd.f32 %v4862_v22, %v2104_v40  ;;  %v5172_v28 = vmul.f32 %v5067_v2, %v4635_v5  ;;  %s3271_s17 = scalar_lea.vmem %s3270_s29, 4096  ;;  %p3272_p7 = scmp.lt.s32.totalorder %s5467_s20, %s3270_s29 }
 0x449   : > { %v1659_v30 = vadd.f32 %v1651_v4, %v1612_v19  ;;  %v1975_v56 = vpop.permute.xlu0 %1974  ;;  %v2191_v19 = vsel %vm1228_vm9, %v2188_v36, %v2190_v50 }
 0x44a   : > { %v1979_v25 = vsel %vm909_vm3, %v1978_v26, %v1975_v56  ;;  %2467 = vrot.lane.b32.xlu1 %v5675_v0, %s3356_s11  ;;  %v2168_v27 = vadd.f32 %v2159_v8, %v2136_v61  ;;  %v2143_v8 = vmul.f32 %v5056_v57, %v4566_v24 }
 0x44b   : > { %v1691_v1 = vadd.f32 %v5021_v51, %v1659_v30  ;;  %v1989_v22 = vmul.f32 %v4338_v41, %v1979_v25  ;;  %v2115_v12 = vmul.f32 %v4344_v34, %v1979_v25  ;;  %2464 = vrot.lane.b32.xlu0 %v5675_v0, %s3355_s25 }
 0x44c   : > { %v2019_v55 = vpop.permute.xlu1 %2018  ;;  %v5136_v11 = vadd.f32 %v2191_v19, %v2168_v27  ;;  %v2154_v27 = vrot.slane %v2144_v63, 2 }
 0x44d   : > { %v1723_v54 = vadd.f32 %v1715_v14, %v1691_v1  ;;  %v2002_v48 = vrot.slane %v1989_v22, 1  ;;  %v2128_v31 = vrot.slane %v2115_v12, 2  ;;  %v2016_v51 = vpop.permute.xlu0 %2015  ;;  %v2175_v22 = vmul.f32 %v5067_v2, %v4589_v38 }
 0x44e   : > { %v2024_v41 = vsel %vm5681_vm13, %v2013_v29, %v2016_v51  ;;  %2508 = vrot.lane.b32.xlu1 %v5675_v0, %s3358_s24  ;;  %vm5694_vm13 = vmmov %vm5604_vm0 }
 0x44f   : > { %v1755_v34 = vadd.f32 %v1747_v18, %v1723_v54  ;;  %v2003_v23 = vsel %vm1101_vm8, %v5682_v3, %v2002_v48  ;;  %v2129_v62 = vsel %vm1228_vm9, %v5683_v10, %v2128_v31  ;;  %v2025_v53 = vsel %vm904_vm10, %v2024_v41, %v2019_v55  ;;  %2505 = vrot.lane.b32.xlu0 %v5675_v0, %s3357_s21 }
 0x450   : > { %v2060_v14 = vpop.permute.xlu1 %2059  ;;  %v2186_v55 = vrot.slane %v5172_v28, 2  ;;  %v2185_v31 = vrot.slane %v2175_v22, 2 }
 0x451   : > { %v1820_v40 = vadd.f32 %v4821_v20, %v1755_v34  ;;  %v2022_v26 = vpop.permute.xlu0 %2021  ;;  %v5190_v34 = vld [vmem:[#allocation5 + $0x1b] ss:$0 sm:$0xff] }
 0x452   : > { %v2026_v47 = vsel %vm909_vm3, %v2025_v53, %v2022_v26  ;;  %2514 = vrot.lane.b32.xlu1 %v5675_v0, %s3360_s4 }
 0x453   : > { %v1893_v16 = vadd.f32 %v1889_v17, %v1820_v40  ;;  %v2036_v45 = vmul.f32 %v4631_v6, %v2026_v47  ;;  %v2147_v4 = vmul.f32 %v5056_v57, %v2026_v47  ;;  %2511 = vrot.lane.b32.xlu0 %v5675_v0, %s3359_s27  ;;  %v2153_v57 = vrot.slane %v2143_v8, 2 }
 0x454   : > { %v2066_v18 = vpop.permute.xlu1 %2065 }
 0x455   : > { %v1966_v20 = vadd.f32 %v4957_v35, %v1893_v16  ;;  %v2049_v60 = vrot.slane %v2036_v45, 1  ;;  %v2063_v29 = vpop.permute.xlu0 %2062  ;;  %v2155_v19 = vsel %vm1228_vm9, %v2153_v57, %v2154_v27  ;;  %v2160_v41 = vrot.slane %v2147_v4, 2 }
 0x456   : > { %v2071_v61 = vsel %vm5684_vm14, %v2060_v14, %v2063_v29  ;;  %v2166_v51 = vadd.f32 %v2155_v19, %v4727_v46  ;;  %v2187_v46 = vsel %vm1228_vm9, %v2185_v31, %v2186_v55  ;;  %vm5695_vm14 = vmmov %vm5604_vm0 }
 0x457   : > { %v2011_v30 = vadd.f32 %v2003_v23, %v1966_v20  ;;  %v2050_v6 = vsel %vm1101_vm8, %v2047_v43, %v2049_v60  ;;  %v2072_v56 = vsel %vm904_vm10, %v2071_v61, %v2066_v18 }
 0x458   : > { %v2207_v25 = vpop.permute.xlu1 %2206 }
 0x459   : > { %v2058_v35 = vadd.f32 %v2050_v6, %v2011_v30  ;;  %v2069_v1 = vpop.permute.xlu0 %2068  ;;  %v2157_v30 = vsel %vm1228_vm9, %v2154_v27, %v2156_v21  ;;  %v5213_v6 = vld [vmem:[#allocation5 + $0x21] ss:$0 sm:$0xff] }
 0x45a   : > { %v2073_v24 = vsel %vm909_vm3, %v2072_v56, %v2069_v1  ;;  %v5215_v56 = vld [vmem:[#allocation5 + $0x1d] ss:$0 sm:$0xff]  ;;  %v2167_v28 = vadd.f32 %v2157_v30, %v4916_v13 }
 0x45b   : > { %v2083_v9 = vmul.f32 %v4666_v44, %v2073_v24  ;;  %v2179_v43 = vmul.f32 %v5067_v2, %v2073_v24  ;;  %v2242_v2 = vsel %vm5685_vm15, %v3937_v33, %v2207_v25  ;;  %vm5696_vm15 = vmmov %vm5604_vm0 }
 0x45c   : > { %v2219_v12 = vpop.permute.xlu1 %2218 }
 0x45d   : > { %v2096_v54 = vrot.slane %v2083_v9, 1  ;;  %v2192_v5 = vrot.slane %v2179_v43, 2  ;;  %v2304_v48 = vpop.permute.xlu0 %2303  ;;  %v2246_v23 = vsel %vm904_vm10, %v2242_v2, %v2219_v12  ;;  %v2189_v9 = vsel %vm1228_vm9, %v2186_v55, %v2188_v36 }
 0x45e   : > { %v2199_v43 = vadd.f32 %v2189_v9, %v2167_v28 }
 0x45f   : > { %v2097_v38 = vsel %vm1101_vm8, %v2094_v42, %v2096_v54  ;;  %v2193_v44 = vsel %vm1228_vm9, %v2190_v50, %v2192_v5  ;;  %v2198_v42 = vadd.f32 %v2187_v46, %v2166_v51  ;;  %v2161_v50 = vsel %vm1228_vm9, %v2158_v15, %v2160_v41  ;;  %v5206_v15 = vld [vmem:[#allocation5 + $0x1c] ss:$0 sm:$0xff] }
 0x460   : > { %v2105_v3 = vadd.f32 %v2097_v38, %v2058_v35  ;;  %v2231_v10 = vpop.permute.xlu1 %2230 }
 0x461   : > { %v2341_v53 = vpop.permute.xlu0 %2340  ;;  %v2250_v58 = vsel %vm909_vm3, %v2246_v23, %v2231_v10  ;;  %v5245_v10 = vld [vmem:[#allocation5 + $0x1f] ss:$0 sm:$0xff] }
 0x462   : > { %v2137_v14 = vadd.f32 %v2129_v62, %v2105_v3  ;;  %v2259_v59 = vmul.f32 %v5190_v34, %v2250_v58  ;;  %v2431_v35 = vmul.f32 %v5204_v7, %v2250_v58  ;;  %v2557_v32 = vmul.f32 %v5213_v6, %v2250_v58 }
 0x464   : > { %v2263_v33 = vadd.f32 %v2259_v59, %v2198_v42  ;;  %v2268_v17 = vpop.permute.xlu1 %2267  ;;  %v2169_v40 = vadd.f32 %v2161_v50, %v2137_v14  ;;  %v2441_v54 = vrot.slane %v2431_v35, 1  ;;  %v2567_v31 = vrot.slane %v2557_v32, 2  ;;  %v5250_v59 = vld [vmem:[#allocation5 + $0x20] ss:$0 sm:$0xff] }
 0x465   : > { %v2353_v26 = vpop.permute.xlu0 %2352 }
 0x466   : > { %v5199_v47 = vadd.f32 %v2193_v44, %v2169_v40  ;;  %v2388_v20 = vsel %vm5687_vm5, %v2341_v53, %v2353_v26  ;;  %vm5698_vm5 = vmmov %vm5604_vm0 }
 0x468   : > { %v2280_v16 = vpop.permute.xlu1 %2279 }
 0x469   : > { %v2377_v45 = vpop.permute.xlu0 %2376  ;;  %v2315_v18 = vsel %vm5686_vm4, %v2268_v17, %v2280_v16  ;;  %v5257_v16 = vld [vmem:[#allocation5 + $0x22] ss:$0 sm:$0xff]  ;;  %vm5697_vm4 = vmmov %vm5604_vm0 }
 0x46c   : > { %v2292_v4 = vpop.permute.xlu1 %2291 }
 0x46d   : > { %v2209_v63 = vpop.permute.xlu0 %2208  ;;  %v2319_v62 = vsel %vm904_vm10, %v2315_v18, %v2292_v4 }
 0x46e   : > { %v2323_v29 = vsel %vm909_vm3, %v2319_v62, %v2304_v48  ;;  %v2243_v22 = vsel %vm5688_vm6, %v3961_v49, %v2209_v63  ;;  %vm5699_vm6 = vmmov %vm5604_vm0 }
 0x46f   : > { %v2332_v1 = vmul.f32 %v5206_v15, %v2323_v29  ;;  %v2478_v14 = vmul.f32 %v5245_v10, %v2323_v29  ;;  %v2589_v28 = vmul.f32 %v5257_v16, %v2323_v29 }
 0x470   : > { %v2365_v60 = vpop.permute.xlu1 %2364 }
 0x471   : > { %v2392_v61 = vsel %vm904_vm10, %v2388_v20, %v2365_v60  ;;  %v2221_v8 = vpop.permute.xlu0 %2220  ;;  %v2336_v5 = vadd.f32 %v2332_v1, %v2263_v33  ;;  %v5263_v20 = vld [vmem:[#allocation5 + $0x23] ss:$0 sm:$0xff] }
 0x472   : > { %v2396_v25 = vsel %vm909_vm3, %v2392_v61, %v2377_v45  ;;  %v2247_v21 = vsel %vm904_vm10, %v2243_v22, %v2221_v8  ;;  %v2488_v45 = vrot.slane %v2478_v14, 1 }
 0x473   : > { %v2405_v57 = vmul.f32 %v5215_v56, %v2396_v25  ;;  %v2525_v4 = vmul.f32 %v5250_v59, %v2396_v25  ;;  %v2621_v32 = vmul.f32 %v5263_v20, %v2396_v25 }
 0x474   : > { %v2306_v24 = vpop.permute.xlu1 %2305 }
 0x475   : > { %v2233_v27 = vpop.permute.xlu0 %2232  ;;  %v2409_v41 = vadd.f32 %v2405_v57, %v2336_v5  ;;  %v2535_v1 = vrot.slane %v2525_v4, 1 }
 0x476   : > { %v2251_v13 = vsel %vm909_vm3, %v2247_v21, %v2233_v27 }
 0x477   : > { %v2260_v12 = vmul.f32 %v5190_v34, %v2251_v13  ;;  %v5232_v19 = vmul.f32 %v5204_v7, %v2251_v13  ;;  %v5235_v49 = vmul.f32 %v5213_v6, %v2251_v13 }
 0x478   : > { %v2343_v48 = vpop.permute.xlu1 %2342 }
 0x479   : > { %v2264_v51 = vadd.f32 %v2260_v12, %v2199_v43  ;;  %v2442_v37 = vrot.slane %v5232_v19, 1  ;;  %v2568_v36 = vrot.slane %v5235_v49, 2  ;;  %v2270_v55 = vpop.permute.xlu0 %2269  ;;  %v2599_v12 = vrot.slane %v2589_v28, 2 }
 0x47b   : > { %v2443_v38 = vsel %vm1101_vm8, %v2441_v54, %v2442_v37  ;;  %v2569_v44 = vsel %vm1228_vm9, %v2567_v31, %v2568_v36 }
 0x47c   : > { %v2454_v2 = vadd.f32 %v2443_v38, %v2409_v41  ;;  %v2355_v3 = vpop.permute.xlu1 %2354  ;;  %v2631_v38 = vrot.slane %v2621_v32, 2 }
 0x47d   : > { %v2282_v23 = vpop.permute.xlu0 %2281  ;;  %v2389_v40 = vsel %vm5690_vm11, %v2343_v48, %v2355_v3  ;;  %vm5701_vm11 = vmmov %vm5604_vm0 }
 0x47e   : > { %v2316_v46 = vsel %vm5689_vm7, %v2270_v55, %v2282_v23  ;;  %vm5700_vm7 = vmmov %vm5604_vm0 }
 0x480   : > { %v2379_v53 = vpop.permute.xlu1 %2378 }
 0x481   : > { %v2294_v58 = vpop.permute.xlu0 %2293 }
 0x482   : > { %v2320_v42 = vsel %vm904_vm10, %v2316_v46, %v2294_v58 }
 0x483   : > { %v2324_v50 = vsel %vm909_vm3, %v2320_v42, %v2306_v24 }
 0x484   : > { %v5254_v33 = vmul.f32 %v5245_v10, %v2324_v50  ;;  %v2211_v17 = vpop.permute.xlu1 %2210  ;;  %v5269_v61 = vmul.f32 %v5257_v16, %v2324_v50  ;;  %v2333_v21 = vmul.f32 %v5206_v15, %v2324_v50 }
 0x485   : > { %v2367_v26 = vpop.permute.xlu0 %2366  ;;  %v2244_v57 = vsel %vm5604_vm0, %v5658_v39, %v2211_v17 }
 0x486   : > { %v2489_v18 = vrot.slane %v5254_v33, 1  ;;  %v2393_v63 = vsel %vm904_vm10, %v2389_v40, %v2367_v26  ;;  %v2600_v9 = vrot.slane %v5269_v61, 2 }
 0x487   : > { %v2397_v62 = vsel %vm909_vm3, %v2393_v63, %v2379_v53 }
 0x488   : > { %v2490_v60 = vsel %vm1101_vm8, %v2488_v45, %v2489_v18  ;;  %v5272_v8 = vmul.f32 %v5250_v59, %v2397_v62  ;;  %v2223_v30 = vpop.permute.xlu1 %2222  ;;  %v5277_v24 = vmul.f32 %v5263_v20, %v2397_v62  ;;  %v2406_v54 = vmul.f32 %v5215_v56, %v2397_v62 }
 0x489   : > { %v2308_v35 = vpop.permute.xlu0 %2307  ;;  %v2501_v27 = vadd.f32 %v2490_v60, %v2454_v2  ;;  %v2248_v13 = vsel %vm904_vm10, %v2244_v57, %v2223_v30  ;;  %v2337_v2 = vadd.f32 %v2333_v21, %v2264_v51  ;;  %v2601_v14 = vsel %vm1228_vm9, %v2599_v12, %v2600_v9 }
 0x48a   : > { %v2536_v22 = vrot.slane %v5272_v8, 1  ;;  %v2632_v31 = vrot.slane %v5277_v24, 2 }
 0x48b   : > { %v2410_v42 = vadd.f32 %v2406_v54, %v2337_v2 }
 0x48c   : > { %v2537_v29 = vsel %vm1101_vm8, %v2535_v1, %v2536_v22  ;;  %v2235_v43 = vpop.permute.xlu1 %2234 }
 0x48d   : > { %v2548_v25 = vadd.f32 %v2537_v29, %v2501_v27  ;;  %v2345_v5 = vpop.permute.xlu0 %2344  ;;  %v2252_v48 = vsel %vm909_vm3, %v2248_v13, %v2235_v43 }
 0x48e   : > { %v2261_v39 = vmul.f32 %v5190_v34, %v2252_v48  ;;  %v5293_v55 = vmul.f32 %v5204_v7, %v2252_v48  ;;  %v5296_v41 = vmul.f32 %v5213_v6, %v2252_v48 }
 0x48f   : > { %v2580_v3 = vadd.f32 %v2569_v44, %v2548_v25  ;;  %v2633_v44 = vsel %vm1228_vm9, %v2631_v38, %v2632_v31 }
 0x490   : > { %v2265_v23 = vadd.f32 %v2261_v39, %v5136_v11  ;;  %v2444_v53 = vrot.slane %v5293_v55, 1  ;;  %v2570_v46 = vrot.slane %v5296_v41, 2  ;;  %v2272_v58 = vpop.permute.xlu1 %2271 }
 0x491   : > { %v2357_v50 = vpop.permute.xlu0 %2356  ;;  %v2612_v17 = vadd.f32 %v2601_v14, %v2580_v3 }
 0x492   : > { %v2445_v51 = vsel %vm1101_vm8, %v2442_v37, %v2444_v53  ;;  %v2571_v11 = vsel %vm1228_vm9, %v2568_v36, %v2570_v46  ;;  %v2390_v60 = vsel %vm5693_vm1, %v2345_v5, %v2357_v50  ;;  %vm5708_vm1 = vmmov %vm5604_vm0 }
 0x493   : > { %v2455_v40 = vadd.f32 %v2445_v51, %v2410_v42  ;;  %v2644_v26 = vadd.f32 %v2633_v44, %v2612_v17 }
 0x494   : > { %v2284_v45 = vpop.permute.xlu1 %2283 }
 0x495   : > { %v2381_v4 = vpop.permute.xlu0 %2380  ;;  %2648 = vst.msk [vmem:[%s5314_s6] sm:$0xff] %vm5691_vm2, %v2644_v26  ;;  %2656 = vrot.lane.b32.xlu0 %v2644_v26, %s3350_s26  ;;  %v2317_v19 = vsel %vm5692_vm12, %v2272_v58, %v2284_v45  ;;  %vm5706_vm2 = vmmov %vm5604_vm0 }
 0x496   : > { %vm5707_vm12 = vmmov %vm5604_vm0 }
 0x498   : > { %v2296_v49 = vpop.permute.xlu1 %2295 }
 0x499   : > { %v2321_v37 = vsel %vm904_vm10, %v2317_v19, %v2296_v49  ;;  %v2213_v36 = vpop.permute.xlu0 %2212  ;;  %2673 = vrot.lane.b32.xlu0 %v2644_v26, %s3352_s22 }
 0x49a   : > { %v2325_v63 = vsel %vm909_vm3, %v2321_v37, %v2308_v35  ;;  %v2245_v13 = vsel %vm5694_vm13, %v5665_v52, %v2213_v36  ;;  %vm5709_vm13 = vmmov %vm5604_vm0 }
 0x49b   : > { %v5324_v62 = vmul.f32 %v5245_v10, %v2325_v63  ;;  %v5331_v21 = vmul.f32 %v5257_v16, %v2325_v63  ;;  %v2334_v29 = vmul.f32 %v5206_v15, %v2325_v63 }
 0x49c   : > { %v2369_v30 = vpop.permute.xlu1 %2368 }
 0x49d   : > { %v2491_v28 = vrot.slane %v5324_v62, 1  ;;  %v2394_v1 = vsel %vm904_vm10, %v2390_v60, %v2369_v30  ;;  %v2225_v32 = vpop.permute.xlu0 %2224  ;;  %2690 = vrot.lane.b32.xlu0 %v2644_v26, %s3347_s7  ;;  %v2338_v2 = vadd.f32 %v2334_v29, %v2265_v23 }
 0x49e   : > { %v2398_v27 = vsel %vm909_vm3, %v2394_v1, %v2381_v4  ;;  %v2249_v25 = vsel %vm904_vm10, %v2245_v13, %v2225_v32 }
 0x49f   : > { %v2492_v35 = vsel %vm1101_vm8, %v2489_v18, %v2491_v28  ;;  %v5338_v57 = vmul.f32 %v5250_v59, %v2398_v27  ;;  %v5345_v54 = vmul.f32 %v5263_v20, %v2398_v27  ;;  %v2602_v18 = vrot.slane %v5331_v21, 2 }
 0x4a0   : > { %v2310_v43 = vpop.permute.xlu1 %2309  ;;  %v2502_v33 = vadd.f32 %v2492_v35, %v2455_v40  ;;  %v2407_v48 = vmul.f32 %v5215_v56, %v2398_v27 }
 0x4a1   : > { %v2538_v12 = vrot.slane %v5338_v57, 1  ;;  %v2237_v5 = vpop.permute.xlu0 %2236  ;;  %v2634_v14 = vrot.slane %v5345_v54, 2  ;;  %v2603_v23 = vsel %vm1228_vm9, %v2600_v9, %v2602_v18 }
 0x4a2   : > { %v2253_v39 = vsel %vm909_vm3, %v2249_v25, %v2237_v5 }
 0x4a3   : > { %v2539_v52 = vsel %vm1101_vm8, %v2536_v22, %v2538_v12  ;;  %v2262_v55 = vmul.f32 %v5190_v34, %v2253_v39  ;;  %v5358_v41 = vmul.f32 %v5204_v7, %v2253_v39  ;;  %v5361_v38 = vmul.f32 %v5213_v6, %v2253_v39 }
 0x4a4   : > { %v2549_v3 = vadd.f32 %v2539_v52, %v2502_v33  ;;  %v2347_v58 = vpop.permute.xlu1 %2346  ;;  %v2411_v34 = vadd.f32 %v2407_v48, %v2338_v2 }
 0x4a5   : > { %v2266_v42 = vadd.f32 %v2262_v55, %v5199_v47  ;;  %v2446_v8 = vrot.slane %v5358_v41, 1  ;;  %v2572_v22 = vrot.slane %v5361_v38, 2  ;;  %v2274_v50 = vpop.permute.xlu0 %2273 }
 0x4a6   : > { %v2581_v17 = vadd.f32 %v2571_v11, %v2549_v3  ;;  %v2635_v11 = vsel %vm1228_vm9, %v2632_v31, %v2634_v14 }
 0x4a7   : > { %v2447_v51 = vsel %vm1101_vm8, %v2444_v53, %v2446_v8  ;;  %v2573_v44 = vsel %vm1228_vm9, %v2570_v46, %v2572_v22 }
 0x4a8   : > { %v2456_v40 = vadd.f32 %v2447_v51, %v2411_v34  ;;  %v2359_v47 = vpop.permute.xlu1 %2358  ;;  %v2613_v26 = vadd.f32 %v2603_v23, %v2581_v17 }
 0x4a9   : > { %v2286_v45 = vpop.permute.xlu0 %2285  ;;  %v2391_v31 = vsel %vm5697_vm4, %v2347_v58, %v2359_v47  ;;  %vm5712_vm4 = vmmov %vm5604_vm0 }
 0x4aa   : > { %v2645_v4 = vadd.f32 %v2635_v11, %v2613_v26  ;;  %v2318_v61 = vsel %vm5696_vm15, %v2274_v50, %v2286_v45  ;;  %vm5711_vm15 = vmmov %vm5604_vm0 }
 0x4ac   : > { %v2383_v53 = vpop.permute.xlu1 %2382  ;;  %2649 = vst.msk [vmem:[%s5314_s6 + $0x8] sm:$0xff] %vm5695_vm14, %v2645_v4  ;;  %2658 = vrot.lane.b32.xlu1 %v2645_v4, %s3350_s26  ;;  %vm5710_vm14 = vmmov %vm5604_vm0 }
 0x4ad   : > { %v2298_v46 = vpop.permute.xlu0 %2297 }
 0x4ae   : > { %v2322_v9 = vsel %vm904_vm10, %v2318_v61, %v2298_v46 }
 0x4af   : > { %v2326_v19 = vsel %vm909_vm3, %v2322_v9, %v2310_v43 }
 0x4b0   : > { %v2335_v49 = vmul.f32 %v5206_v15, %v2326_v19  ;;  %v2481_v37 = vmul.f32 %v5245_v10, %v2326_v19  ;;  %2675 = vrot.lane.b32.xlu1 %v2645_v4, %s3352_s22  ;;  %v2415_v24 = vpop.permute.xlu1 %2414  ;;  %v2592_v32 = vmul.f32 %v5257_v16, %v2326_v19 }
 0x4b1   : > { %v2371_v36 = vpop.permute.xlu0 %2370  ;;  %v2423_v29 = vsel %vm5698_vm5, %v5675_v0, %v2415_v24  ;;  %vm5713_vm5 = vmmov %vm5604_vm0 }
 0x4b2   : > { %v2339_v63 = vadd.f32 %v2335_v49, %v2266_v42  ;;  %v2493_v62 = vrot.slane %v2481_v37, 1  ;;  %v2395_v60 = vsel %vm904_vm10, %v2391_v31, %v2371_v36  ;;  %v2604_v39 = vrot.slane %v2592_v32, 2 }
 0x4b3   : > { %v2399_v30 = vsel %vm909_vm3, %v2395_v60, %v2383_v53 }
 0x4b4   : > { %v2494_v1 = vsel %vm1101_vm8, %v2491_v28, %v2493_v62  ;;  %v2408_v15 = vmul.f32 %v5215_v56, %v2399_v30  ;;  %v2528_v27 = vmul.f32 %v5250_v59, %v2399_v30  ;;  %2692 = vrot.lane.b32.xlu1 %v2645_v4, %s3347_s7  ;;  %v2421_v35 = vpop.permute.xlu1 %2420  ;;  %v2624_v5 = vmul.f32 %v5263_v20, %v2399_v30 }
 0x4b5   : > { %v2418_v13 = vpop.permute.xlu0 %2417  ;;  %v2503_v28 = vadd.f32 %v2494_v1, %v2456_v40  ;;  %v2605_v57 = vsel %vm1228_vm9, %v2602_v18, %v2604_v39 }
 0x4b6   : > { %v2412_v43 = vadd.f32 %v2408_v15, %v2339_v63  ;;  %v2540_v25 = vrot.slane %v2528_v27, 1  ;;  %v2424_v33 = vsel %vm904_vm10, %v2423_v29, %v2418_v13  ;;  %v2636_v2 = vrot.slane %v2624_v5, 2 }
 0x4b7   : > { %v2425_v48 = vsel %vm909_vm3, %v2424_v33, %v2421_v35 }
 0x4b8   : > { %v2541_v56 = vsel %vm1101_vm8, %v2538_v12, %v2540_v25  ;;  %v2435_v52 = vmul.f32 %v5204_v7, %v2425_v48  ;;  %v2561_v55 = vmul.f32 %v5213_v6, %v2425_v48  ;;  %v2462_v0 = vpop.permute.xlu1 %2461 }
 0x4b9   : > { %v2550_v41 = vadd.f32 %v2541_v56, %v2503_v28  ;;  %v2459_v38 = vpop.permute.xlu0 %2458 }
 0x4ba   : > { %v2448_v3 = vrot.slane %v2435_v52, 1  ;;  %v2574_v58 = vrot.slane %v2561_v55, 2  ;;  %v2470_v6 = vsel %vm5699_vm6, %v2459_v38, %v2462_v0 }
 0x4bb   : > { %v2582_v42 = vadd.f32 %v2573_v44, %v2550_v41  ;;  %v2637_v44 = vsel %vm1228_vm9, %v2634_v14, %v2636_v2 }
 0x4bc   : > { %v2449_v50 = vsel %vm1101_vm8, %v2446_v8, %v2448_v3  ;;  %v2575_v34 = vsel %vm1228_vm9, %v2572_v22, %v2574_v58  ;;  %v2468_v17 = vpop.permute.xlu1 %2467 }
 0x4bd   : > { %v2457_v7 = vadd.f32 %v2449_v50, %v2412_v43  ;;  %v2465_v12 = vpop.permute.xlu0 %2464  ;;  %v2614_v51 = vadd.f32 %v2605_v57, %v2582_v42 }
 0x4be   : > { %v2471_v23 = vsel %vm904_vm10, %v2470_v6, %v2465_v12 }
 0x4bf   : > { %v2472_v8 = vsel %vm909_vm3, %v2471_v23, %v2468_v17  ;;  %v2646_v40 = vadd.f32 %v2637_v44, %v2614_v51 }
 0x4c0   : > { %v2482_v22 = vmul.f32 %v5245_v10, %v2472_v8  ;;  %v2509_v47 = vpop.permute.xlu1 %2508  ;;  %v2593_v53 = vmul.f32 %v5257_v16, %v2472_v8 }
 0x4c1   : > { %2650 = vst.msk [vmem:[%s5314_s6 + $0x10] sm:$0xff] %vm5700_vm7, %v2646_v40  ;;  %2660 = vrot.lane.b32.xlu0 %v2646_v40, %s3350_s26  ;;  %v2506_v21 = vpop.permute.xlu0 %2505 }
 0x4c2   : > { %v2495_v18 = vrot.slane %v2482_v22, 1  ;;  %v2517_v54 = vsel %vm5701_vm11, %v2506_v21, %v2509_v47  ;;  %v2606_v19 = vrot.slane %v2593_v53, 2 }
 0x4c4   : > { %v2496_v26 = vsel %vm1101_vm8, %v2493_v62, %v2495_v18  ;;  %v2515_v45 = vpop.permute.xlu1 %2514  ;;  %v2607_v36 = vsel %vm1228_vm9, %v2604_v39, %v2606_v19 }
 0x4c5   : > { %v2504_v11 = vadd.f32 %v2496_v26, %v2457_v7  ;;  %2677 = vrot.lane.b32.xlu0 %v2646_v40, %s3352_s22  ;;  %v2512_v14 = vpop.permute.xlu0 %2511 }
 0x4c6   : > { %v2518_v4 = vsel %vm904_vm10, %v2517_v54, %v2512_v14  ;;  %vm5702_vm10 = vmmov %vm5604_vm0 }
 0x4c7   : > { %v2519_v10 = vsel %vm909_vm3, %v2518_v4, %v2515_v45  ;;  %vm5703_vm3 = vmmov %vm5604_vm0 }
 0x4c8   : > { %v2529_v61 = vmul.f32 %v5250_v59, %v2519_v10  ;;  %v2625_v9 = vmul.f32 %v5263_v20, %v2519_v10 }
 0x4c9   : > { %2694 = vrot.lane.b32.xlu0 %v2646_v40, %s3347_s7 }
 0x4ca   : > { %v2542_v46 = vrot.slane %v2529_v61, 1  ;;  %v2638_v24 = vrot.slane %v2625_v9, 2 }
 0x4cc   : > { %v2543_v49 = vsel %vm1101_vm8, %v2540_v25, %v2542_v46  ;;  %v2639_v59 = vsel %vm1228_vm9, %v2636_v2, %v2638_v24  ;;  %vm5704_vm8 = vmmov %vm5604_vm0 }
 0x4cd   : > { %v2551_v37 = vadd.f32 %v2543_v49, %v2504_v11  ;;  %vm5705_vm9 = vmmov %vm5604_vm0 }
 0x4cf   : > { %v2583_v31 = vadd.f32 %v2575_v34, %v2551_v37 }
 0x4d1   : > { %v2615_v16 = vadd.f32 %v2607_v36, %v2583_v31 }
 0x4d3   : > { %v2647_v63 = vadd.f32 %v2639_v59, %v2615_v16 }
 0x4d5   : > { %2662 = vrot.lane.b32.xlu1 %v2647_v63, %s3350_s26  ;;  %2651 = vst.msk [vmem:[%s5314_s6 + $0x18] sm:$0xff] %vm5702_vm10, %v2647_v63  ;;  %s5465_s26 = scalar_lea.hbm %s5516_s3, %s2926_s18 }
 0x4d9   : > { %2679 = vrot.lane.b32.xlu1 %v2647_v63, %s3352_s22  ;;  %s3265_s22 = scalar_lea.vmem %s5467_s20, 2048 }
 0x4da   : > { %p3266_p11 = scmp.ne.s32.totalorder %s5467_s20, %s3265_s22  ;;  %p3273_p9 = scmp.lt.s32.totalorder %s3271_s17, %s3265_s22 }
 0x4dc   : > { %p3267_p2 = pnand %p3266_p11, %p5714_p0  ;;  %p3274_p12 = por %p3273_p9, %p3272_p7 }
 0x4dd   : > { %2696 = vrot.lane.b32.xlu1 %v2647_v63, %s3347_s7 }
 0x4de   : > { %p3268_p3 = pneg %p3267_p2 }
 0x4e0   : > { %p3275_p1 = pnand %p3274_p12, %p3268_p3 }
 0x507   : > { %v2657_v20 = vpop.permute.xlu0 %2656 }
 0x508   : > { %2908 = vst.msk [vmem:[%s5314_s6 + $0x20] sm:$0xff] %vm5703_vm3, %v2657_v20 }
 0x50b   : > { %v2674_v62 = vpop.permute.xlu0 %2673 }
 0x50c   : > { %2912 = vst.msk [vmem:[%s5314_s6 + $0x40] sm:$0xff] %vm5704_vm8, %v2674_v62 }
 0x50f   : > { %v2691_v60 = vpop.permute.xlu0 %2690 }
 0x510   : > { %2916 = vst.msk [vmem:[%s5314_s6 + $0x60] sm:$0xff] %vm5705_vm9, %v2691_v60 }
 0x51e   : > { %v2659_v30 = vpop.permute.xlu1 %2658 }
 0x51f   : > { %2909 = vst.msk [vmem:[%s5314_s6 + $0x28] sm:$0xff] %vm5604_vm0, %v2659_v30 }
 0x522   : > { %v2676_v1 = vpop.permute.xlu1 %2675 }
 0x523   : > { %2913 = vst.msk [vmem:[%s5314_s6 + $0x48] sm:$0xff] %vm5706_vm2, %v2676_v1 }
 0x526   : > { %v2693_v32 = vpop.permute.xlu1 %2692 }
 0x527   : > { %2917 = vst.msk [vmem:[%s5314_s6 + $0x68] sm:$0xff] %vm5707_vm12, %v2693_v32 }
 0x533   : > { %v2661_v15 = vpop.permute.xlu0 %2660 }
 0x534   : > { %2910 = vst.msk [vmem:[%s5314_s6 + $0x30] sm:$0xff] %vm5708_vm1, %v2661_v15 }
 0x537   : > { %v2678_v27 = vpop.permute.xlu0 %2677 }
 0x538   : > { %2914 = vst.msk [vmem:[%s5314_s6 + $0x50] sm:$0xff] %vm5709_vm13, %v2678_v27 }
 0x53b   : > { %v2695_v35 = vpop.permute.xlu0 %2694 }
 0x53c   : > { %2918 = vst.msk [vmem:[%s5314_s6 + $0x70] sm:$0xff] %vm5710_vm14, %v2695_v35 }
 0x547   : > { %v2663_v29 = vpop.permute.xlu1 %2662 }
 0x548   : > { %2911 = vst.msk [vmem:[%s5314_s6 + $0x38] sm:$0xff] %vm5711_vm15, %v2663_v29 }
 0x54b   : > { %v2680_v13 = vpop.permute.xlu1 %2679 }
 0x54c   : > { %2915 = vst.msk [vmem:[%s5314_s6 + $0x58] sm:$0xff] %vm5712_vm4, %v2680_v13 }
 0x54f   : > { %v2697_v43 = vpop.permute.xlu1 %2696 }
 0x550   : > { %2919 = vst.msk [vmem:[%s5314_s6 + $0x78] sm:$0xff] %vm5713_vm5, %v2697_v43 }
 0x551   : > { %3278 = shalt.err (!%p3275_p1)
}
 0x552   : > { %s3279_s25 = scalar_lea.hbm %s5465_s26, 2048  ;;  %s3283_s24 = scalar_lea.hbm %s5516_s3, 4096 }
 0x553   : > { %p3280_p13 = scmp.ne.s32.totalorder %s5465_s26, %s3279_s25  ;;  %p3284_p4 = scmp.lt.u32.totalorder %s5465_s26, %s5516_s3 }
 0x554   : > { %p3285_p5 = scmp.lt.u32.totalorder %s3283_s24, %s3279_s25  ;;  %p3287_p11 = scmp.lt.u32.totalorder %s3279_s25, %s5465_s26 }
 0x555   : > { %p3281_p6 = pnand %p3280_p13, %p5714_p0 }
 0x556   : > { %p3286_p8 = por %p3285_p5, %p3284_p4 }
 0x557   : > { %p3282_p10 = pneg %p3281_p6 }
 0x558   : > { %p3288_p2 = por %p3287_p11, %p3286_p8 }
 0x55a   : > { %p3289_p3 = pnand %p3288_p2, %p3282_p10 }
 0x55c   : > { %3292 = shalt.err (!%p3289_p3)
}
 0x55d   : > { %s3362_s23 = smov 128   ;;  %s3363_s6 = smov 8  }
 0x55e   : > { %3084 = dma.vmem_to_hbm [thread:$0]  (%p5714_p0), %s5467_s20, 2048, %s5465_s26, %s2708_s28, %s3362_s23, %s3362_s23, %s3363_s6  }
 0x55f PF: > { %s2736_s18 = sand.u32 1, %s3323_s12   ;;  %p5715_p7 = scmp.ne.s32.totalorder %s5559_s19, 0 }
 0x560   : > { %p5716_p9 = scmp.ge.s32.totalorder %s3335_s15, 2  ;;  %s2737_s7 = scalar_lea.sflag [#allocation4], %s2736_s18 }
 0x562   : > { %p3098_p12 = pnand %p5716_p9, %p5715_p7 }
 0x564   : > { %3318 = dma.done.wait (!%p3098_p12), %s2737_s7, 2048  }
 0x565   : > { %3320 = vsyncadd (!%p3098_p12), %s2737_s7, 4294965248  ;;  %p17_p1 = scmp.ge.s32.totalorder %s3498_s5, 4   ;;  %s5717_s12 = smov %s3327_s13 }
 0x566   : > { %s5718_s13 = smov %s3331_s14  ;;  %s5719_s14 = smov %s3514_s10 }
 0x567   : > { %s5720_s15 = smov %s3498_s5  ;;  %19 = sbr.rel (!%p17_p1) target bundleno = 6 (0x6), region = 91 }
 0x56e   :  { %2742 = vsyncpa [#allocation3], 1 }
 0x56f   :  { %2744 = vsyncpa [#allocation3 + $0x1], 1 }
 0x570   :  { %2745 = vsyncpa [#allocation6], 1 }
 0x571   :  { %2746 = vsyncpa [#allocation4], 1 }
 0x572   :  { %2748 = vsyncpa [#allocation4 + $0x1], 1 }

</bundles_post_ra>
